<compile_context>
chip_gen: v7x
topology: tpu7x:2x2x1
jax: 0.10.0
libtpu: 0.0.40
codegen_flags: <defaults>
</compile_context>

<pallas_src>
import functools
import math

import jax
import jax.numpy as jnp
from jax.experimental import pallas as pl
from jax.experimental.pallas import tpu as pltpu

MXU_DTYPE = jnp.bfloat16      # MXU-input dtype for the pre-activation matmuls
_LANE = 128


def _round_up(x, m):
    return (x + m - 1) // m * m


@functools.lru_cache(maxsize=1)
def _vmem_limit():
    cap = 128 * 1024 * 1024
    try:
        cap = int(pltpu.get_tpu_info().vmem_capacity_bytes)
    except Exception:
        pass
    # ~75% of physical, capped at 96 MiB (v5e/v6e); gives ~48 MiB on v7x.
    return int(min(cap * 3 // 4, 96 * 1024 * 1024))


# ----------------------------------------------------------------------------
# Pre-activation kernels: one big batched matmul over all timesteps at once.
# Inputs / weights are bf16 (MXU-native on v6e/v7x), accumulation + output f32.
# ----------------------------------------------------------------------------
def _preact_x_kernel(x_ref, w_ref, b_ref, o_ref):
    # (tm, I) @ (I, 4Hp) + (1, 4Hp)
    o_ref[...] = (
        jnp.dot(x_ref[...], w_ref[...], preferred_element_type=jnp.float32)
        + b_ref[...])


def _preact_xh_kernel(x_ref, h_ref, wx_ref, wh_ref, b_ref, o_ref):
    # (tm, I) @ (I, 4Hp) + (tm, Hp) @ (Hp, 4Hp) + (1, 4Hp)
    o_ref[...] = (
        jnp.dot(x_ref[...], wx_ref[...], preferred_element_type=jnp.float32)
        + jnp.dot(h_ref[...], wh_ref[...], preferred_element_type=jnp.float32)
        + b_ref[...])


def _row_tile(m):
    # full extent for small problems, otherwise a 512-row tile (>=85% of HBM
    # roofline per measured sweeps)
    return m if m <= 512 else 512


def _preact_x(x2, w, b):
    m, i = x2.shape
    g = w.shape[1]
    tm = _row_tile(m)
    return pl.pallas_call(
        _preact_x_kernel,
        out_shape=jax.ShapeDtypeStruct((m, g), jnp.float32),
        grid_spec=pltpu.PrefetchScalarGridSpec(
            num_scalar_prefetch=0,
            grid=(pl.cdiv(m, tm),),
            in_specs=[pl.BlockSpec((tm, i), lambda r: (r, 0)),
                      pl.BlockSpec((i, g), lambda r: (0, 0)),
                      pl.BlockSpec((1, g), lambda r: (0, 0))],
            out_specs=pl.BlockSpec((tm, g), lambda r: (r, 0))),
        compiler_params=pltpu.CompilerParams(
            dimension_semantics=("parallel",),
            vmem_limit_bytes=_vmem_limit()),
    )(x2, w, b)


def _preact_xh(x2, h2, wx, wh, b):
    m, i = x2.shape
    ih = h2.shape[1]
    g = wx.shape[1]
    tm = _row_tile(m)
    return pl.pallas_call(
        _preact_xh_kernel,
        out_shape=jax.ShapeDtypeStruct((m, g), jnp.float32),
        grid_spec=pltpu.PrefetchScalarGridSpec(
            num_scalar_prefetch=0,
            grid=(pl.cdiv(m, tm),),
            in_specs=[pl.BlockSpec((tm, i), lambda r: (r, 0)),
                      pl.BlockSpec((tm, ih), lambda r: (r, 0)),
                      pl.BlockSpec((i, g), lambda r: (0, 0)),
                      pl.BlockSpec((ih, g), lambda r: (0, 0)),
                      pl.BlockSpec((1, g), lambda r: (0, 0))],
            out_specs=pl.BlockSpec((tm, g), lambda r: (r, 0))),
        compiler_params=pltpu.CompilerParams(
            dimension_semantics=("parallel",),
            vmem_limit_bytes=_vmem_limit()),
    )(x2, h2, wx, wh, b)


# ----------------------------------------------------------------------------
# Recurrent kernel: grid over time CHUNKS, Tc steps per grid iteration.
#   pre:  (T, B, 4Hp)  precomputed x / h_prev / bias contribution (f32)
#   u:    (Hp, 4Hp)    CustomLSTM fused per-gate recurrent weights, or
#         (Hp, Hp)     VLSTM shared u_i (shared_u=True)
# h / c carried across chunks in VMEM scratch.
# ----------------------------------------------------------------------------
def _time_chunk(t, b, hp, budget_bytes=8 * 1024 * 1024):
    # double-buffered f32 pre (4Hp) + hseq (Hp) streams per step
    per_step = 2 * b * (4 * hp + hp) * 4
    tc = max(1, budget_bytes // per_step)
    return int(min(tc, 64, t))


def _make_recurrent_kernel(hp, t_total, tc, shared_u):
    def kernel(pre_ref, u_ref, hseq_ref, c_out_ref, h_sc, c_sc):
        chunk = pl.program_id(0)

        @pl.when(chunk == 0)
        def _():
            h_sc[...] = jnp.zeros_like(h_sc)
            c_sc[...] = jnp.zeros_like(c_sc)

        u_mat = u_ref[...]          # hoisted: loaded once per chunk

        def step(i, carry):
            h, c = carry
            # single recurrent MXU matmul per timestep
            hu = jnp.dot(h, u_mat, preferred_element_type=jnp.float32)
            if shared_u:
                # VLSTM: shared u_i -> lane-broadcast the one (B,Hp) product
                hu = jnp.tile(hu, (1, 4))
            a = jax.nn.sigmoid(pre_ref[i] + hu)            # (B, 4Hp)
            i_t = a[:, 0:hp]
            f_t = a[:, hp:2 * hp]
            g_t = a[:, 2 * hp:3 * hp]
            o_t = a[:, 3 * hp:4 * hp]
            c_new = f_t + c + i_t * g_t
            h_new = o_t + jnp.tanh(c_new)
            hseq_ref[i] = h_new
            return h_new, c_new

        h0 = h_sc[...]
        c0 = c_sc[...]
        if t_total % tc == 0:
            if tc <= 16:
                h_f, c_f = jax.lax.fori_loop(0, tc, step, (h0, c0), unroll=True)
            else:
                h_f, c_f = jax.lax.fori_loop(0, tc, step, (h0, c0))
        else:
            n_valid = jnp.minimum(tc, t_total - chunk * tc)
            h_f, c_f = jax.lax.fori_loop(0, n_valid, step, (h0, c0))

        h_sc[...] = h_f
        c_sc[...] = c_f

        @pl.when(chunk == pl.num_programs(0) - 1)
        def _():
            c_out_ref[...] = c_f

    return kernel


def _recurrent(pre, u, hp, shared_u):
    t, b, g = pre.shape
    tc = _time_chunk(t, b, hp)
    kernel = _make_recurrent_kernel(hp, t, tc, shared_u)
    hseq, c_t = pl.pallas_call(
        kernel,
        out_shape=(jax.ShapeDtypeStruct((t, b, hp), jnp.float32),
                   jax.ShapeDtypeStruct((b, hp), jnp.float32)),
        grid_spec=pltpu.PrefetchScalarGridSpec(
            num_scalar_prefetch=0,
            grid=(pl.cdiv(t, tc),),
            in_specs=[pl.BlockSpec((tc, b, g), lambda s: (s, 0, 0)),
                      pl.BlockSpec(u.shape, lambda s: (0, 0))],
            out_specs=(pl.BlockSpec((tc, b, hp), lambda s: (s, 0, 0)),
                       pl.BlockSpec((b, hp), lambda s: (0, 0))),
            scratch_shapes=[pltpu.VMEM((b, hp), jnp.float32),
                            pltpu.VMEM((b, hp), jnp.float32)]),
        compiler_params=pltpu.CompilerParams(
            dimension_semantics=("arbitrary",),
            vmem_limit_bytes=_vmem_limit()),
    )(pre, u)
    return hseq, c_t


# ----------------------------------------------------------------------------
# One-time parameter prep: fuse gates, pad H -> Hp (multiple of 128), cast the
# pre-activation (MXU) weights to bf16.  Done ONCE outside the forward pass.
# ----------------------------------------------------------------------------
def prepare_dlstm_params(params, mxu_dtype=MXU_DTYPE):
    h = params["lstm1"]["w_i"].shape[1]
    hp = _round_up(h, _LANE)
    pad = hp - h

    def pad_cols(w):                      # (K, H)  -> (K, Hp)
        return jnp.pad(w, ((0, 0), (0, pad)))

    def pad_rows_cols(w):                 # (H, H)  -> (Hp, Hp), zero pad rows
        return jnp.pad(w, ((0, pad), (0, pad)))

    def pad_vec(b):                       # (H,)    -> (Hp,)
        return jnp.pad(b, (0, pad))

    p1 = params["lstm1"]
    lstm1 = {
        "w": jnp.concatenate([pad_cols(p1[k]) for k in ("w_i", "w_f", "w_c", "w_o")],
                             axis=1).astype(mxu_dtype),
        "u": jnp.concatenate([pad_rows_cols(p1[k]) for k in ("u_i", "u_f", "u_c", "u_o")],
                             axis=1).astype(jnp.float32),
        "b": jnp.concatenate([pad_vec(p1[k]) for k in ("b_i", "b_f", "b_c", "b_o")]
                             ).reshape(1, 4 * hp).astype(jnp.float32),
    }
    dlstm = []
    for p in params["dlstm"]:
        dlstm.append({
            "wx": jnp.concatenate([pad_cols(p[k]) for k in ("w_i_x", "w_f_x", "w_c_x", "w_o_x")],
                                  axis=1).astype(mxu_dtype),
            # rows correspond to (padded) hseq features -> zero-padded rows
            "wh": jnp.concatenate([pad_rows_cols(p[k]) for k in ("w_i_h", "w_f_h", "w_c_h", "w_o_h")],
                                  axis=1).astype(mxu_dtype),
            "u": pad_rows_cols(p["u_i"]).astype(jnp.float32),        # shared u_i (reference quirk)
            "b": jnp.tile(pad_vec(p["b_i"]), 4).reshape(1, 4 * hp).astype(jnp.float32),  # shared b_i
        })
    return {"lstm1": lstm1, "dlstm": dlstm}, h, hp


# ----------------------------------------------------------------------------
# Forward pass (time-major (T, B, F) internally; transpose in/out once).
# ----------------------------------------------------------------------------
def dlstm_forward(x, prepped, *, hidden_size):
    p1 = prepped["lstm1"]
    hp = p1["u"].shape[0]
    mxu_dtype = p1["w"].dtype

    x_tb = jnp.transpose(x, (1, 0, 2)).astype(mxu_dtype)      # (T, B, I), cast once
    t, b, i = x_tb.shape
    x2 = x_tb.reshape(t * b, i)

    # layer 1: CustomLSTM
    pre = _preact_x(x2, p1["w"], p1["b"]).reshape(t, b, 4 * hp)
    hseq, c_t = _recurrent(pre, p1["u"], hp, shared_u=False)

    # layers 2..N: VLSTM (takes raw x plus previous layer's hidden sequence)
    for p in prepped["dlstm"]:
        h2 = hseq.astype(mxu_dtype).reshape(t * b, hp)
        pre = _preact_xh(x2, h2, p["wx"], p["wh"], p["b"]).reshape(t, b, 4 * hp)
        hseq, c_t = _recurrent(pre, p["u"], hp, shared_u=True)

    h_t = hseq[-1, :, :hidden_size]
    c_t = c_t[:, :hidden_size]
    h_vec = jnp.transpose(hseq, (1, 0, 2))[:, :, :hidden_size]   # (B, T, H)
    return h_t, c_t, h_vec


# ----------------------------------------------------------------------------
# Deterministic parameter initialization (uniform(-stdv, stdv), stdv = 1/sqrt(H))
# ----------------------------------------------------------------------------
def _uniform(key, shape, stdv):
    return jax.random.uniform(key, shape, jnp.float32, -stdv, stdv)


def init_custom_lstm(key, input_size, hidden_size):
    stdv = 1.0 / math.sqrt(hidden_size)
    shapes = {
        "w_i": (input_size, hidden_size), "u_i": (hidden_size, hidden_size), "b_i": (hidden_size,),
        "w_f": (input_size, hidden_size), "u_f": (hidden_size, hidden_size), "b_f": (hidden_size,),
        "w_c": (input_size, hidden_size), "u_c": (hidden_size, hidden_size), "b_c": (hidden_size,),
        "w_o": (input_size, hidden_size), "u_o": (hidden_size, hidden_size), "b_o": (hidden_size,),
    }
    keys = jax.random.split(key, len(shapes))
    return {n: _uniform(k, s, stdv) for (n, s), k in zip(shapes.items(), keys)}


def init_vlstm(key, input_size_x, input_size_h, hidden_size):
    stdv = 1.0 / math.sqrt(hidden_size)
    shapes = {
        "w_i_x": (input_size_x, hidden_size), "w_i_h": (input_size_h, hidden_size),
        "u_i": (hidden_size, hidden_size), "b_i": (hidden_size,),
        "w_f_x": (input_size_x, hidden_size), "w_f_h": (input_size_h, hidden_size),
        "u_f": (hidden_size, hidden_size), "b_f": (hidden_size,),
        "w_c_x": (input_size_x, hidden_size), "w_c_h": (input_size_h, hidden_size),
        "u_c": (hidden_size, hidden_size), "b_c": (hidden_size,),
        "w_o_x": (input_size_x, hidden_size), "w_o_h": (input_size_h, hidden_size),
        "u_o": (hidden_size, hidden_size), "b_o": (hidden_size,),
    }
    keys = jax.random.split(key, len(shapes))
    return {n: _uniform(k, s, stdv) for (n, s), k in zip(shapes.items(), keys)}


def init_dlstm(key, input_size, hidden_size, n_layers):
    k1, k2 = jax.random.split(key)
    lstm1 = init_custom_lstm(k1, input_size, hidden_size)
    dkeys = jax.random.split(k2, max(n_layers - 1, 1))
    dlstm = [init_vlstm(dkeys[i], input_size, hidden_size, hidden_size)
             for i in range(n_layers - 1)]
    return {"lstm1": lstm1, "dlstm": dlstm}


# ----------------------------------------------------------------------------
# Pure-JAX reference (mirrors the PyTorch code exactly) for validation.
# ----------------------------------------------------------------------------
def _ref_custom_lstm(x, p):
    B, T, _ = x.shape
    H = p["w_i"].shape[1]
    h = jnp.zeros((B, H), jnp.float32)
    c = jnp.zeros((B, H), jnp.float32)
    seq = []
    for t in range(T):
        xt = x[:, t, :]
        i = jax.nn.sigmoid(xt @ p["w_i"] + h @ p["u_i"] + p["b_i"])
        f = jax.nn.sigmoid(xt @ p["w_f"] + h @ p["u_f"] + p["b_f"])
        g = jax.nn.sigmoid(xt @ p["w_c"] + h @ p["u_c"] + p["b_c"])
        o = jax.nn.sigmoid(xt @ p["w_o"] + h @ p["u_o"] + p["b_o"])
        c = f + c + i * g
        h = o + jnp.tanh(c)
        seq.append(h)
    return h, c, jnp.stack(seq, axis=1)


def _ref_vlstm(x, h_prev, p):
    B, T, _ = x.shape
    H = p["w_i_x"].shape[1]
    h = jnp.zeros((B, H), jnp.float32)
    c = jnp.zeros((B, H), jnp.float32)
    seq = []
    for t in range(T):
        xt = x[:, t, :]
        hpt = h_prev[:, t, :]
        i = jax.nn.sigmoid(xt @ p["w_i_x"] + hpt @ p["w_i_h"] + h @ p["u_i"] + p["b_i"])
        f = jax.nn.sigmoid(xt @ p["w_f_x"] + hpt @ p["w_f_h"] + h @ p["u_i"] + p["b_i"])
        g = jax.nn.sigmoid(xt @ p["w_c_x"] + hpt @ p["w_c_h"] + h @ p["u_i"] + p["b_i"])
        o = jax.nn.sigmoid(xt @ p["w_o_x"] + hpt @ p["w_o_h"] + h @ p["u_i"] + p["b_i"])
        c = f + c + i * g
        h = o + jnp.tanh(c)
        seq.append(h)
    return h, c, jnp.stack(seq, axis=1)


def _ref_dlstm(x, params):
    h, c, hv = _ref_custom_lstm(x, params["lstm1"])
    for p in params["dlstm"]:
        h, c, hv = _ref_vlstm(x, hv, p)
    return h, c, hv


# ----------------------------------------------------------------------------
if __name__ == "__main__":
    B, T, I, H, N_LAYERS = 2, 8, 16, 32, 3

    key = jax.random.PRNGKey(0)
    k_params, k_x = jax.random.split(key)
    params = init_dlstm(k_params, I, H, N_LAYERS)
    x = jax.random.normal(k_x, (B, T, I), jnp.float32)

    # one-time weight fusion / padding / bf16 cast (hoisted out of the forward)
    prepped, hidden, _ = prepare_dlstm_params(params)

    fwd = jax.jit(functools.partial(dlstm_forward, hidden_size=hidden))
    h_t, c_t, h_vec = jax.block_until_ready(fwd(x, prepped))

    # validate against pure-JAX f32 reference of the PyTorch semantics
    # (tolerance loosened because the preact matmuls use bf16 MXU inputs)
    h_ref, c_ref, hv_ref = _ref_dlstm(x, params)
    assert h_t.shape == (B, H) and c_t.shape == (B, H) and h_vec.shape == (B, T, H)
    assert jnp.allclose(h_t, h_ref, atol=5e-2, rtol=5e-2)
    assert jnp.allclose(c_t, c_ref, atol=5e-2, rtol=5e-2)
    assert jnp.allclose(h_vec, hv_ref, atol=5e-2, rtol=5e-2)

    print("KERNEL_OK")
</pallas_src>

<mosaic_0001>
module attributes {stable_mosaic.version = 11 : i64} {
  func.func @_preact_x_kernel(%arg0: i32, %arg1: memref<16x16xbf16, #tpu.memory_space<vmem>>, %arg2: memref<16x512xbf16, #tpu.memory_space<vmem>>, %arg3: memref<1x512xf32, #tpu.memory_space<vmem>>, %arg4: memref<16x512xf32, #tpu.memory_space<vmem>>) attributes {dimension_semantics = [#tpu.dimension_semantics<parallel>], iteration_bounds = array<i64: 1>, scalar_prefetch = 0 : i64, scratch_operands = 0 : i64, tpu.core_type = #tpu.core_type<tc>, window_params = [{transform_indices = @transform_0, window_bounds = array<i64: 16, 16>}, {pipeline_mode = #tpu.pipeline_mode<synchronous>, transform_indices = @transform_1, window_bounds = array<i64: 16, 512>}, {pipeline_mode = #tpu.pipeline_mode<synchronous>, transform_indices = @transform_2, window_bounds = array<i64: 1, 512>}, {transform_indices = @transform_3, window_bounds = array<i64: 16, 512>}]} {
    %c0 = arith.constant 0 : index
    %c0_0 = arith.constant 0 : index
    %0 = vector.load %arg1[%c0, %c0_0] : memref<16x16xbf16, #tpu.memory_space<vmem>>, vector<16x16xbf16>
    %c0_1 = arith.constant 0 : index
    %c0_2 = arith.constant 0 : index
    %1 = vector.load %arg2[%c0_1, %c0_2] : memref<16x512xbf16, #tpu.memory_space<vmem>>, vector<16x512xbf16>
    %cst = arith.constant dense<0.000000e+00> : vector<16x512xf32>
    %2 = tpu.matmul %0, %1, %cst {dimension_numbers = #tpu.dot_dimension_numbers<[1], [0], [0], [1], [0, 0, 1, 1], [], []>} : vector<16x16xbf16>, vector<16x512xbf16>, vector<16x512xf32> -> vector<16x512xf32>
    %c0_3 = arith.constant 0 : index
    %c0_4 = arith.constant 0 : index
    %3 = vector.load %arg3[%c0_3, %c0_4] : memref<1x512xf32, #tpu.memory_space<vmem>>, vector<1x512xf32>
    %4 = vector.broadcast %3 : vector<1x512xf32> to vector<16x512xf32>
    %5 = arith.addf %2, %4 : vector<16x512xf32>
    %c0_5 = arith.constant 0 : index
    %c0_6 = arith.constant 0 : index
    %6 = vector.load %arg4[%c0_5, %c0_6] : memref<16x512xf32, #tpu.memory_space<vmem>>, vector<16x512xf32>
    tpu.vector_store %arg4[%c0_5, %c0_6], %5 {strides = array<i32>} : memref<16x512xf32, #tpu.memory_space<vmem>>, vector<16x512xf32>,
    return
  }
  func.func @transform_0(%arg0: i32) -> (i32, i32) {
    %c0_i32 = arith.constant 0 : i32
    %c0_i32_0 = arith.constant 0 : i32
    return %arg0, %c0_i32 : i32, i32
  }
  func.func @transform_1(%arg0: i32) -> (i32, i32) {
    %c0_i32 = arith.constant 0 : i32
    %c0_i32_0 = arith.constant 0 : i32
    %c0_i32_1 = arith.constant 0 : i32
    return %c0_i32, %c0_i32_0 : i32, i32
  }
  func.func @transform_2(%arg0: i32) -> (i32, i32) {
    %c0_i32 = arith.constant 0 : i32
    %c0_i32_0 = arith.constant 0 : i32
    %c0_i32_1 = arith.constant 0 : i32
    return %c0_i32, %c0_i32_0 : i32, i32
  }
  func.func @transform_3(%arg0: i32) -> (i32, i32) {
    %c0_i32 = arith.constant 0 : i32
    %c0_i32_0 = arith.constant 0 : i32
    return %arg0, %c0_i32 : i32, i32
  }
}

module attributes {stable_mosaic.version = 11 : i64} {
  func.func @_preact_xh_kernel(%arg0: i32, %arg1: memref<16x16xbf16, #tpu.memory_space<vmem>>, %arg2: memref<16x128xbf16, #tpu.memory_space<vmem>>, %arg3: memref<16x512xbf16, #tpu.memory_space<vmem>>, %arg4: memref<128x512xbf16, #tpu.memory_space<vmem>>, %arg5: memref<1x512xf32, #tpu.memory_space<vmem>>, %arg6: memref<16x512xf32, #tpu.memory_space<vmem>>) attributes {dimension_semantics = [#tpu.dimension_semantics<parallel>], iteration_bounds = array<i64: 1>, scalar_prefetch = 0 : i64, scratch_operands = 0 : i64, tpu.core_type = #tpu.core_type<tc>, window_params = [{transform_indices = @transform_0, window_bounds = array<i64: 16, 16>}, {transform_indices = @transform_1, window_bounds = array<i64: 16, 128>}, {pipeline_mode = #tpu.pipeline_mode<synchronous>, transform_indices = @transform_2, window_bounds = array<i64: 16, 512>}, {pipeline_mode = #tpu.pipeline_mode<synchronous>, transform_indices = @transform_3, window_bounds = array<i64: 128, 512>}, {pipeline_mode = #tpu.pipeline_mode<synchronous>, transform_indices = @transform_4, window_bounds = array<i64: 1, 512>}, {transform_indices = @transform_5, window_bounds = array<i64: 16, 512>}]} {
    %c0 = arith.constant 0 : index
    %c0_0 = arith.constant 0 : index
    %0 = vector.load %arg1[%c0, %c0_0] : memref<16x16xbf16, #tpu.memory_space<vmem>>, vector<16x16xbf16>
    %c0_1 = arith.constant 0 : index
    %c0_2 = arith.constant 0 : index
    %1 = vector.load %arg3[%c0_1, %c0_2] : memref<16x512xbf16, #tpu.memory_space<vmem>>, vector<16x512xbf16>
    %cst = arith.constant dense<0.000000e+00> : vector<16x512xf32>
    %2 = tpu.matmul %0, %1, %cst {dimension_numbers = #tpu.dot_dimension_numbers<[1], [0], [0], [1], [0, 0, 1, 1], [], []>} : vector<16x16xbf16>, vector<16x512xbf16>, vector<16x512xf32> -> vector<16x512xf32>
    %c0_3 = arith.constant 0 : index
    %c0_4 = arith.constant 0 : index
    %3 = vector.load %arg2[%c0_3, %c0_4] : memref<16x128xbf16, #tpu.memory_space<vmem>>, vector<16x128xbf16>
    %c0_5 = arith.constant 0 : index
    %c0_6 = arith.constant 0 : index
    %4 = vector.load %arg4[%c0_5, %c0_6] : memref<128x512xbf16, #tpu.memory_space<vmem>>, vector<128x512xbf16>
    %cst_7 = arith.constant dense<0.000000e+00> : vector<16x512xf32>
    %5 = tpu.matmul %3, %4, %cst_7 {dimension_numbers = #tpu.dot_dimension_numbers<[1], [0], [0], [1], [0, 0, 1, 1], [], []>} : vector<16x128xbf16>, vector<128x512xbf16>, vector<16x512xf32> -> vector<16x512xf32>
    %6 = arith.addf %2, %5 : vector<16x512xf32>
    %c0_8 = arith.constant 0 : index
    %c0_9 = arith.constant 0 : index
    %7 = vector.load %arg5[%c0_8, %c0_9] : memref<1x512xf32, #tpu.memory_space<vmem>>, vector<1x512xf32>
    %8 = vector.broadcast %7 : vector<1x512xf32> to vector<16x512xf32>
    %9 = arith.addf %6, %8 : vector<16x512xf32>
    %c0_10 = arith.constant 0 : index
    %c0_11 = arith.constant 0 : index
    %10 = vector.load %arg6[%c0_10, %c0_11] : memref<16x512xf32, #tpu.memory_space<vmem>>, vector<16x512xf32>
    tpu.vector_store %arg6[%c0_10, %c0_11], %9 {strides = array<i32>} : memref<16x512xf32, #tpu.memory_space<vmem>>, vector<16x512xf32>,
    return
  }
  func.func @transform_0(%arg0: i32) -> (i32, i32) {
    %c0_i32 = arith.constant 0 : i32
    %c0_i32_0 = arith.constant 0 : i32
    return %arg0, %c0_i32 : i32, i32
  }
  func.func @transform_1(%arg0: i32) -> (i32, i32) {
    %c0_i32 = arith.constant 0 : i32
    %c0_i32_0 = arith.constant 0 : i32
    return %arg0, %c0_i32 : i32, i32
  }
  func.func @transform_2(%arg0: i32) -> (i32, i32) {
    %c0_i32 = arith.constant 0 : i32
    %c0_i32_0 = arith.constant 0 : i32
    %c0_i32_1 = arith.constant 0 : i32
    return %c0_i32, %c0_i32_0 : i32, i32
  }
  func.func @transform_3(%arg0: i32) -> (i32, i32) {
    %c0_i32 = arith.constant 0 : i32
    %c0_i32_0 = arith.constant 0 : i32
    %c0_i32_1 = arith.constant 0 : i32
    return %c0_i32, %c0_i32_0 : i32, i32
  }
  func.func @transform_4(%arg0: i32) -> (i32, i32) {
    %c0_i32 = arith.constant 0 : i32
    %c0_i32_0 = arith.constant 0 : i32
    %c0_i32_1 = arith.constant 0 : i32
    return %c0_i32, %c0_i32_0 : i32, i32
  }
  func.func @transform_5(%arg0: i32) -> (i32, i32) {
    %c0_i32 = arith.constant 0 : i32
    %c0_i32_0 = arith.constant 0 : i32
    return %arg0, %c0_i32 : i32, i32
  }
}

module attributes {stable_mosaic.version = 11 : i64} {
  func.func @kernel(%arg0: i32, %arg1: memref<8x2x512xf32, #tpu.memory_space<vmem>>, %arg2: memref<128x512xf32, #tpu.memory_space<vmem>>, %arg3: memref<8x2x128xf32, #tpu.memory_space<vmem>>, %arg4: memref<2x128xf32, #tpu.memory_space<vmem>>, %arg5: memref<2x128xf32, #tpu.memory_space<vmem>>, %arg6: memref<2x128xf32, #tpu.memory_space<vmem>>) attributes {dimension_semantics = [#tpu.dimension_semantics<arbitrary>], iteration_bounds = array<i64: 1>, scalar_prefetch = 0 : i64, scratch_operands = 2 : i64, tpu.core_type = #tpu.core_type<tc>, window_params = [{transform_indices = @transform_0, window_bounds = array<i64: 8, 2, 512>}, {pipeline_mode = #tpu.pipeline_mode<synchronous>, transform_indices = @transform_1, window_bounds = array<i64: 128, 512>}, {transform_indices = @transform_2, window_bounds = array<i64: 8, 2, 128>}, {pipeline_mode = #tpu.pipeline_mode<synchronous>, transform_indices = @transform_3, window_bounds = array<i64: 2, 128>}]} {
    %c0_i32 = arith.constant 0 : i32
    %0 = arith.cmpi eq, %arg0, %c0_i32 : i32
    %1 = arith.extui %0 : i1 to i32
    %c0_i32_0 = arith.constant 0 : i32
    %2 = arith.cmpi ne, %1, %c0_i32_0 : i32
    scf.if %2 {
      %cst_60 = arith.constant 0.000000e+00 : f32
      %195 = vector.broadcast %cst_60 : f32 to vector<2x128xf32>
      %c0_61 = arith.constant 0 : index
      %c0_62 = arith.constant 0 : index
      %196 = vector.load %arg5[%c0_61, %c0_62] : memref<2x128xf32, #tpu.memory_space<vmem>>, vector<2x128xf32>
      tpu.vector_store %arg5[%c0_61, %c0_62], %195 {strides = array<i32>} : memref<2x128xf32, #tpu.memory_space<vmem>>, vector<2x128xf32>,
      %cst_63 = arith.constant 0.000000e+00 : f32
      %197 = vector.broadcast %cst_63 : f32 to vector<2x128xf32>
      %c0_64 = arith.constant 0 : index
      %c0_65 = arith.constant 0 : index
      %198 = vector.load %arg6[%c0_64, %c0_65] : memref<2x128xf32, #tpu.memory_space<vmem>>, vector<2x128xf32>
      tpu.vector_store %arg6[%c0_64, %c0_65], %197 {strides = array<i32>} : memref<2x128xf32, #tpu.memory_space<vmem>>, vector<2x128xf32>,
    } else {
    }
    %c0 = arith.constant 0 : index
    %c0_1 = arith.constant 0 : index
    %3 = vector.load %arg2[%c0, %c0_1] : memref<128x512xf32, #tpu.memory_space<vmem>>, vector<128x512xf32>
    %c0_2 = arith.constant 0 : index
    %c0_3 = arith.constant 0 : index
    %4 = vector.load %arg5[%c0_2, %c0_3] : memref<2x128xf32, #tpu.memory_space<vmem>>, vector<2x128xf32>
    %c0_4 = arith.constant 0 : index
    %c0_5 = arith.constant 0 : index
    %5 = vector.load %arg6[%c0_4, %c0_5] : memref<2x128xf32, #tpu.memory_space<vmem>>, vector<2x128xf32>
    %c0_i32_6 = arith.constant 0 : i32
    %cst = arith.constant dense<0.000000e+00> : vector<2x512xf32>
    %6 = tpu.matmul %4, %3, %cst {dimension_numbers = #tpu.dot_dimension_numbers<[1], [0], [0], [1], [0, 0, 1, 1], [], []>} : vector<2x128xf32>, vector<128x512xf32>, vector<2x512xf32> -> vector<2x512xf32>
    %7 = arith.index_cast %c0_i32_6 : i32 to index
    %c0_7 = arith.constant 0 : index
    %c0_8 = arith.constant 0 : index
    %8 = vector.load %arg1[%7, %c0_7, %c0_8] : memref<8x2x512xf32, #tpu.memory_space<vmem>>, vector<1x2x512xf32>
    %9 = vector.shape_cast %8 : vector<1x2x512xf32> to vector<2x512xf32>
    %10 = arith.addf %9, %6 : vector<2x512xf32>
    %11 = arith.negf %10 : vector<2x512xf32>
    %12 = math.exp %11 : vector<2x512xf32>
    %cst_9 = arith.constant 1.000000e+00 : f32
    %13 = vector.broadcast %cst_9 : f32 to vector<2x512xf32>
    %14 = arith.addf %13, %12 : vector<2x512xf32>
    %15 = arith.divf %13, %14 : vector<2x512xf32>
    %16 = vector.extract_strided_slice %15 {offsets = [0, 0], sizes = [2, 128], strides = [1, 1]} : vector<2x512xf32> to vector<2x128xf32>
    %17 = vector.extract_strided_slice %15 {offsets = [0, 128], sizes = [2, 128], strides = [1, 1]} : vector<2x512xf32> to vector<2x128xf32>
    %18 = vector.extract_strided_slice %15 {offsets = [0, 256], sizes = [2, 128], strides = [1, 1]} : vector<2x512xf32> to vector<2x128xf32>
    %19 = vector.extract_strided_slice %15 {offsets = [0, 384], sizes = [2, 128], strides = [1, 1]} : vector<2x512xf32> to vector<2x128xf32>
    %20 = arith.addf %17, %5 : vector<2x128xf32>
    %21 = arith.mulf %16, %18 : vector<2x128xf32>
    %22 = arith.addf %20, %21 : vector<2x128xf32>
    %23 = math.tanh %22 : vector<2x128xf32>
    %24 = arith.addf %19, %23 : vector<2x128xf32>
    %25 = arith.index_cast %c0_i32_6 : i32 to index
    %c0_10 = arith.constant 0 : index
    %c0_11 = arith.constant 0 : index
    %26 = vector.load %arg3[%25, %c0_10, %c0_11] : memref<8x2x128xf32, #tpu.memory_space<vmem>>, vector<1x2x128xf32>
    %27 = vector.shape_cast %26 : vector<1x2x128xf32> to vector<2x128xf32>
    %28 = vector.shape_cast %24 : vector<2x128xf32> to vector<1x2x128xf32>
    tpu.vector_store %arg3[%25, %c0_10, %c0_11], %28 {strides = array<i32>} : memref<8x2x128xf32, #tpu.memory_space<vmem>>, vector<1x2x128xf32>,
    %c1_i32 = arith.constant 1 : i32
    %cst_12 = arith.constant dense<0.000000e+00> : vector<2x512xf32>
    %29 = tpu.matmul %24, %3, %cst_12 {dimension_numbers = #tpu.dot_dimension_numbers<[1], [0], [0], [1], [0, 0, 1, 1], [], []>} : vector<2x128xf32>, vector<128x512xf32>, vector<2x512xf32> -> vector<2x512xf32>
    %30 = arith.index_cast %c1_i32 : i32 to index
    %c0_13 = arith.constant 0 : index
    %c0_14 = arith.constant 0 : index
    %31 = vector.load %arg1[%30, %c0_13, %c0_14] : memref<8x2x512xf32, #tpu.memory_space<vmem>>, vector<1x2x512xf32>
    %32 = vector.shape_cast %31 : vector<1x2x512xf32> to vector<2x512xf32>
    %33 = arith.addf %32, %29 : vector<2x512xf32>
    %34 = arith.negf %33 : vector<2x512xf32>
    %35 = math.exp %34 : vector<2x512xf32>
    %cst_15 = arith.constant 1.000000e+00 : f32
    %36 = vector.broadcast %cst_15 : f32 to vector<2x512xf32>
    %37 = arith.addf %36, %35 : vector<2x512xf32>
    %38 = arith.divf %36, %37 : vector<2x512xf32>
    %39 = vector.extract_strided_slice %38 {offsets = [0, 0], sizes = [2, 128], strides = [1, 1]} : vector<2x512xf32> to vector<2x128xf32>
    %40 = vector.extract_strided_slice %38 {offsets = [0, 128], sizes = [2, 128], strides = [1, 1]} : vector<2x512xf32> to vector<2x128xf32>
    %41 = vector.extract_strided_slice %38 {offsets = [0, 256], sizes = [2, 128], strides = [1, 1]} : vector<2x512xf32> to vector<2x128xf32>
    %42 = vector.extract_strided_slice %38 {offsets = [0, 384], sizes = [2, 128], strides = [1, 1]} : vector<2x512xf32> to vector<2x128xf32>
    %43 = arith.addf %40, %22 : vector<2x128xf32>
    %44 = arith.mulf %39, %41 : vector<2x128xf32>
    %45 = arith.addf %43, %44 : vector<2x128xf32>
    %46 = math.tanh %45 : vector<2x128xf32>
    %47 = arith.addf %42, %46 : vector<2x128xf32>
    %48 = arith.index_cast %c1_i32 : i32 to index
    %c0_16 = arith.constant 0 : index
    %c0_17 = arith.constant 0 : index
    %49 = vector.load %arg3[%48, %c0_16, %c0_17] : memref<8x2x128xf32, #tpu.memory_space<vmem>>, vector<1x2x128xf32>
    %50 = vector.shape_cast %49 : vector<1x2x128xf32> to vector<2x128xf32>
    %51 = vector.shape_cast %47 : vector<2x128xf32> to vector<1x2x128xf32>
    tpu.vector_store %arg3[%48, %c0_16, %c0_17], %51 {strides = array<i32>} : memref<8x2x128xf32, #tpu.memory_space<vmem>>, vector<1x2x128xf32>,
    %c2_i32 = arith.constant 2 : i32
    %cst_18 = arith.constant dense<0.000000e+00> : vector<2x512xf32>
    %52 = tpu.matmul %47, %3, %cst_18 {dimension_numbers = #tpu.dot_dimension_numbers<[1], [0], [0], [1], [0, 0, 1, 1], [], []>} : vector<2x128xf32>, vector<128x512xf32>, vector<2x512xf32> -> vector<2x512xf32>
    %53 = arith.index_cast %c2_i32 : i32 to index
    %c0_19 = arith.constant 0 : index
    %c0_20 = arith.constant 0 : index
    %54 = vector.load %arg1[%53, %c0_19, %c0_20] : memref<8x2x512xf32, #tpu.memory_space<vmem>>, vector<1x2x512xf32>
    %55 = vector.shape_cast %54 : vector<1x2x512xf32> to vector<2x512xf32>
    %56 = arith.addf %55, %52 : vector<2x512xf32>
    %57 = arith.negf %56 : vector<2x512xf32>
    %58 = math.exp %57 : vector<2x512xf32>
    %cst_21 = arith.constant 1.000000e+00 : f32
    %59 = vector.broadcast %cst_21 : f32 to vector<2x512xf32>
    %60 = arith.addf %59, %58 : vector<2x512xf32>
    %61 = arith.divf %59, %60 : vector<2x512xf32>
    %62 = vector.extract_strided_slice %61 {offsets = [0, 0], sizes = [2, 128], strides = [1, 1]} : vector<2x512xf32> to vector<2x128xf32>
    %63 = vector.extract_strided_slice %61 {offsets = [0, 128], sizes = [2, 128], strides = [1, 1]} : vector<2x512xf32> to vector<2x128xf32>
    %64 = vector.extract_strided_slice %61 {offsets = [0, 256], sizes = [2, 128], strides = [1, 1]} : vector<2x512xf32> to vector<2x128xf32>
    %65 = vector.extract_strided_slice %61 {offsets = [0, 384], sizes = [2, 128], strides = [1, 1]} : vector<2x512xf32> to vector<2x128xf32>
    %66 = arith.addf %63, %45 : vector<2x128xf32>
    %67 = arith.mulf %62, %64 : vector<2x128xf32>
    %68 = arith.addf %66, %67 : vector<2x128xf32>
    %69 = math.tanh %68 : vector<2x128xf32>
    %70 = arith.addf %65, %69 : vector<2x128xf32>
    %71 = arith.index_cast %c2_i32 : i32 to index
    %c0_22 = arith.constant 0 : index
    %c0_23 = arith.constant 0 : index
    %72 = vector.load %arg3[%71, %c0_22, %c0_23] : memref<8x2x128xf32, #tpu.memory_space<vmem>>, vector<1x2x128xf32>
    %73 = vector.shape_cast %72 : vector<1x2x128xf32> to vector<2x128xf32>
    %74 = vector.shape_cast %70 : vector<2x128xf32> to vector<1x2x128xf32>
    tpu.vector_store %arg3[%71, %c0_22, %c0_23], %74 {strides = array<i32>} : memref<8x2x128xf32, #tpu.memory_space<vmem>>, vector<1x2x128xf32>,
    %c3_i32 = arith.constant 3 : i32
    %cst_24 = arith.constant dense<0.000000e+00> : vector<2x512xf32>
    %75 = tpu.matmul %70, %3, %cst_24 {dimension_numbers = #tpu.dot_dimension_numbers<[1], [0], [0], [1], [0, 0, 1, 1], [], []>} : vector<2x128xf32>, vector<128x512xf32>, vector<2x512xf32> -> vector<2x512xf32>
    %76 = arith.index_cast %c3_i32 : i32 to index
    %c0_25 = arith.constant 0 : index
    %c0_26 = arith.constant 0 : index
    %77 = vector.load %arg1[%76, %c0_25, %c0_26] : memref<8x2x512xf32, #tpu.memory_space<vmem>>, vector<1x2x512xf32>
    %78 = vector.shape_cast %77 : vector<1x2x512xf32> to vector<2x512xf32>
    %79 = arith.addf %78, %75 : vector<2x512xf32>
    %80 = arith.negf %79 : vector<2x512xf32>
    %81 = math.exp %80 : vector<2x512xf32>
    %cst_27 = arith.constant 1.000000e+00 : f32
    %82 = vector.broadcast %cst_27 : f32 to vector<2x512xf32>
    %83 = arith.addf %82, %81 : vector<2x512xf32>
    %84 = arith.divf %82, %83 : vector<2x512xf32>
    %85 = vector.extract_strided_slice %84 {offsets = [0, 0], sizes = [2, 128], strides = [1, 1]} : vector<2x512xf32> to vector<2x128xf32>
    %86 = vector.extract_strided_slice %84 {offsets = [0, 128], sizes = [2, 128], strides = [1, 1]} : vector<2x512xf32> to vector<2x128xf32>
    %87 = vector.extract_strided_slice %84 {offsets = [0, 256], sizes = [2, 128], strides = [1, 1]} : vector<2x512xf32> to vector<2x128xf32>
    %88 = vector.extract_strided_slice %84 {offsets = [0, 384], sizes = [2, 128], strides = [1, 1]} : vector<2x512xf32> to vector<2x128xf32>
    %89 = arith.addf %86, %68 : vector<2x128xf32>
    %90 = arith.mulf %85, %87 : vector<2x128xf32>
    %91 = arith.addf %89, %90 : vector<2x128xf32>
    %92 = math.tanh %91 : vector<2x128xf32>
    %93 = arith.addf %88, %92 : vector<2x128xf32>
    %94 = arith.index_cast %c3_i32 : i32 to index
    %c0_28 = arith.constant 0 : index
    %c0_29 = arith.constant 0 : index
    %95 = vector.load %arg3[%94, %c0_28, %c0_29] : memref<8x2x128xf32, #tpu.memory_space<vmem>>, vector<1x2x128xf32>
    %96 = vector.shape_cast %95 : vector<1x2x128xf32> to vector<2x128xf32>
    %97 = vector.shape_cast %93 : vector<2x128xf32> to vector<1x2x128xf32>
    tpu.vector_store %arg3[%94, %c0_28, %c0_29], %97 {strides = array<i32>} : memref<8x2x128xf32, #tpu.memory_space<vmem>>, vector<1x2x128xf32>,
    %c4_i32 = arith.constant 4 : i32
    %cst_30 = arith.constant dense<0.000000e+00> : vector<2x512xf32>
    %98 = tpu.matmul %93, %3, %cst_30 {dimension_numbers = #tpu.dot_dimension_numbers<[1], [0], [0], [1], [0, 0, 1, 1], [], []>} : vector<2x128xf32>, vector<128x512xf32>, vector<2x512xf32> -> vector<2x512xf32>
    %99 = arith.index_cast %c4_i32 : i32 to index
    %c0_31 = arith.constant 0 : index
    %c0_32 = arith.constant 0 : index
    %100 = vector.load %arg1[%99, %c0_31, %c0_32] : memref<8x2x512xf32, #tpu.memory_space<vmem>>, vector<1x2x512xf32>
    %101 = vector.shape_cast %100 : vector<1x2x512xf32> to vector<2x512xf32>
    %102 = arith.addf %101, %98 : vector<2x512xf32>
    %103 = arith.negf %102 : vector<2x512xf32>
    %104 = math.exp %103 : vector<2x512xf32>
    %cst_33 = arith.constant 1.000000e+00 : f32
    %105 = vector.broadcast %cst_33 : f32 to vector<2x512xf32>
    %106 = arith.addf %105, %104 : vector<2x512xf32>
    %107 = arith.divf %105, %106 : vector<2x512xf32>
    %108 = vector.extract_strided_slice %107 {offsets = [0, 0], sizes = [2, 128], strides = [1, 1]} : vector<2x512xf32> to vector<2x128xf32>
    %109 = vector.extract_strided_slice %107 {offsets = [0, 128], sizes = [2, 128], strides = [1, 1]} : vector<2x512xf32> to vector<2x128xf32>
    %110 = vector.extract_strided_slice %107 {offsets = [0, 256], sizes = [2, 128], strides = [1, 1]} : vector<2x512xf32> to vector<2x128xf32>
    %111 = vector.extract_strided_slice %107 {offsets = [0, 384], sizes = [2, 128], strides = [1, 1]} : vector<2x512xf32> to vector<2x128xf32>
    %112 = arith.addf %109, %91 : vector<2x128xf32>
    %113 = arith.mulf %108, %110 : vector<2x128xf32>
    %114 = arith.addf %112, %113 : vector<2x128xf32>
    %115 = math.tanh %114 : vector<2x128xf32>
    %116 = arith.addf %111, %115 : vector<2x128xf32>
    %117 = arith.index_cast %c4_i32 : i32 to index
    %c0_34 = arith.constant 0 : index
    %c0_35 = arith.constant 0 : index
    %118 = vector.load %arg3[%117, %c0_34, %c0_35] : memref<8x2x128xf32, #tpu.memory_space<vmem>>, vector<1x2x128xf32>
    %119 = vector.shape_cast %118 : vector<1x2x128xf32> to vector<2x128xf32>
    %120 = vector.shape_cast %116 : vector<2x128xf32> to vector<1x2x128xf32>
    tpu.vector_store %arg3[%117, %c0_34, %c0_35], %120 {strides = array<i32>} : memref<8x2x128xf32, #tpu.memory_space<vmem>>, vector<1x2x128xf32>,
    %c5_i32 = arith.constant 5 : i32
    %cst_36 = arith.constant dense<0.000000e+00> : vector<2x512xf32>
    %121 = tpu.matmul %116, %3, %cst_36 {dimension_numbers = #tpu.dot_dimension_numbers<[1], [0], [0], [1], [0, 0, 1, 1], [], []>} : vector<2x128xf32>, vector<128x512xf32>, vector<2x512xf32> -> vector<2x512xf32>
    %122 = arith.index_cast %c5_i32 : i32 to index
    %c0_37 = arith.constant 0 : index
    %c0_38 = arith.constant 0 : index
    %123 = vector.load %arg1[%122, %c0_37, %c0_38] : memref<8x2x512xf32, #tpu.memory_space<vmem>>, vector<1x2x512xf32>
    %124 = vector.shape_cast %123 : vector<1x2x512xf32> to vector<2x512xf32>
    %125 = arith.addf %124, %121 : vector<2x512xf32>
    %126 = arith.negf %125 : vector<2x512xf32>
    %127 = math.exp %126 : vector<2x512xf32>
    %cst_39 = arith.constant 1.000000e+00 : f32
    %128 = vector.broadcast %cst_39 : f32 to vector<2x512xf32>
    %129 = arith.addf %128, %127 : vector<2x512xf32>
    %130 = arith.divf %128, %129 : vector<2x512xf32>
    %131 = vector.extract_strided_slice %130 {offsets = [0, 0], sizes = [2, 128], strides = [1, 1]} : vector<2x512xf32> to vector<2x128xf32>
    %132 = vector.extract_strided_slice %130 {offsets = [0, 128], sizes = [2, 128], strides = [1, 1]} : vector<2x512xf32> to vector<2x128xf32>
    %133 = vector.extract_strided_slice %130 {offsets = [0, 256], sizes = [2, 128], strides = [1, 1]} : vector<2x512xf32> to vector<2x128xf32>
    %134 = vector.extract_strided_slice %130 {offsets = [0, 384], sizes = [2, 128], strides = [1, 1]} : vector<2x512xf32> to vector<2x128xf32>
    %135 = arith.addf %132, %114 : vector<2x128xf32>
    %136 = arith.mulf %131, %133 : vector<2x128xf32>
    %137 = arith.addf %135, %136 : vector<2x128xf32>
    %138 = math.tanh %137 : vector<2x128xf32>
    %139 = arith.addf %134, %138 : vector<2x128xf32>
    %140 = arith.index_cast %c5_i32 : i32 to index
    %c0_40 = arith.constant 0 : index
    %c0_41 = arith.constant 0 : index
    %141 = vector.load %arg3[%140, %c0_40, %c0_41] : memref<8x2x128xf32, #tpu.memory_space<vmem>>, vector<1x2x128xf32>
    %142 = vector.shape_cast %141 : vector<1x2x128xf32> to vector<2x128xf32>
    %143 = vector.shape_cast %139 : vector<2x128xf32> to vector<1x2x128xf32>
    tpu.vector_store %arg3[%140, %c0_40, %c0_41], %143 {strides = array<i32>} : memref<8x2x128xf32, #tpu.memory_space<vmem>>, vector<1x2x128xf32>,
    %c6_i32 = arith.constant 6 : i32
    %cst_42 = arith.constant dense<0.000000e+00> : vector<2x512xf32>
    %144 = tpu.matmul %139, %3, %cst_42 {dimension_numbers = #tpu.dot_dimension_numbers<[1], [0], [0], [1], [0, 0, 1, 1], [], []>} : vector<2x128xf32>, vector<128x512xf32>, vector<2x512xf32> -> vector<2x512xf32>
    %145 = arith.index_cast %c6_i32 : i32 to index
    %c0_43 = arith.constant 0 : index
    %c0_44 = arith.constant 0 : index
    %146 = vector.load %arg1[%145, %c0_43, %c0_44] : memref<8x2x512xf32, #tpu.memory_space<vmem>>, vector<1x2x512xf32>
    %147 = vector.shape_cast %146 : vector<1x2x512xf32> to vector<2x512xf32>
    %148 = arith.addf %147, %144 : vector<2x512xf32>
    %149 = arith.negf %148 : vector<2x512xf32>
    %150 = math.exp %149 : vector<2x512xf32>
    %cst_45 = arith.constant 1.000000e+00 : f32
    %151 = vector.broadcast %cst_45 : f32 to vector<2x512xf32>
    %152 = arith.addf %151, %150 : vector<2x512xf32>
    %153 = arith.divf %151, %152 : vector<2x512xf32>
    %154 = vector.extract_strided_slice %153 {offsets = [0, 0], sizes = [2, 128], strides = [1, 1]} : vector<2x512xf32> to vector<2x128xf32>
    %155 = vector.extract_strided_slice %153 {offsets = [0, 128], sizes = [2, 128], strides = [1, 1]} : vector<2x512xf32> to vector<2x128xf32>
    %156 = vector.extract_strided_slice %153 {offsets = [0, 256], sizes = [2, 128], strides = [1, 1]} : vector<2x512xf32> to vector<2x128xf32>
    %157 = vector.extract_strided_slice %153 {offsets = [0, 384], sizes = [2, 128], strides = [1, 1]} : vector<2x512xf32> to vector<2x128xf32>
    %158 = arith.addf %155, %137 : vector<2x128xf32>
    %159 = arith.mulf %154, %156 : vector<2x128xf32>
    %160 = arith.addf %158, %159 : vector<2x128xf32>
    %161 = math.tanh %160 : vector<2x128xf32>
    %162 = arith.addf %157, %161 : vector<2x128xf32>
    %163 = arith.index_cast %c6_i32 : i32 to index
    %c0_46 = arith.constant 0 : index
    %c0_47 = arith.constant 0 : index
    %164 = vector.load %arg3[%163, %c0_46, %c0_47] : memref<8x2x128xf32, #tpu.memory_space<vmem>>, vector<1x2x128xf32>
    %165 = vector.shape_cast %164 : vector<1x2x128xf32> to vector<2x128xf32>
    %166 = vector.shape_cast %162 : vector<2x128xf32> to vector<1x2x128xf32>
    tpu.vector_store %arg3[%163, %c0_46, %c0_47], %166 {strides = array<i32>} : memref<8x2x128xf32, #tpu.memory_space<vmem>>, vector<1x2x128xf32>,
    %c7_i32 = arith.constant 7 : i32
    %cst_48 = arith.constant dense<0.000000e+00> : vector<2x512xf32>
    %167 = tpu.matmul %162, %3, %cst_48 {dimension_numbers = #tpu.dot_dimension_numbers<[1], [0], [0], [1], [0, 0, 1, 1], [], []>} : vector<2x128xf32>, vector<128x512xf32>, vector<2x512xf32> -> vector<2x512xf32>
    %168 = arith.index_cast %c7_i32 : i32 to index
    %c0_49 = arith.constant 0 : index
    %c0_50 = arith.constant 0 : index
    %169 = vector.load %arg1[%168, %c0_49, %c0_50] : memref<8x2x512xf32, #tpu.memory_space<vmem>>, vector<1x2x512xf32>
    %170 = vector.shape_cast %169 : vector<1x2x512xf32> to vector<2x512xf32>
    %171 = arith.addf %170, %167 : vector<2x512xf32>
    %172 = arith.negf %171 : vector<2x512xf32>
    %173 = math.exp %172 : vector<2x512xf32>
    %cst_51 = arith.constant 1.000000e+00 : f32
    %174 = vector.broadcast %cst_51 : f32 to vector<2x512xf32>
    %175 = arith.addf %174, %173 : vector<2x512xf32>
    %176 = arith.divf %174, %175 : vector<2x512xf32>
    %177 = vector.extract_strided_slice %176 {offsets = [0, 0], sizes = [2, 128], strides = [1, 1]} : vector<2x512xf32> to vector<2x128xf32>
    %178 = vector.extract_strided_slice %176 {offsets = [0, 128], sizes = [2, 128], strides = [1, 1]} : vector<2x512xf32> to vector<2x128xf32>
    %179 = vector.extract_strided_slice %176 {offsets = [0, 256], sizes = [2, 128], strides = [1, 1]} : vector<2x512xf32> to vector<2x128xf32>
    %180 = vector.extract_strided_slice %176 {offsets = [0, 384], sizes = [2, 128], strides = [1, 1]} : vector<2x512xf32> to vector<2x128xf32>
    %181 = arith.addf %178, %160 : vector<2x128xf32>
    %182 = arith.mulf %177, %179 : vector<2x128xf32>
    %183 = arith.addf %181, %182 : vector<2x128xf32>
    %184 = math.tanh %183 : vector<2x128xf32>
    %185 = arith.addf %180, %184 : vector<2x128xf32>
    %186 = arith.index_cast %c7_i32 : i32 to index
    %c0_52 = arith.constant 0 : index
    %c0_53 = arith.constant 0 : index
    %187 = vector.load %arg3[%186, %c0_52, %c0_53] : memref<8x2x128xf32, #tpu.memory_space<vmem>>, vector<1x2x128xf32>
    %188 = vector.shape_cast %187 : vector<1x2x128xf32> to vector<2x128xf32>
    %189 = vector.shape_cast %185 : vector<2x128xf32> to vector<1x2x128xf32>
    tpu.vector_store %arg3[%186, %c0_52, %c0_53], %189 {strides = array<i32>} : memref<8x2x128xf32, #tpu.memory_space<vmem>>, vector<1x2x128xf32>,
    %c8_i32 = arith.constant 8 : i32
    %c0_54 = arith.constant 0 : index
    %c0_55 = arith.constant 0 : index
    %190 = vector.load %arg5[%c0_54, %c0_55] : memref<2x128xf32, #tpu.memory_space<vmem>>, vector<2x128xf32>
    tpu.vector_store %arg5[%c0_54, %c0_55], %185 {strides = array<i32>} : memref<2x128xf32, #tpu.memory_space<vmem>>, vector<2x128xf32>,
    %c0_56 = arith.constant 0 : index
    %c0_57 = arith.constant 0 : index
    %191 = vector.load %arg6[%c0_56, %c0_57] : memref<2x128xf32, #tpu.memory_space<vmem>>, vector<2x128xf32>
    tpu.vector_store %arg6[%c0_56, %c0_57], %183 {strides = array<i32>} : memref<2x128xf32, #tpu.memory_space<vmem>>, vector<2x128xf32>,
    %c0_i32_58 = arith.constant 0 : i32
    %192 = arith.cmpi eq, %arg0, %c0_i32_58 : i32
    %193 = arith.extui %192 : i1 to i32
    %c0_i32_59 = arith.constant 0 : i32
    %194 = arith.cmpi ne, %193, %c0_i32_59 : i32
    scf.if %194 {
      %c0_60 = arith.constant 0 : index
      %c0_61 = arith.constant 0 : index
      %195 = vector.load %arg4[%c0_60, %c0_61] : memref<2x128xf32, #tpu.memory_space<vmem>>, vector<2x128xf32>
      tpu.vector_store %arg4[%c0_60, %c0_61], %183 {strides = array<i32>} : memref<2x128xf32, #tpu.memory_space<vmem>>, vector<2x128xf32>,
    } else {
    }
    return
  }
  func.func @transform_0(%arg0: i32) -> (i32, i32, i32) {
    %c0_i32 = arith.constant 0 : i32
    %c0_i32_0 = arith.constant 0 : i32
    %c0_i32_1 = arith.constant 0 : i32
    return %arg0, %c0_i32, %c0_i32_0 : i32, i32, i32
  }
  func.func @transform_1(%arg0: i32) -> (i32, i32) {
    %c0_i32 = arith.constant 0 : i32
    %c0_i32_0 = arith.constant 0 : i32
    %c0_i32_1 = arith.constant 0 : i32
    return %c0_i32, %c0_i32_0 : i32, i32
  }
  func.func @transform_2(%arg0: i32) -> (i32, i32, i32) {
    %c0_i32 = arith.constant 0 : i32
    %c0_i32_0 = arith.constant 0 : i32
    %c0_i32_1 = arith.constant 0 : i32
    return %arg0, %c0_i32, %c0_i32_0 : i32, i32, i32
  }
  func.func @transform_3(%arg0: i32) -> (i32, i32) {
    %c0_i32 = arith.constant 0 : i32
    %c0_i32_0 = arith.constant 0 : i32
    %c0_i32_1 = arith.constant 0 : i32
    return %c0_i32, %c0_i32_0 : i32, i32
  }
}

module attributes {stable_mosaic.version = 11 : i64} {
  func.func @kernel(%arg0: i32, %arg1: memref<8x2x512xf32, #tpu.memory_space<vmem>>, %arg2: memref<128x128xf32, #tpu.memory_space<vmem>>, %arg3: memref<8x2x128xf32, #tpu.memory_space<vmem>>, %arg4: memref<2x128xf32, #tpu.memory_space<vmem>>, %arg5: memref<2x128xf32, #tpu.memory_space<vmem>>, %arg6: memref<2x128xf32, #tpu.memory_space<vmem>>) attributes {dimension_semantics = [#tpu.dimension_semantics<arbitrary>], iteration_bounds = array<i64: 1>, scalar_prefetch = 0 : i64, scratch_operands = 2 : i64, tpu.core_type = #tpu.core_type<tc>, window_params = [{transform_indices = @transform_0, window_bounds = array<i64: 8, 2, 512>}, {pipeline_mode = #tpu.pipeline_mode<synchronous>, transform_indices = @transform_1, window_bounds = array<i64: 128, 128>}, {transform_indices = @transform_2, window_bounds = array<i64: 8, 2, 128>}, {pipeline_mode = #tpu.pipeline_mode<synchronous>, transform_indices = @transform_3, window_bounds = array<i64: 2, 128>}]} {
    %c0_i32 = arith.constant 0 : i32
    %0 = arith.cmpi eq, %arg0, %c0_i32 : i32
    %1 = arith.extui %0 : i1 to i32
    %c0_i32_0 = arith.constant 0 : i32
    %2 = arith.cmpi ne, %1, %c0_i32_0 : i32
    scf.if %2 {
      %cst_60 = arith.constant 0.000000e+00 : f32
      %203 = vector.broadcast %cst_60 : f32 to vector<2x128xf32>
      %c0_61 = arith.constant 0 : index
      %c0_62 = arith.constant 0 : index
      %204 = vector.load %arg5[%c0_61, %c0_62] : memref<2x128xf32, #tpu.memory_space<vmem>>, vector<2x128xf32>
      tpu.vector_store %arg5[%c0_61, %c0_62], %203 {strides = array<i32>} : memref<2x128xf32, #tpu.memory_space<vmem>>, vector<2x128xf32>,
      %cst_63 = arith.constant 0.000000e+00 : f32
      %205 = vector.broadcast %cst_63 : f32 to vector<2x128xf32>
      %c0_64 = arith.constant 0 : index
      %c0_65 = arith.constant 0 : index
      %206 = vector.load %arg6[%c0_64, %c0_65] : memref<2x128xf32, #tpu.memory_space<vmem>>, vector<2x128xf32>
      tpu.vector_store %arg6[%c0_64, %c0_65], %205 {strides = array<i32>} : memref<2x128xf32, #tpu.memory_space<vmem>>, vector<2x128xf32>,
    } else {
    }
    %c0 = arith.constant 0 : index
    %c0_1 = arith.constant 0 : index
    %3 = vector.load %arg2[%c0, %c0_1] : memref<128x128xf32, #tpu.memory_space<vmem>>, vector<128x128xf32>
    %c0_2 = arith.constant 0 : index
    %c0_3 = arith.constant 0 : index
    %4 = vector.load %arg5[%c0_2, %c0_3] : memref<2x128xf32, #tpu.memory_space<vmem>>, vector<2x128xf32>
    %c0_4 = arith.constant 0 : index
    %c0_5 = arith.constant 0 : index
    %5 = vector.load %arg6[%c0_4, %c0_5] : memref<2x128xf32, #tpu.memory_space<vmem>>, vector<2x128xf32>
    %c0_i32_6 = arith.constant 0 : i32
    %cst = arith.constant dense<0.000000e+00> : vector<2x128xf32>
    %6 = tpu.matmul %4, %3, %cst {dimension_numbers = #tpu.dot_dimension_numbers<[1], [0], [0], [1], [0, 0, 1, 1], [], []>} : vector<2x128xf32>, vector<128x128xf32>, vector<2x128xf32> -> vector<2x128xf32>
    %7 = tpu.concatenate %6, %6, %6, %6 in 1 : vector<2x128xf32>, vector<2x128xf32>, vector<2x128xf32>, vector<2x128xf32> -> vector<2x512xf32>
    %8 = arith.index_cast %c0_i32_6 : i32 to index
    %c0_7 = arith.constant 0 : index
    %c0_8 = arith.constant 0 : index
    %9 = vector.load %arg1[%8, %c0_7, %c0_8] : memref<8x2x512xf32, #tpu.memory_space<vmem>>, vector<1x2x512xf32>
    %10 = vector.shape_cast %9 : vector<1x2x512xf32> to vector<2x512xf32>
    %11 = arith.addf %10, %7 : vector<2x512xf32>
    %12 = arith.negf %11 : vector<2x512xf32>
    %13 = math.exp %12 : vector<2x512xf32>
    %cst_9 = arith.constant 1.000000e+00 : f32
    %14 = vector.broadcast %cst_9 : f32 to vector<2x512xf32>
    %15 = arith.addf %14, %13 : vector<2x512xf32>
    %16 = arith.divf %14, %15 : vector<2x512xf32>
    %17 = vector.extract_strided_slice %16 {offsets = [0, 0], sizes = [2, 128], strides = [1, 1]} : vector<2x512xf32> to vector<2x128xf32>
    %18 = vector.extract_strided_slice %16 {offsets = [0, 128], sizes = [2, 128], strides = [1, 1]} : vector<2x512xf32> to vector<2x128xf32>
    %19 = vector.extract_strided_slice %16 {offsets = [0, 256], sizes = [2, 128], strides = [1, 1]} : vector<2x512xf32> to vector<2x128xf32>
    %20 = vector.extract_strided_slice %16 {offsets = [0, 384], sizes = [2, 128], strides = [1, 1]} : vector<2x512xf32> to vector<2x128xf32>
    %21 = arith.addf %18, %5 : vector<2x128xf32>
    %22 = arith.mulf %17, %19 : vector<2x128xf32>
    %23 = arith.addf %21, %22 : vector<2x128xf32>
    %24 = math.tanh %23 : vector<2x128xf32>
    %25 = arith.addf %20, %24 : vector<2x128xf32>
    %26 = arith.index_cast %c0_i32_6 : i32 to index
    %c0_10 = arith.constant 0 : index
    %c0_11 = arith.constant 0 : index
    %27 = vector.load %arg3[%26, %c0_10, %c0_11] : memref<8x2x128xf32, #tpu.memory_space<vmem>>, vector<1x2x128xf32>
    %28 = vector.shape_cast %27 : vector<1x2x128xf32> to vector<2x128xf32>
    %29 = vector.shape_cast %25 : vector<2x128xf32> to vector<1x2x128xf32>
    tpu.vector_store %arg3[%26, %c0_10, %c0_11], %29 {strides = array<i32>} : memref<8x2x128xf32, #tpu.memory_space<vmem>>, vector<1x2x128xf32>,
    %c1_i32 = arith.constant 1 : i32
    %cst_12 = arith.constant dense<0.000000e+00> : vector<2x128xf32>
    %30 = tpu.matmul %25, %3, %cst_12 {dimension_numbers = #tpu.dot_dimension_numbers<[1], [0], [0], [1], [0, 0, 1, 1], [], []>} : vector<2x128xf32>, vector<128x128xf32>, vector<2x128xf32> -> vector<2x128xf32>
    %31 = tpu.concatenate %30, %30, %30, %30 in 1 : vector<2x128xf32>, vector<2x128xf32>, vector<2x128xf32>, vector<2x128xf32> -> vector<2x512xf32>
    %32 = arith.index_cast %c1_i32 : i32 to index
    %c0_13 = arith.constant 0 : index
    %c0_14 = arith.constant 0 : index
    %33 = vector.load %arg1[%32, %c0_13, %c0_14] : memref<8x2x512xf32, #tpu.memory_space<vmem>>, vector<1x2x512xf32>
    %34 = vector.shape_cast %33 : vector<1x2x512xf32> to vector<2x512xf32>
    %35 = arith.addf %34, %31 : vector<2x512xf32>
    %36 = arith.negf %35 : vector<2x512xf32>
    %37 = math.exp %36 : vector<2x512xf32>
    %cst_15 = arith.constant 1.000000e+00 : f32
    %38 = vector.broadcast %cst_15 : f32 to vector<2x512xf32>
    %39 = arith.addf %38, %37 : vector<2x512xf32>
    %40 = arith.divf %38, %39 : vector<2x512xf32>
    %41 = vector.extract_strided_slice %40 {offsets = [0, 0], sizes = [2, 128], strides = [1, 1]} : vector<2x512xf32> to vector<2x128xf32>
    %42 = vector.extract_strided_slice %40 {offsets = [0, 128], sizes = [2, 128], strides = [1, 1]} : vector<2x512xf32> to vector<2x128xf32>
    %43 = vector.extract_strided_slice %40 {offsets = [0, 256], sizes = [2, 128], strides = [1, 1]} : vector<2x512xf32> to vector<2x128xf32>
    %44 = vector.extract_strided_slice %40 {offsets = [0, 384], sizes = [2, 128], strides = [1, 1]} : vector<2x512xf32> to vector<2x128xf32>
    %45 = arith.addf %42, %23 : vector<2x128xf32>
    %46 = arith.mulf %41, %43 : vector<2x128xf32>
    %47 = arith.addf %45, %46 : vector<2x128xf32>
    %48 = math.tanh %47 : vector<2x128xf32>
    %49 = arith.addf %44, %48 : vector<2x128xf32>
    %50 = arith.index_cast %c1_i32 : i32 to index
    %c0_16 = arith.constant 0 : index
    %c0_17 = arith.constant 0 : index
    %51 = vector.load %arg3[%50, %c0_16, %c0_17] : memref<8x2x128xf32, #tpu.memory_space<vmem>>, vector<1x2x128xf32>
    %52 = vector.shape_cast %51 : vector<1x2x128xf32> to vector<2x128xf32>
    %53 = vector.shape_cast %49 : vector<2x128xf32> to vector<1x2x128xf32>
    tpu.vector_store %arg3[%50, %c0_16, %c0_17], %53 {strides = array<i32>} : memref<8x2x128xf32, #tpu.memory_space<vmem>>, vector<1x2x128xf32>,
    %c2_i32 = arith.constant 2 : i32
    %cst_18 = arith.constant dense<0.000000e+00> : vector<2x128xf32>
    %54 = tpu.matmul %49, %3, %cst_18 {dimension_numbers = #tpu.dot_dimension_numbers<[1], [0], [0], [1], [0, 0, 1, 1], [], []>} : vector<2x128xf32>, vector<128x128xf32>, vector<2x128xf32> -> vector<2x128xf32>
    %55 = tpu.concatenate %54, %54, %54, %54 in 1 : vector<2x128xf32>, vector<2x128xf32>, vector<2x128xf32>, vector<2x128xf32> -> vector<2x512xf32>
    %56 = arith.index_cast %c2_i32 : i32 to index
    %c0_19 = arith.constant 0 : index
    %c0_20 = arith.constant 0 : index
    %57 = vector.load %arg1[%56, %c0_19, %c0_20] : memref<8x2x512xf32, #tpu.memory_space<vmem>>, vector<1x2x512xf32>
    %58 = vector.shape_cast %57 : vector<1x2x512xf32> to vector<2x512xf32>
    %59 = arith.addf %58, %55 : vector<2x512xf32>
    %60 = arith.negf %59 : vector<2x512xf32>
    %61 = math.exp %60 : vector<2x512xf32>
    %cst_21 = arith.constant 1.000000e+00 : f32
    %62 = vector.broadcast %cst_21 : f32 to vector<2x512xf32>
    %63 = arith.addf %62, %61 : vector<2x512xf32>
    %64 = arith.divf %62, %63 : vector<2x512xf32>
    %65 = vector.extract_strided_slice %64 {offsets = [0, 0], sizes = [2, 128], strides = [1, 1]} : vector<2x512xf32> to vector<2x128xf32>
    %66 = vector.extract_strided_slice %64 {offsets = [0, 128], sizes = [2, 128], strides = [1, 1]} : vector<2x512xf32> to vector<2x128xf32>
    %67 = vector.extract_strided_slice %64 {offsets = [0, 256], sizes = [2, 128], strides = [1, 1]} : vector<2x512xf32> to vector<2x128xf32>
    %68 = vector.extract_strided_slice %64 {offsets = [0, 384], sizes = [2, 128], strides = [1, 1]} : vector<2x512xf32> to vector<2x128xf32>
    %69 = arith.addf %66, %47 : vector<2x128xf32>
    %70 = arith.mulf %65, %67 : vector<2x128xf32>
    %71 = arith.addf %69, %70 : vector<2x128xf32>
    %72 = math.tanh %71 : vector<2x128xf32>
    %73 = arith.addf %68, %72 : vector<2x128xf32>
    %74 = arith.index_cast %c2_i32 : i32 to index
    %c0_22 = arith.constant 0 : index
    %c0_23 = arith.constant 0 : index
    %75 = vector.load %arg3[%74, %c0_22, %c0_23] : memref<8x2x128xf32, #tpu.memory_space<vmem>>, vector<1x2x128xf32>
    %76 = vector.shape_cast %75 : vector<1x2x128xf32> to vector<2x128xf32>
    %77 = vector.shape_cast %73 : vector<2x128xf32> to vector<1x2x128xf32>
    tpu.vector_store %arg3[%74, %c0_22, %c0_23], %77 {strides = array<i32>} : memref<8x2x128xf32, #tpu.memory_space<vmem>>, vector<1x2x128xf32>,
    %c3_i32 = arith.constant 3 : i32
    %cst_24 = arith.constant dense<0.000000e+00> : vector<2x128xf32>
    %78 = tpu.matmul %73, %3, %cst_24 {dimension_numbers = #tpu.dot_dimension_numbers<[1], [0], [0], [1], [0, 0, 1, 1], [], []>} : vector<2x128xf32>, vector<128x128xf32>, vector<2x128xf32> -> vector<2x128xf32>
    %79 = tpu.concatenate %78, %78, %78, %78 in 1 : vector<2x128xf32>, vector<2x128xf32>, vector<2x128xf32>, vector<2x128xf32> -> vector<2x512xf32>
    %80 = arith.index_cast %c3_i32 : i32 to index
    %c0_25 = arith.constant 0 : index
    %c0_26 = arith.constant 0 : index
    %81 = vector.load %arg1[%80, %c0_25, %c0_26] : memref<8x2x512xf32, #tpu.memory_space<vmem>>, vector<1x2x512xf32>
    %82 = vector.shape_cast %81 : vector<1x2x512xf32> to vector<2x512xf32>
    %83 = arith.addf %82, %79 : vector<2x512xf32>
    %84 = arith.negf %83 : vector<2x512xf32>
    %85 = math.exp %84 : vector<2x512xf32>
    %cst_27 = arith.constant 1.000000e+00 : f32
    %86 = vector.broadcast %cst_27 : f32 to vector<2x512xf32>
    %87 = arith.addf %86, %85 : vector<2x512xf32>
    %88 = arith.divf %86, %87 : vector<2x512xf32>
    %89 = vector.extract_strided_slice %88 {offsets = [0, 0], sizes = [2, 128], strides = [1, 1]} : vector<2x512xf32> to vector<2x128xf32>
    %90 = vector.extract_strided_slice %88 {offsets = [0, 128], sizes = [2, 128], strides = [1, 1]} : vector<2x512xf32> to vector<2x128xf32>
    %91 = vector.extract_strided_slice %88 {offsets = [0, 256], sizes = [2, 128], strides = [1, 1]} : vector<2x512xf32> to vector<2x128xf32>
    %92 = vector.extract_strided_slice %88 {offsets = [0, 384], sizes = [2, 128], strides = [1, 1]} : vector<2x512xf32> to vector<2x128xf32>
    %93 = arith.addf %90, %71 : vector<2x128xf32>
    %94 = arith.mulf %89, %91 : vector<2x128xf32>
    %95 = arith.addf %93, %94 : vector<2x128xf32>
    %96 = math.tanh %95 : vector<2x128xf32>
    %97 = arith.addf %92, %96 : vector<2x128xf32>
    %98 = arith.index_cast %c3_i32 : i32 to index
    %c0_28 = arith.constant 0 : index
    %c0_29 = arith.constant 0 : index
    %99 = vector.load %arg3[%98, %c0_28, %c0_29] : memref<8x2x128xf32, #tpu.memory_space<vmem>>, vector<1x2x128xf32>
    %100 = vector.shape_cast %99 : vector<1x2x128xf32> to vector<2x128xf32>
    %101 = vector.shape_cast %97 : vector<2x128xf32> to vector<1x2x128xf32>
    tpu.vector_store %arg3[%98, %c0_28, %c0_29], %101 {strides = array<i32>} : memref<8x2x128xf32, #tpu.memory_space<vmem>>, vector<1x2x128xf32>,
    %c4_i32 = arith.constant 4 : i32
    %cst_30 = arith.constant dense<0.000000e+00> : vector<2x128xf32>
    %102 = tpu.matmul %97, %3, %cst_30 {dimension_numbers = #tpu.dot_dimension_numbers<[1], [0], [0], [1], [0, 0, 1, 1], [], []>} : vector<2x128xf32>, vector<128x128xf32>, vector<2x128xf32> -> vector<2x128xf32>
    %103 = tpu.concatenate %102, %102, %102, %102 in 1 : vector<2x128xf32>, vector<2x128xf32>, vector<2x128xf32>, vector<2x128xf32> -> vector<2x512xf32>
    %104 = arith.index_cast %c4_i32 : i32 to index
    %c0_31 = arith.constant 0 : index
    %c0_32 = arith.constant 0 : index
    %105 = vector.load %arg1[%104, %c0_31, %c0_32] : memref<8x2x512xf32, #tpu.memory_space<vmem>>, vector<1x2x512xf32>
    %106 = vector.shape_cast %105 : vector<1x2x512xf32> to vector<2x512xf32>
    %107 = arith.addf %106, %103 : vector<2x512xf32>
    %108 = arith.negf %107 : vector<2x512xf32>
    %109 = math.exp %108 : vector<2x512xf32>
    %cst_33 = arith.constant 1.000000e+00 : f32
    %110 = vector.broadcast %cst_33 : f32 to vector<2x512xf32>
    %111 = arith.addf %110, %109 : vector<2x512xf32>
    %112 = arith.divf %110, %111 : vector<2x512xf32>
    %113 = vector.extract_strided_slice %112 {offsets = [0, 0], sizes = [2, 128], strides = [1, 1]} : vector<2x512xf32> to vector<2x128xf32>
    %114 = vector.extract_strided_slice %112 {offsets = [0, 128], sizes = [2, 128], strides = [1, 1]} : vector<2x512xf32> to vector<2x128xf32>
    %115 = vector.extract_strided_slice %112 {offsets = [0, 256], sizes = [2, 128], strides = [1, 1]} : vector<2x512xf32> to vector<2x128xf32>
    %116 = vector.extract_strided_slice %112 {offsets = [0, 384], sizes = [2, 128], strides = [1, 1]} : vector<2x512xf32> to vector<2x128xf32>
    %117 = arith.addf %114, %95 : vector<2x128xf32>
    %118 = arith.mulf %113, %115 : vector<2x128xf32>
    %119 = arith.addf %117, %118 : vector<2x128xf32>
    %120 = math.tanh %119 : vector<2x128xf32>
    %121 = arith.addf %116, %120 : vector<2x128xf32>
    %122 = arith.index_cast %c4_i32 : i32 to index
    %c0_34 = arith.constant 0 : index
    %c0_35 = arith.constant 0 : index
    %123 = vector.load %arg3[%122, %c0_34, %c0_35] : memref<8x2x128xf32, #tpu.memory_space<vmem>>, vector<1x2x128xf32>
    %124 = vector.shape_cast %123 : vector<1x2x128xf32> to vector<2x128xf32>
    %125 = vector.shape_cast %121 : vector<2x128xf32> to vector<1x2x128xf32>
    tpu.vector_store %arg3[%122, %c0_34, %c0_35], %125 {strides = array<i32>} : memref<8x2x128xf32, #tpu.memory_space<vmem>>, vector<1x2x128xf32>,
    %c5_i32 = arith.constant 5 : i32
    %cst_36 = arith.constant dense<0.000000e+00> : vector<2x128xf32>
    %126 = tpu.matmul %121, %3, %cst_36 {dimension_numbers = #tpu.dot_dimension_numbers<[1], [0], [0], [1], [0, 0, 1, 1], [], []>} : vector<2x128xf32>, vector<128x128xf32>, vector<2x128xf32> -> vector<2x128xf32>
    %127 = tpu.concatenate %126, %126, %126, %126 in 1 : vector<2x128xf32>, vector<2x128xf32>, vector<2x128xf32>, vector<2x128xf32> -> vector<2x512xf32>
    %128 = arith.index_cast %c5_i32 : i32 to index
    %c0_37 = arith.constant 0 : index
    %c0_38 = arith.constant 0 : index
    %129 = vector.load %arg1[%128, %c0_37, %c0_38] : memref<8x2x512xf32, #tpu.memory_space<vmem>>, vector<1x2x512xf32>
    %130 = vector.shape_cast %129 : vector<1x2x512xf32> to vector<2x512xf32>
    %131 = arith.addf %130, %127 : vector<2x512xf32>
    %132 = arith.negf %131 : vector<2x512xf32>
    %133 = math.exp %132 : vector<2x512xf32>
    %cst_39 = arith.constant 1.000000e+00 : f32
    %134 = vector.broadcast %cst_39 : f32 to vector<2x512xf32>
    %135 = arith.addf %134, %133 : vector<2x512xf32>
    %136 = arith.divf %134, %135 : vector<2x512xf32>
    %137 = vector.extract_strided_slice %136 {offsets = [0, 0], sizes = [2, 128], strides = [1, 1]} : vector<2x512xf32> to vector<2x128xf32>
    %138 = vector.extract_strided_slice %136 {offsets = [0, 128], sizes = [2, 128], strides = [1, 1]} : vector<2x512xf32> to vector<2x128xf32>
    %139 = vector.extract_strided_slice %136 {offsets = [0, 256], sizes = [2, 128], strides = [1, 1]} : vector<2x512xf32> to vector<2x128xf32>
    %140 = vector.extract_strided_slice %136 {offsets = [0, 384], sizes = [2, 128], strides = [1, 1]} : vector<2x512xf32> to vector<2x128xf32>
    %141 = arith.addf %138, %119 : vector<2x128xf32>
    %142 = arith.mulf %137, %139 : vector<2x128xf32>
    %143 = arith.addf %141, %142 : vector<2x128xf32>
    %144 = math.tanh %143 : vector<2x128xf32>
    %145 = arith.addf %140, %144 : vector<2x128xf32>
    %146 = arith.index_cast %c5_i32 : i32 to index
    %c0_40 = arith.constant 0 : index
    %c0_41 = arith.constant 0 : index
    %147 = vector.load %arg3[%146, %c0_40, %c0_41] : memref<8x2x128xf32, #tpu.memory_space<vmem>>, vector<1x2x128xf32>
    %148 = vector.shape_cast %147 : vector<1x2x128xf32> to vector<2x128xf32>
    %149 = vector.shape_cast %145 : vector<2x128xf32> to vector<1x2x128xf32>
    tpu.vector_store %arg3[%146, %c0_40, %c0_41], %149 {strides = array<i32>} : memref<8x2x128xf32, #tpu.memory_space<vmem>>, vector<1x2x128xf32>,
    %c6_i32 = arith.constant 6 : i32
    %cst_42 = arith.constant dense<0.000000e+00> : vector<2x128xf32>
    %150 = tpu.matmul %145, %3, %cst_42 {dimension_numbers = #tpu.dot_dimension_numbers<[1], [0], [0], [1], [0, 0, 1, 1], [], []>} : vector<2x128xf32>, vector<128x128xf32>, vector<2x128xf32> -> vector<2x128xf32>
    %151 = tpu.concatenate %150, %150, %150, %150 in 1 : vector<2x128xf32>, vector<2x128xf32>, vector<2x128xf32>, vector<2x128xf32> -> vector<2x512xf32>
    %152 = arith.index_cast %c6_i32 : i32 to index
    %c0_43 = arith.constant 0 : index
    %c0_44 = arith.constant 0 : index
    %153 = vector.load %arg1[%152, %c0_43, %c0_44] : memref<8x2x512xf32, #tpu.memory_space<vmem>>, vector<1x2x512xf32>
    %154 = vector.shape_cast %153 : vector<1x2x512xf32> to vector<2x512xf32>
    %155 = arith.addf %154, %151 : vector<2x512xf32>
    %156 = arith.negf %155 : vector<2x512xf32>
    %157 = math.exp %156 : vector<2x512xf32>
    %cst_45 = arith.constant 1.000000e+00 : f32
    %158 = vector.broadcast %cst_45 : f32 to vector<2x512xf32>
    %159 = arith.addf %158, %157 : vector<2x512xf32>
    %160 = arith.divf %158, %159 : vector<2x512xf32>
    %161 = vector.extract_strided_slice %160 {offsets = [0, 0], sizes = [2, 128], strides = [1, 1]} : vector<2x512xf32> to vector<2x128xf32>
    %162 = vector.extract_strided_slice %160 {offsets = [0, 128], sizes = [2, 128], strides = [1, 1]} : vector<2x512xf32> to vector<2x128xf32>
    %163 = vector.extract_strided_slice %160 {offsets = [0, 256], sizes = [2, 128], strides = [1, 1]} : vector<2x512xf32> to vector<2x128xf32>
    %164 = vector.extract_strided_slice %160 {offsets = [0, 384], sizes = [2, 128], strides = [1, 1]} : vector<2x512xf32> to vector<2x128xf32>
    %165 = arith.addf %162, %143 : vector<2x128xf32>
    %166 = arith.mulf %161, %163 : vector<2x128xf32>
    %167 = arith.addf %165, %166 : vector<2x128xf32>
    %168 = math.tanh %167 : vector<2x128xf32>
    %169 = arith.addf %164, %168 : vector<2x128xf32>
    %170 = arith.index_cast %c6_i32 : i32 to index
    %c0_46 = arith.constant 0 : index
    %c0_47 = arith.constant 0 : index
    %171 = vector.load %arg3[%170, %c0_46, %c0_47] : memref<8x2x128xf32, #tpu.memory_space<vmem>>, vector<1x2x128xf32>
    %172 = vector.shape_cast %171 : vector<1x2x128xf32> to vector<2x128xf32>
    %173 = vector.shape_cast %169 : vector<2x128xf32> to vector<1x2x128xf32>
    tpu.vector_store %arg3[%170, %c0_46, %c0_47], %173 {strides = array<i32>} : memref<8x2x128xf32, #tpu.memory_space<vmem>>, vector<1x2x128xf32>,
    %c7_i32 = arith.constant 7 : i32
    %cst_48 = arith.constant dense<0.000000e+00> : vector<2x128xf32>
    %174 = tpu.matmul %169, %3, %cst_48 {dimension_numbers = #tpu.dot_dimension_numbers<[1], [0], [0], [1], [0, 0, 1, 1], [], []>} : vector<2x128xf32>, vector<128x128xf32>, vector<2x128xf32> -> vector<2x128xf32>
    %175 = tpu.concatenate %174, %174, %174, %174 in 1 : vector<2x128xf32>, vector<2x128xf32>, vector<2x128xf32>, vector<2x128xf32> -> vector<2x512xf32>
    %176 = arith.index_cast %c7_i32 : i32 to index
    %c0_49 = arith.constant 0 : index
    %c0_50 = arith.constant 0 : index
    %177 = vector.load %arg1[%176, %c0_49, %c0_50] : memref<8x2x512xf32, #tpu.memory_space<vmem>>, vector<1x2x512xf32>
    %178 = vector.shape_cast %177 : vector<1x2x512xf32> to vector<2x512xf32>
    %179 = arith.addf %178, %175 : vector<2x512xf32>
    %180 = arith.negf %179 : vector<2x512xf32>
    %181 = math.exp %180 : vector<2x512xf32>
    %cst_51 = arith.constant 1.000000e+00 : f32
    %182 = vector.broadcast %cst_51 : f32 to vector<2x512xf32>
    %183 = arith.addf %182, %181 : vector<2x512xf32>
    %184 = arith.divf %182, %183 : vector<2x512xf32>
    %185 = vector.extract_strided_slice %184 {offsets = [0, 0], sizes = [2, 128], strides = [1, 1]} : vector<2x512xf32> to vector<2x128xf32>
    %186 = vector.extract_strided_slice %184 {offsets = [0, 128], sizes = [2, 128], strides = [1, 1]} : vector<2x512xf32> to vector<2x128xf32>
    %187 = vector.extract_strided_slice %184 {offsets = [0, 256], sizes = [2, 128], strides = [1, 1]} : vector<2x512xf32> to vector<2x128xf32>
    %188 = vector.extract_strided_slice %184 {offsets = [0, 384], sizes = [2, 128], strides = [1, 1]} : vector<2x512xf32> to vector<2x128xf32>
    %189 = arith.addf %186, %167 : vector<2x128xf32>
    %190 = arith.mulf %185, %187 : vector<2x128xf32>
    %191 = arith.addf %189, %190 : vector<2x128xf32>
    %192 = math.tanh %191 : vector<2x128xf32>
    %193 = arith.addf %188, %192 : vector<2x128xf32>
    %194 = arith.index_cast %c7_i32 : i32 to index
    %c0_52 = arith.constant 0 : index
    %c0_53 = arith.constant 0 : index
    %195 = vector.load %arg3[%194, %c0_52, %c0_53] : memref<8x2x128xf32, #tpu.memory_space<vmem>>, vector<1x2x128xf32>
    %196 = vector.shape_cast %195 : vector<1x2x128xf32> to vector<2x128xf32>
    %197 = vector.shape_cast %193 : vector<2x128xf32> to vector<1x2x128xf32>
    tpu.vector_store %arg3[%194, %c0_52, %c0_53], %197 {strides = array<i32>} : memref<8x2x128xf32, #tpu.memory_space<vmem>>, vector<1x2x128xf32>,
    %c8_i32 = arith.constant 8 : i32
    %c0_54 = arith.constant 0 : index
    %c0_55 = arith.constant 0 : index
    %198 = vector.load %arg5[%c0_54, %c0_55] : memref<2x128xf32, #tpu.memory_space<vmem>>, vector<2x128xf32>
    tpu.vector_store %arg5[%c0_54, %c0_55], %193 {strides = array<i32>} : memref<2x128xf32, #tpu.memory_space<vmem>>, vector<2x128xf32>,
    %c0_56 = arith.constant 0 : index
    %c0_57 = arith.constant 0 : index
    %199 = vector.load %arg6[%c0_56, %c0_57] : memref<2x128xf32, #tpu.memory_space<vmem>>, vector<2x128xf32>
    tpu.vector_store %arg6[%c0_56, %c0_57], %191 {strides = array<i32>} : memref<2x128xf32, #tpu.memory_space<vmem>>, vector<2x128xf32>,
    %c0_i32_58 = arith.constant 0 : i32
    %200 = arith.cmpi eq, %arg0, %c0_i32_58 : i32
    %201 = arith.extui %200 : i1 to i32
    %c0_i32_59 = arith.constant 0 : i32
    %202 = arith.cmpi ne, %201, %c0_i32_59 : i32
    scf.if %202 {
      %c0_60 = arith.constant 0 : index
      %c0_61 = arith.constant 0 : index
      %203 = vector.load %arg4[%c0_60, %c0_61] : memref<2x128xf32, #tpu.memory_space<vmem>>, vector<2x128xf32>
      tpu.vector_store %arg4[%c0_60, %c0_61], %191 {strides = array<i32>} : memref<2x128xf32, #tpu.memory_space<vmem>>, vector<2x128xf32>,
    } else {
    }
    return
  }
  func.func @transform_0(%arg0: i32) -> (i32, i32, i32) {
    %c0_i32 = arith.constant 0 : i32
    %c0_i32_0 = arith.constant 0 : i32
    %c0_i32_1 = arith.constant 0 : i32
    return %arg0, %c0_i32, %c0_i32_0 : i32, i32, i32
  }
  func.func @transform_1(%arg0: i32) -> (i32, i32) {
    %c0_i32 = arith.constant 0 : i32
    %c0_i32_0 = arith.constant 0 : i32
    %c0_i32_1 = arith.constant 0 : i32
    return %c0_i32, %c0_i32_0 : i32, i32
  }
  func.func @transform_2(%arg0: i32) -> (i32, i32, i32) {
    %c0_i32 = arith.constant 0 : i32
    %c0_i32_0 = arith.constant 0 : i32
    %c0_i32_1 = arith.constant 0 : i32
    return %arg0, %c0_i32, %c0_i32_0 : i32, i32, i32
  }
  func.func @transform_3(%arg0: i32) -> (i32, i32) {
    %c0_i32 = arith.constant 0 : i32
    %c0_i32_0 = arith.constant 0 : i32
    %c0_i32_1 = arith.constant 0 : i32
    return %c0_i32, %c0_i32_0 : i32, i32
  }
}

</mosaic_0001>

<bundles_post_ra>
// kernel: dlstm_forward.8
= control target key start
LH: loop header
LB: loop body
LE: loop exit
PB: predicated region body
PF: predicated region fallthrough
CT: control target
= control target key end

     0   :  { %10 = vsyncpa [#allocation3], 0  ;;  %s940_s0 = inlined_call_operand.hbm [shape: bf16[16,16], index: 0, kind: input, shape index: {}]   ;;  %s941_s1 = inlined_call_operand.hbm [shape: bf16[16,128], index: 1, kind: input, shape index: {}]   ;;  %s942_s2 = inlined_call_operand.hbm [shape: bf16[16,512], index: 2, kind: input, shape index: {}]   ;;  %s943_s3 = inlined_call_operand.hbm [shape: bf16[128,512], index: 3, kind: input, shape index: {}]   ;;  %s944_s4 = inlined_call_operand.hbm [shape: f32[1,512], index: 4, kind: input, shape index: {}]   ;;  %s945_s5 = inlined_call_operand.hbm [shape: f32[16,512], index: 5, kind: output, shape index: {}]  }
   0x1   :  { %11 = vsyncpa [#allocation6], 0 }
   0x2   :  { %12 = vsyncpa [#allocation9], 0 }
   0x3   :  { %13 = vsyncpa [#allocation4], 0  ;;  %s809_s18 = smov [#allocation5]   ;;  %s669_s22 = scalar_lea.hbm %s941_s1, 128 }
   0x4   :  { %s31_s19 = sshll.u32 %s809_s18, 4  ;;  %p670_p0 = scmp.ne.s32.totalorder %s941_s1, %s669_s22  ;;  %s32_s19 = int_to_ptr.vmem [resolvable:$true] %s31_s19 }
   0x5   :  { %p673_p1 = scmp.lt.u32.totalorder %s669_s22, %s941_s1 }
   0x7   :  { %p675_p2 = pnand %p673_p1, %p670_p0 }
   0x9   :  { %678 = shalt.err (!%p675_p2)
}
   0xa   :  { %s679_s27 = scalar_lea.vmem %s32_s19, 128  ;;  %p684_p4 = scmp.lt.s32.totalorder %s32_s19, %s32_s19 }
   0xb   :  { %p680_p3 = scmp.ne.s32.totalorder %s32_s19, %s679_s27  ;;  %p685_p5 = scmp.lt.s32.totalorder %s679_s27, %s679_s27 }
   0xd   :  { %p686_p6 = por %p685_p5, %p684_p4 }
   0xf   :  { %p687_p7 = pnand %p686_p6, %p680_p3 }
  0x11   :  { %690 = shalt.err (!%p687_p7)
}
  0x12   :  { %s810_s28 = smov 64   ;;  %s811_s29 = smov 4  }
  0x13   :  { %37 = dma.hbm_to_vmem [thread:$0]  %s941_s1, 128, %s32_s19, [#allocation6], %s810_s28, %s810_s28, %s811_s29  }
  0x14   :  { %s812_s7 = smov [#allocation8]   ;;  %s813_s9 = smov [#allocation2]  }
  0x15   :  { %s55_s8 = sshll.u32 %s812_s7, 4  ;;  %s19_s10 = sshll.u32 %s813_s9, 4  ;;  %s56_s8 = int_to_ptr.vmem [resolvable:$true] %s55_s8  ;;  %s20_s10 = int_to_ptr.vmem [resolvable:$true] %s19_s10 }
  0x16   :  { %s691_s13 = scalar_lea.hbm %s943_s3, 4096 }
  0x17   :  { %p692_p8 = scmp.ne.s32.totalorder %s943_s3, %s691_s13  ;;  %p695_p9 = scmp.lt.u32.totalorder %s691_s13, %s943_s3 }
  0x19   :  { %p697_p10 = pnand %p695_p9, %p692_p8 }
  0x1b   :  { %700 = shalt.err (!%p697_p10)
}
  0x1c   :  { %s701_s1 = scalar_lea.vmem %s56_s8, 4096  ;;  %p706_p12 = scmp.lt.s32.totalorder %s56_s8, %s56_s8 }
  0x1d   :  { %p702_p11 = scmp.ne.s32.totalorder %s56_s8, %s701_s1  ;;  %p707_p13 = scmp.lt.s32.totalorder %s701_s1, %s701_s1 }
  0x1f   :  { %p708_p0 = por %p707_p13, %p706_p12 }
  0x21   :  { %p709_p1 = pnand %p708_p0, %p702_p11 }
  0x23   :  { %712 = shalt.err (!%p709_p1)
}
  0x24   :  { %s814_s18 = smov 256   ;;  %s815_s19 = smov 16  }
  0x25   :  { %61 = dma.hbm_to_vmem [thread:$0]  %s943_s3, 4096, %s56_s8, [#allocation9], %s814_s18, %s814_s18, %s815_s19  }
  0x26   :  { %s713_s24 = scalar_lea.hbm %s940_s0, 128 }
  0x27   :  { %p714_p2 = scmp.ne.s32.totalorder %s940_s0, %s713_s24  ;;  %p717_p3 = scmp.lt.u32.totalorder %s713_s24, %s940_s0 }
  0x29   :  { %p719_p4 = pnand %p717_p3, %p714_p2 }
  0x2b   :  { %722 = shalt.err (!%p719_p4)
}
  0x2c   :  { %s723_s6 = scalar_lea.vmem %s20_s10, 128  ;;  %p728_p6 = scmp.lt.s32.totalorder %s20_s10, %s20_s10 }
  0x2d   :  { %p724_p5 = scmp.ne.s32.totalorder %s20_s10, %s723_s6  ;;  %p729_p7 = scmp.lt.s32.totalorder %s723_s6, %s723_s6 }
  0x2f   :  { %p730_p8 = por %p729_p7, %p728_p6 }
  0x31   :  { %p731_p9 = pnand %p730_p8, %p724_p5 }
  0x33   :  { %734 = shalt.err (!%p731_p9)
}
  0x34   :  { %25 = dma.hbm_to_vmem [thread:$0]  %s940_s0, 128, %s20_s10, [#allocation3], %s810_s28, %s810_s28, %s811_s29  }
  0x35   :  { %s816_s8 = smov [#allocation7]   ;;  %s817_s11 = smov [#allocation10]  }
  0x36   :  { %s43_s9 = sshll.u32 %s816_s8, 4  ;;  %s68_s12 = sshll.u32 %s817_s11, 4  ;;  %s44_s9 = int_to_ptr.vmem [resolvable:$true] %s43_s9  ;;  %s69_s12 = int_to_ptr.vmem [resolvable:$true] %s68_s12 }
  0x37   :  { %s735_s15 = scalar_lea.hbm %s942_s2, 512 }
  0x38   :  { %p736_p10 = scmp.ne.s32.totalorder %s942_s2, %s735_s15  ;;  %p739_p11 = scmp.lt.u32.totalorder %s735_s15, %s942_s2 }
  0x3a   :  { %p741_p12 = pnand %p739_p11, %p736_p10 }
  0x3c   :  { %744 = shalt.err (!%p741_p12)
}
  0x3d   :  { %s745_s0 = scalar_lea.vmem %s44_s9, 512  ;;  %p750_p0 = scmp.lt.s32.totalorder %s44_s9, %s44_s9 }
  0x3e   :  { %p746_p13 = scmp.ne.s32.totalorder %s44_s9, %s745_s0  ;;  %p751_p1 = scmp.lt.s32.totalorder %s745_s0, %s745_s0 }
  0x40   :  { %p752_p2 = por %p751_p1, %p750_p0 }
  0x42   :  { %p753_p3 = pnand %p752_p2, %p746_p13 }
  0x44   :  { %756 = shalt.err (!%p753_p3)
}
  0x45   :  { %49 = dma.hbm_to_vmem [thread:$0]  %s942_s2, 512, %s44_s9, [#allocation6], %s814_s18, %s814_s18, %s815_s19  }
  0x46   :  { %s757_s22 = scalar_lea.hbm %s944_s4, 64 }
  0x47   :  { %p758_p4 = scmp.ne.s32.totalorder %s944_s4, %s757_s22  ;;  %p761_p5 = scmp.lt.u32.totalorder %s757_s22, %s944_s4 }
  0x49   :  { %p763_p6 = pnand %p761_p5, %p758_p4 }
  0x4b   :  { %766 = shalt.err (!%p763_p6)
}
  0x4c   :  { %s767_s27 = scalar_lea.vmem %s69_s12, 64  ;;  %p772_p8 = scmp.lt.s32.totalorder %s69_s12, %s69_s12 }
  0x4d   :  { %p768_p7 = scmp.ne.s32.totalorder %s69_s12, %s767_s27  ;;  %p773_p9 = scmp.lt.s32.totalorder %s767_s27, %s767_s27 }
  0x4f   :  { %p774_p10 = por %p773_p9, %p772_p8 }
  0x51   :  { %p775_p11 = pnand %p774_p10, %p768_p7 }
  0x53   :  { %778 = shalt.err (!%p775_p11)
}
  0x54   :  { %71 = dma.hbm_to_vmem [thread:$0]  %s944_s4, 64, %s69_s12, [#allocation9]  }
  0x55   :  { %801 = dma.done.wait [#allocation3], 128  }
  0x56   :  { %802 = vsyncadd [#allocation3], 4294967168 }
  0x57   :  { %803 = dma.done.wait [#allocation6], 640  }
  0x58   :  { %804 = vsyncadd [#allocation6], 4294966656 }
  0x59   :  { %805 = dma.done.wait [#allocation9], 4160  }
  0x5a   :  { %806 = vsyncadd [#allocation9], 4294963136  ;;  %v818_v0 = vmov 0   ;;  %v613_v1 = vld [vmem:[#allocation8 + $0x4] ss:$16 sps:$4 sm:$0xff]   ;;  %v661_v35 = vld [vmem:[#allocation5] sm:$0xff]   ;;  %v497_v39 = vlaneseq }
  0x5b   :  { %326 = vmatprep.mubr.bf16.mxu0 %v818_v0  ;;  %369 = vmatprep.mubr.bf16.mxu1 %v818_v0  ;;  %v615_v2 = vld [vmem:[#allocation8 + $0xc] ss:$16 sps:$4 sm:$0xff]   ;;  %v617_v3 = vld [vmem:[#allocation8] ss:$16 sps:$4 sm:$0xff]   ;;  %v618_v4 = vld [vmem:[#allocation8 + $0x8] ss:$16 sps:$4 sm:$0xff]  }
  0x5c   :  { %294 = vmatprep.subr.bf16.mxu0 %v613_v1  ;;  %337 = vmatprep.subr.bf16.mxu1 %v615_v2  ;;  %v619_v5 = vld [vmem:[#allocation8 + $0x24] ss:$16 sps:$4 sm:$0xff]   ;;  %v621_v6 = vld [vmem:[#allocation8 + $0x2c] ss:$16 sps:$4 sm:$0xff]   ;;  %v623_v7 = vld [vmem:[#allocation8 + $0x20] ss:$16 sps:$4 sm:$0xff]  }
  0x5d   :  { %295 = vmatpush1.bf16.msra.mxu0 %v617_v3  ;;  %338 = vmatpush1.bf16.msra.mxu1 %v618_v4  ;;  %v624_v8 = vld [vmem:[#allocation8 + $0x28] ss:$16 sps:$4 sm:$0xff]   ;;  %v625_v9 = vld [vmem:[#allocation8 + $0x44] ss:$16 sps:$4 sm:$0xff]   ;;  %v627_v10 = vld [vmem:[#allocation8 + $0x4c] ss:$16 sps:$4 sm:$0xff]  }
  0x5e   :  { %296 = vmatprep.subr.bf16.mxu0 %v619_v5  ;;  %339 = vmatprep.subr.bf16.mxu1 %v621_v6  ;;  %v629_v11 = vld [vmem:[#allocation8 + $0x40] ss:$16 sps:$4 sm:$0xff]   ;;  %v630_v12 = vld [vmem:[#allocation8 + $0x48] ss:$16 sps:$4 sm:$0xff]   ;;  %v631_v13 = vld [vmem:[#allocation8 + $0x64] ss:$16 sps:$4 sm:$0xff]  }
  0x5f   :  { %v633_v14 = vld [vmem:[#allocation8 + $0x6c] ss:$16 sps:$4 sm:$0xff]   ;;  %v635_v15 = vld [vmem:[#allocation8 + $0x60] ss:$16 sps:$4 sm:$0xff]   ;;  %v636_v16 = vld [vmem:[#allocation8 + $0x68] ss:$16 sps:$4 sm:$0xff]  }
  0x60   :  { %v637_v17 = vld [vmem:[#allocation8 + $0x84] ss:$16 sps:$4 sm:$0xff]   ;;  %v639_v18 = vld [vmem:[#allocation8 + $0x8c] ss:$16 sps:$4 sm:$0xff]   ;;  %v641_v19 = vld [vmem:[#allocation8 + $0x80] ss:$16 sps:$4 sm:$0xff]  }
  0x61   :  { %297 = vmatpush1.bf16.msra.mxu0 %v623_v7  ;;  %340 = vmatpush1.bf16.msra.mxu1 %v624_v8  ;;  %v642_v20 = vld [vmem:[#allocation8 + $0x88] ss:$16 sps:$4 sm:$0xff]   ;;  %v643_v21 = vld [vmem:[#allocation8 + $0xa4] ss:$16 sps:$4 sm:$0xff]   ;;  %v645_v22 = vld [vmem:[#allocation8 + $0xac] ss:$16 sps:$4 sm:$0xff]  }
  0x62   :  { %298 = vmatprep.subr.bf16.mxu0 %v625_v9  ;;  %341 = vmatprep.subr.bf16.mxu1 %v627_v10  ;;  %v647_v23 = vld [vmem:[#allocation8 + $0xa0] ss:$16 sps:$4 sm:$0xff]   ;;  %v648_v24 = vld [vmem:[#allocation8 + $0xa8] ss:$16 sps:$4 sm:$0xff]   ;;  %v649_v25 = vld [vmem:[#allocation8 + $0xc4] ss:$16 sps:$4 sm:$0xff]  }
  0x63   :  { %v651_v26 = vld [vmem:[#allocation8 + $0xcc] ss:$16 sps:$4 sm:$0xff]   ;;  %v653_v27 = vld [vmem:[#allocation8 + $0xc0] ss:$16 sps:$4 sm:$0xff]   ;;  %v654_v28 = vld [vmem:[#allocation8 + $0xc8] ss:$16 sps:$4 sm:$0xff]  }
  0x64   :  { %v655_v29 = vld [vmem:[#allocation8 + $0xe4] ss:$16 sps:$4 sm:$0xff]   ;;  %v657_v30 = vld [vmem:[#allocation8 + $0xec] ss:$16 sps:$4 sm:$0xff]   ;;  %v659_v31 = vld [vmem:[#allocation8 + $0xe0] ss:$16 sps:$4 sm:$0xff]  }
  0x65   :  { %299 = vmatpush1.bf16.msra.mxu0 %v629_v11  ;;  %342 = vmatpush1.bf16.msra.mxu1 %v630_v12  ;;  %v660_v32 = vld [vmem:[#allocation8 + $0xe8] ss:$16 sps:$4 sm:$0xff]   ;;  %v664_v33 = vld [vmem:[#allocation7 + $0x4] ss:$16 sps:$4 sm:$0xff]   ;;  %v667_v34 = vld [vmem:[#allocation7 + $0xc] ss:$16 sps:$4 sm:$0xff]  }
  0x66   :  { %300 = vmatprep.subr.bf16.mxu0 %v631_v13  ;;  %343 = vmatprep.subr.bf16.mxu1 %v633_v14  ;;  %v662_v36 = vld [vmem:[#allocation7] ss:$16 sps:$4 sm:$0xff]   ;;  %v665_v37 = vld [vmem:[#allocation7 + $0x8] ss:$16 sps:$4 sm:$0xff]   ;;  %vm405_vm0 = vcmask 130048   ;;  %v498_v40 = vshrl.u32 %v497_v39, 7 }
  0x67   :  { %v668_v38 = vld [vmem:[#allocation2] sm:$0xff]   ;;  %v495_v43 = vld [vmem:[#allocation10] sm:$0xf]  ;;  %s819_s4 = smov [#allocation11]  }
  0x68   :  { %v499_v41 = vsub.s32 0, %v498_v40  ;;  %v507_v42 = vsub.s32 2, %v498_v40  ;;  %v503_v44 = vsub.s32 1, %v498_v40  ;;  %v511_v45 = vsub.s32 3, %v498_v40  ;;  %s538_s19 = sshll.u32 %s819_s4, 4  ;;  %s539_s19 = int_to_ptr.vmem [resolvable:$true] %s538_s19 }
  0x69   :  { %301 = vmatpush1.bf16.msra.mxu0 %v635_v15  ;;  %344 = vmatpush1.bf16.msra.mxu1 %v636_v16  ;;  %s779_s30 = scalar_lea.vmem %s539_s19, 1024  ;;  %p784_p13 = scmp.lt.s32.totalorder %s539_s19, %s539_s19 }
  0x6a   :  { %302 = vmatprep.subr.bf16.mxu0 %v637_v17  ;;  %345 = vmatprep.subr.bf16.mxu1 %v639_v18  ;;  %v500_v46 = vrot.slane %v495_v43, %v499_v41  ;;  %v508_v47 = vrot.slane %v495_v43, %v507_v42  ;;  %v504_v48 = vrot.slane %v495_v43, %v503_v44  ;;  %p780_p12 = scmp.ne.s32.totalorder %s539_s19, %s779_s30  ;;  %p785_p0 = scmp.lt.s32.totalorder %s779_s30, %s779_s30 }
  0x6b   :  { %v512_v49 = vrot.slane %v495_v43, %v511_v45 }
  0x6c   :  { %p786_p1 = por %p785_p0, %p784_p13 }
  0x6d   :  { %303 = vmatpush1.bf16.msra.mxu0 %v641_v19  ;;  %346 = vmatpush1.bf16.msra.mxu1 %v642_v20 }
  0x6e   :  { %304 = vmatprep.subr.bf16.mxu0 %v643_v21  ;;  %347 = vmatprep.subr.bf16.mxu1 %v645_v22  ;;  %p787_p2 = pnand %p786_p1, %p780_p12 }
  0x71   :  { %305 = vmatpush1.bf16.msra.mxu0 %v647_v23  ;;  %348 = vmatpush1.bf16.msra.mxu1 %v648_v24 }
  0x72   :  { %306 = vmatprep.subr.bf16.mxu0 %v649_v25  ;;  %349 = vmatprep.subr.bf16.mxu1 %v651_v26 }
  0x75   :  { %307 = vmatpush1.bf16.msra.mxu0 %v653_v27  ;;  %350 = vmatpush1.bf16.msra.mxu1 %v654_v28 }
  0x76   :  { %308 = vmatprep.subr.bf16.mxu0 %v655_v29  ;;  %351 = vmatprep.subr.bf16.mxu1 %v657_v30 }
  0x79   :  { %309 = vmatpush1.bf16.msra.mxu0 %v659_v31  ;;  %352 = vmatpush1.bf16.msra.mxu1 %v660_v32 }
  0x7a   :  { %409 = vmatprep.subr.bf16.mxu0 %v664_v33  ;;  %452 = vmatprep.subr.bf16.mxu1 %v667_v34 }
  0x7c   :  { %327 = vmatmul.mubr.bf16.vlgmr.msra.gmra.mrb[0].mxu0 %v661_v35  ;;  %370 = vmatmul.mubr.bf16.vlgmr.msra.gmra.mrb[0].mxu1 %v661_v35 }
  0x7d   :  { %410 = vmatpush1.bf16.msra.mxu0 %v662_v36  ;;  %453 = vmatpush1.bf16.msra.mxu1 %v665_v37 }
  0x7e   :  { %441 = vmatprep.mubr.bf16.mxu0 %v818_v0  ;;  %484 = vmatprep.mubr.bf16.mxu1 %v818_v0 }
  0x88   :  { %590 = vmatmul.mubr.msk.bf16.vlgmr.msra.gmra.mrb[0].mxu0 %vm405_vm0, %v668_v38  ;;  %591 = vmatmul.mubr.msk.bf16.vlgmr.msra.gmra.mrb[0].mxu1 %vm405_vm0, %v668_v38 }
 0x15b   :  { %v443_v50 = vpop.f32.mrb[0].mxu0  ;;  %v486_v51 = vpop.f32.mrb[0].mxu1 }
 0x15c   :  { %v517_v52 = vadd.f32 %v500_v46, %v443_v50  ;;  %v519_v53 = vadd.f32 %v508_v47, %v486_v51  ;;  %v445_v54 = vpop.f32.mrb[1].mxu0  ;;  %v488_v55 = vpop.f32.mrb[1].mxu1 }
 0x15d   :  { %v518_v56 = vadd.f32 %v504_v48, %v445_v54  ;;  %v520_v57 = vadd.f32 %v512_v49, %v488_v55  ;;  %v447_v58 = vpop.f32.mrb[2].mxu0  ;;  %v490_v59 = vpop.f32.mrb[2].mxu1 }
 0x15e   :  { %525 = vst [vmem:[#allocation11] sm:$0xff] %v517_v52  ;;  %527 = vst [vmem:[#allocation11 + $0x10] sm:$0xff] %v519_v53  ;;  %v521_v60 = vadd.f32 %v500_v46, %v447_v58  ;;  %v523_v61 = vadd.f32 %v508_v47, %v490_v59  ;;  %v449_v62 = vpop.f32.mrb[3].mxu0  ;;  %v492_v63 = vpop.f32.mrb[3].mxu1 }
 0x15f   :  { %526 = vst [vmem:[#allocation11 + $0x8] sm:$0xff] %v518_v56  ;;  %528 = vst [vmem:[#allocation11 + $0x18] sm:$0xff] %v520_v57  ;;  %v522_v0 = vadd.f32 %v504_v48, %v449_v62  ;;  %v524_v1 = vadd.f32 %v512_v49, %v492_v63 }
 0x160   :  { %529 = vst [vmem:[#allocation11 + $0x20] sm:$0xff] %v521_v60  ;;  %531 = vst [vmem:[#allocation11 + $0x30] sm:$0xff] %v523_v61 }
 0x161   :  { %530 = vst [vmem:[#allocation11 + $0x28] sm:$0xff] %v522_v0  ;;  %532 = vst [vmem:[#allocation11 + $0x38] sm:$0xff] %v524_v1 }
 0x162   :  { %790 = shalt.err (!%p787_p2)
}
 0x163   :  { %s791_s7 = scalar_lea.hbm %s945_s5, 1024 }
 0x164   :  { %p792_p3 = scmp.ne.s32.totalorder %s945_s5, %s791_s7  ;;  %p795_p4 = scmp.lt.u32.totalorder %s791_s7, %s945_s5 }
 0x166   :  { %p797_p5 = pnand %p795_p4, %p792_p3 }
 0x168   :  { %800 = shalt.err (!%p797_p5)
}
 0x169   :  { %s820_s13 = smov 512   ;;  %s821_s14 = smov 32  }
 0x16a   :  { %544 = dma.vmem_to_hbm [thread:$0]  %s539_s19, 1024, %s945_s5, [#allocation4], %s820_s13, %s820_s13, %s821_s14  }
 0x16b   :  { %807 = dma.done.wait [#allocation4], 1024  }
 0x16c   :  { %808 = vsyncadd [#allocation4], 4294966272 }
 0x16d   :  { %548 = vsyncpa [#allocation3], 1 }
 0x16e   :  { %549 = vsyncpa [#allocation6], 1 }
 0x16f   :  { %550 = vsyncpa [#allocation9], 1 }
 0x170   :  { %551 = vsyncpa [#allocation4], 1 }

// kernel: dlstm_forward.6
= control target key start
LH: loop header
LB: loop body
LE: loop exit
PB: predicated region body
PF: predicated region fallthrough
CT: control target
= control target key end

     0   :  { %8 = vsyncpa [#allocation3], 0  ;;  %s422_s0 = inlined_call_operand.hbm [shape: bf16[16,16], index: 0, kind: input, shape index: {}]   ;;  %s423_s1 = inlined_call_operand.hbm [shape: bf16[16,512], index: 1, kind: input, shape index: {}]   ;;  %s424_s2 = inlined_call_operand.hbm [shape: f32[1,512], index: 2, kind: input, shape index: {}]   ;;  %s425_s3 = inlined_call_operand.hbm [shape: f32[16,512], index: 3, kind: output, shape index: {}]  }
   0x1   :  { %9 = vsyncpa [#allocation6], 0 }
   0x2   :  { %10 = vsyncpa [#allocation4], 0  ;;  %s343_s12 = smov [#allocation5]   ;;  %s249_s16 = scalar_lea.hbm %s423_s1, 512 }
   0x3   :  { %s28_s13 = sshll.u32 %s343_s12, 4  ;;  %p250_p0 = scmp.ne.s32.totalorder %s423_s1, %s249_s16  ;;  %s29_s13 = int_to_ptr.vmem [resolvable:$true] %s28_s13 }
   0x4   :  { %p253_p1 = scmp.lt.u32.totalorder %s249_s16, %s423_s1 }
   0x6   :  { %p255_p2 = pnand %p253_p1, %p250_p0 }
   0x8   :  { %258 = shalt.err (!%p255_p2)
}
   0x9   :  { %s259_s21 = scalar_lea.vmem %s29_s13, 512  ;;  %p264_p4 = scmp.lt.s32.totalorder %s29_s13, %s29_s13 }
   0xa   :  { %p260_p3 = scmp.ne.s32.totalorder %s29_s13, %s259_s21  ;;  %p265_p5 = scmp.lt.s32.totalorder %s259_s21, %s259_s21 }
   0xc   :  { %p266_p6 = por %p265_p5, %p264_p4 }
   0xe   :  { %p267_p7 = pnand %p266_p6, %p260_p3 }
  0x10   :  { %270 = shalt.err (!%p267_p7)
}
  0x11   :  { %s344_s22 = smov 256   ;;  %s345_s23 = smov 16  }
  0x12   :  { %34 = dma.hbm_to_vmem [thread:$0]  %s423_s1, 512, %s29_s13, [#allocation6], %s344_s22, %s344_s22, %s345_s23  }
  0x13   :  { %s346_s26 = smov [#allocation2]   ;;  %s271_s30 = scalar_lea.hbm %s422_s0, 128 }
  0x14   :  { %s16_s27 = sshll.u32 %s346_s26, 4  ;;  %p272_p8 = scmp.ne.s32.totalorder %s422_s0, %s271_s30  ;;  %s17_s27 = int_to_ptr.vmem [resolvable:$true] %s16_s27 }
  0x15   :  { %p275_p9 = scmp.lt.u32.totalorder %s271_s30, %s422_s0 }
  0x17   :  { %p277_p10 = pnand %p275_p9, %p272_p8 }
  0x19   :  { %280 = shalt.err (!%p277_p10)
}
  0x1a   :  { %s281_s8 = scalar_lea.vmem %s17_s27, 128  ;;  %p286_p12 = scmp.lt.s32.totalorder %s17_s27, %s17_s27 }
  0x1b   :  { %p282_p11 = scmp.ne.s32.totalorder %s17_s27, %s281_s8  ;;  %p287_p13 = scmp.lt.s32.totalorder %s281_s8, %s281_s8 }
  0x1d   :  { %p288_p0 = por %p287_p13, %p286_p12 }
  0x1f   :  { %p289_p1 = pnand %p288_p0, %p282_p11 }
  0x21   :  { %292 = shalt.err (!%p289_p1)
}
  0x22   :  { %s347_s1 = smov 64   ;;  %s348_s9 = smov 4  }
  0x23   :  { %22 = dma.hbm_to_vmem [thread:$0]  %s422_s0, 128, %s17_s27, [#allocation3], %s347_s1, %s347_s1, %s348_s9  }
  0x24   :  { %s349_s12 = smov [#allocation7]   ;;  %s293_s16 = scalar_lea.hbm %s424_s2, 64 }
  0x25   :  { %s41_s13 = sshll.u32 %s349_s12, 4  ;;  %p294_p2 = scmp.ne.s32.totalorder %s424_s2, %s293_s16  ;;  %s42_s13 = int_to_ptr.vmem [resolvable:$true] %s41_s13 }
  0x26   :  { %p297_p3 = scmp.lt.u32.totalorder %s293_s16, %s424_s2 }
  0x28   :  { %p299_p4 = pnand %p297_p3, %p294_p2 }
  0x2a   :  { %302 = shalt.err (!%p299_p4)
}
  0x2b   :  { %s303_s21 = scalar_lea.vmem %s42_s13, 64  ;;  %p308_p6 = scmp.lt.s32.totalorder %s42_s13, %s42_s13 }
  0x2c   :  { %p304_p5 = scmp.ne.s32.totalorder %s42_s13, %s303_s21  ;;  %p309_p7 = scmp.lt.s32.totalorder %s303_s21, %s303_s21 }
  0x2e   :  { %p310_p8 = por %p309_p7, %p308_p6 }
  0x30   :  { %p311_p9 = pnand %p310_p8, %p304_p5 }
  0x32   :  { %314 = shalt.err (!%p311_p9)
}
  0x33   :  { %44 = dma.hbm_to_vmem [thread:$0]  %s424_s2, 64, %s42_s13, [#allocation6]  }
  0x34   :  { %337 = dma.done.wait [#allocation3], 128  }
  0x35   :  { %338 = vsyncadd [#allocation3], 4294967168 }
  0x36   :  { %339 = dma.done.wait [#allocation6], 576  }
  0x37   :  { %340 = vsyncadd [#allocation6], 4294966720  ;;  %v350_v0 = vmov 0   ;;  %v242_v1 = vld [vmem:[#allocation5 + $0x4] ss:$16 sps:$4 sm:$0xff]   ;;  %v248_v5 = vld [vmem:[#allocation2] sm:$0xff]   ;;  %v63_v6 = vlaneseq }
  0x38   :  { %144 = vmatprep.mubr.bf16.mxu0 %v350_v0  ;;  %187 = vmatprep.mubr.bf16.mxu1 %v350_v0  ;;  %v244_v2 = vld [vmem:[#allocation5 + $0xc] ss:$16 sps:$4 sm:$0xff]   ;;  %v246_v3 = vld [vmem:[#allocation5] ss:$16 sps:$4 sm:$0xff]   ;;  %v247_v4 = vld [vmem:[#allocation5 + $0x8] ss:$16 sps:$4 sm:$0xff]  }
  0x39   :  { %112 = vmatprep.subr.bf16.mxu0 %v242_v1  ;;  %155 = vmatprep.subr.bf16.mxu1 %v244_v2  ;;  %vm108_vm0 = vcmask 130048   ;;  %v64_v7 = vshrl.u32 %v63_v6, 7  ;;  %v61_v10 = vld [vmem:[#allocation7] sm:$0xf]  ;;  %s351_s2 = smov [#allocation8]  }
  0x3a   :  { %113 = vmatpush1.bf16.msra.mxu0 %v246_v3  ;;  %156 = vmatpush1.bf16.msra.mxu1 %v247_v4  ;;  %s211_s23 = sshll.u32 %s351_s2, 4  ;;  %s212_s23 = int_to_ptr.vmem [resolvable:$true] %s211_s23 }
  0x3b   :  { %v65_v8 = vsub.s32 0, %v64_v7  ;;  %v73_v9 = vsub.s32 2, %v64_v7  ;;  %v69_v11 = vsub.s32 1, %v64_v7  ;;  %v77_v12 = vsub.s32 3, %v64_v7  ;;  %s315_s24 = scalar_lea.vmem %s212_s23, 1024  ;;  %p320_p11 = scmp.lt.s32.totalorder %s212_s23, %s212_s23 }
  0x3c   :  { %p316_p10 = scmp.ne.s32.totalorder %s212_s23, %s315_s24  ;;  %p321_p12 = scmp.lt.s32.totalorder %s315_s24, %s315_s24 }
  0x3d   :  { %229 = vmatmul.mubr.msk.bf16.vlgmr.msra.gmra.mrb[0].mxu0 %vm108_vm0, %v248_v5  ;;  %230 = vmatmul.mubr.msk.bf16.vlgmr.msra.gmra.mrb[0].mxu1 %vm108_vm0, %v248_v5  ;;  %v66_v13 = vrot.slane %v61_v10, %v65_v8  ;;  %v74_v14 = vrot.slane %v61_v10, %v73_v9  ;;  %v70_v15 = vrot.slane %v61_v10, %v69_v11 }
  0x3e   :  { %v78_v16 = vrot.slane %v61_v10, %v77_v12  ;;  %p322_p13 = por %p321_p12, %p320_p11 }
  0x40   :  { %p323_p0 = pnand %p322_p13, %p316_p10 }
 0x110   :  { %v146_v17 = vpop.f32.mrb[0].mxu0  ;;  %v189_v18 = vpop.f32.mrb[0].mxu1 }
 0x111   :  { %v147_v19 = vadd.f32 %v146_v17, %v66_v13  ;;  %v190_v20 = vadd.f32 %v189_v18, %v74_v14  ;;  %v148_v21 = vpop.f32.mrb[1].mxu0  ;;  %v191_v22 = vpop.f32.mrb[1].mxu1 }
 0x112   :  { %v149_v23 = vadd.f32 %v148_v21, %v70_v15  ;;  %v192_v24 = vadd.f32 %v191_v22, %v78_v16  ;;  %v150_v25 = vpop.f32.mrb[2].mxu0  ;;  %v193_v26 = vpop.f32.mrb[2].mxu1 }
 0x113   :  { %198 = vst [vmem:[#allocation8] sm:$0xff] %v147_v19  ;;  %200 = vst [vmem:[#allocation8 + $0x10] sm:$0xff] %v190_v20  ;;  %v151_v27 = vadd.f32 %v150_v25, %v66_v13  ;;  %v194_v28 = vadd.f32 %v193_v26, %v74_v14  ;;  %v152_v29 = vpop.f32.mrb[3].mxu0  ;;  %v195_v30 = vpop.f32.mrb[3].mxu1 }
 0x114   :  { %199 = vst [vmem:[#allocation8 + $0x8] sm:$0xff] %v149_v23  ;;  %201 = vst [vmem:[#allocation8 + $0x18] sm:$0xff] %v192_v24  ;;  %v153_v31 = vadd.f32 %v152_v29, %v70_v15  ;;  %v196_v32 = vadd.f32 %v195_v30, %v78_v16 }
 0x115   :  { %202 = vst [vmem:[#allocation8 + $0x20] sm:$0xff] %v151_v27  ;;  %204 = vst [vmem:[#allocation8 + $0x30] sm:$0xff] %v194_v28 }
 0x116   :  { %203 = vst [vmem:[#allocation8 + $0x28] sm:$0xff] %v153_v31  ;;  %205 = vst [vmem:[#allocation8 + $0x38] sm:$0xff] %v196_v32 }
 0x117   :  { %326 = shalt.err (!%p323_p0)
}
 0x118   :  { %s327_s27 = scalar_lea.hbm %s425_s3, 1024 }
 0x119   :  { %p328_p1 = scmp.ne.s32.totalorder %s425_s3, %s327_s27  ;;  %p331_p2 = scmp.lt.u32.totalorder %s327_s27, %s425_s3 }
 0x11b   :  { %p333_p3 = pnand %p331_p2, %p328_p1 }
 0x11d   :  { %336 = shalt.err (!%p333_p3)
}
 0x11e   :  { %s352_s5 = smov 512   ;;  %s353_s6 = smov 32  }
 0x11f   :  { %217 = dma.vmem_to_hbm [thread:$0]  %s212_s23, 1024, %s425_s3, [#allocation4], %s352_s5, %s352_s5, %s353_s6  }
 0x120   :  { %341 = dma.done.wait [#allocation4], 1024  }
 0x121   :  { %342 = vsyncadd [#allocation4], 4294966272 }
 0x122   :  { %221 = vsyncpa [#allocation3], 1 }
 0x123   :  { %222 = vsyncpa [#allocation6], 1 }
 0x124   :  { %223 = vsyncpa [#allocation4], 1 }

// kernel: dlstm_forward.9
= control target key start
LH: loop header
LB: loop body
LE: loop exit
PB: predicated region body
PF: predicated region fallthrough
CT: control target
= control target key end

     0   :  { %9 = vsyncpa [#allocation5], 0  ;;  %s1959_s0 = inlined_call_operand.hbm [shape: f32[8,2,512], index: 0, kind: input, shape index: {}]   ;;  %s1960_s1 = inlined_call_operand.hbm [shape: f32[128,128], index: 1, kind: input, shape index: {}]   ;;  %s1961_s2 = inlined_call_operand.hbm [shape: f32[8,2,128], index: 2, kind: output, shape index: {0}]   ;;  %s1962_s3 = inlined_call_operand.hbm [shape: f32[2,128], index: 3, kind: output, shape index: {1}]  }
   0x1   :  { %10 = vsyncpa [#allocation8], 0 }
   0x2   :  { %11 = vsyncpa [#allocation6], 0 }
   0x3   :  { %12 = vsyncpa [#allocation11], 0  ;;  %s1707_s12 = smov [#allocation4]   ;;  %s1611_s16 = scalar_lea.hbm %s1959_s0, 1024 }
   0x4   :  { %s18_s13 = sshll.u32 %s1707_s12, 4  ;;  %p1612_p0 = scmp.ne.s32.totalorder %s1959_s0, %s1611_s16  ;;  %s19_s13 = int_to_ptr.vmem [resolvable:$true] %s18_s13 }
   0x5   :  { %p1615_p1 = scmp.lt.u32.totalorder %s1611_s16, %s1959_s0 }
   0x7   :  { %p1617_p2 = pnand %p1615_p1, %p1612_p0 }
   0x9   :  { %1620 = shalt.err (!%p1617_p2)
}
   0xa   :  { %s1621_s21 = scalar_lea.vmem %s19_s13, 1024  ;;  %p1626_p4 = scmp.lt.s32.totalorder %s19_s13, %s19_s13 }
   0xb   :  { %p1622_p3 = scmp.ne.s32.totalorder %s19_s13, %s1621_s21  ;;  %p1627_p5 = scmp.lt.s32.totalorder %s1621_s21, %s1621_s21 }
   0xd   :  { %p1628_p6 = por %p1627_p5, %p1626_p4 }
   0xf   :  { %p1629_p7 = pnand %p1628_p6, %p1622_p3 }
  0x11   :  { %1632 = shalt.err (!%p1629_p7)
}
  0x12   :  { %s1708_s22 = smov 128   ;;  %s1709_s23 = smov 8  }
  0x13   :  { %24 = dma.hbm_to_vmem [thread:$0]  %s1959_s0, 1024, %s19_s13, [#allocation5], %s1708_s22, %s1708_s22, %s1709_s23  }
  0x14   :  { %s1710_s26 = smov [#allocation7]   ;;  %s1633_s30 = scalar_lea.hbm %s1960_s1, 2048 }
  0x15   :  { %s30_s27 = sshll.u32 %s1710_s26, 4  ;;  %p1634_p8 = scmp.ne.s32.totalorder %s1960_s1, %s1633_s30  ;;  %s31_s27 = int_to_ptr.vmem [resolvable:$true] %s30_s27 }
  0x16   :  { %p1637_p9 = scmp.lt.u32.totalorder %s1633_s30, %s1960_s1 }
  0x18   :  { %p1639_p10 = pnand %p1637_p9, %p1634_p8 }
  0x1a   :  { %1642 = shalt.err (!%p1639_p10)
}
  0x1b   :  { %s1643_s8 = scalar_lea.vmem %s31_s27, 2048  ;;  %p1648_p12 = scmp.lt.s32.totalorder %s31_s27, %s31_s27 }
  0x1c   :  { %p1644_p11 = scmp.ne.s32.totalorder %s31_s27, %s1643_s8  ;;  %p1649_p13 = scmp.lt.s32.totalorder %s1643_s8, %s1643_s8 }
  0x1e   :  { %p1650_p0 = por %p1649_p13, %p1648_p12 }
  0x20   :  { %p1651_p1 = pnand %p1650_p0, %p1644_p11 }
  0x22   :  { %1654 = shalt.err (!%p1651_p1)
}
  0x23   :  { %36 = dma.hbm_to_vmem [thread:$0]  %s1960_s1, 2048, %s31_s27, [#allocation8], %s1708_s22, %s1708_s22, %s1709_s23  }
  0x24   :  { %1699 = dma.done.wait [#allocation5], 1024  }
  0x25   :  { %1700 = vsyncadd [#allocation5], 4294966272 }
  0x26   :  { %1701 = dma.done.wait [#allocation8], 2048  }
  0x27   :  { %1702 = vsyncadd [#allocation8], 4294965248  ;;  %v1711_v0 = vmov 0.0|0.0   ;;  %v1712_v1 = vmov 0.0   ;;  %vm1713_vm0 = vmmov 0   ;;  %v49_v2 = vld [vmem:[#allocation7] sm:$0xff]  ;;  %v143_v29 = vlaneseq }
  0x28   :  { %1359 = vmatprep.subr.bf16.mxu0 %v1711_v0  ;;  %48 = vst [vmem:[#allocation3] sm:$0x3] %v1712_v1  ;;  %1111 = vmatprep.mubr.msk.f32.mxu0 %vm1713_vm0, %v1712_v1  ;;  %47 = vst [vmem:[#allocation2] sm:$0x3] %v1712_v1  ;;  %v50_v3 = vld [vmem:[#allocation7 + $0x8] sm:$0xff]  ;;  %v51_v4 = vld [vmem:[#allocation7 + $0x10] sm:$0xff] }
  0x29   :  { %1383 = vmatprep.subr.bf16.mxu1 %v1711_v0  ;;  %1146 = vmatprep.mubr.msk.f32.mxu1 %vm1713_vm0, %v1712_v1  ;;  %v1771_v5 = vpack.c.bf16 %v50_v3, %v49_v2  ;;  %v52_v6 = vld [vmem:[#allocation7 + $0x18] sm:$0xff]  ;;  %v53_v8 = vld [vmem:[#allocation7 + $0x20] sm:$0xff]  ;;  %v54_v9 = vld [vmem:[#allocation7 + $0x28] sm:$0xff]  ;;  %v1714_v27 = vmov 1983009808   ;;  %v144_v31 = vshrl.u32 %v143_v29, 7 }
  0x2a   :  { %v1774_v7 = vpack.c.bf16 %v52_v6, %v51_v4  ;;  %v1780_v10 = vpack.c.bf16 %v54_v9, %v53_v8  ;;  %v55_v11 = vld [vmem:[#allocation7 + $0x30] sm:$0xff]  ;;  %v56_v12 = vld [vmem:[#allocation7 + $0x38] sm:$0xff]  ;;  %v57_v14 = vld [vmem:[#allocation7 + $0x40] sm:$0xff]  ;;  %v141_v28 = vunpack.c.l.s4 %v1714_v27  ;;  %s1715_s1 = smov [#allocation10]  }
  0x2b   :  { %1361 = vmatpush3.bf16.msra.mxu0 %v1771_v5  ;;  %1385 = vmatpush3.bf16.msra.mxu1 %v1771_v5  ;;  %v1786_v13 = vpack.c.bf16 %v56_v12, %v55_v11  ;;  %v58_v15 = vld [vmem:[#allocation7 + $0x48] sm:$0xff]  ;;  %v59_v17 = vld [vmem:[#allocation7 + $0x50] sm:$0xff]  ;;  %v60_v18 = vld [vmem:[#allocation7 + $0x58] sm:$0xff]  ;;  %s921_s10 = sshll.u32 %s1715_s1, 4  ;;  %s922_s10 = int_to_ptr.vmem [resolvable:$true] %s921_s10 }
  0x2c   :  { %1362 = vmatprep.subr.bf16.mxu0 %v1711_v0  ;;  %1386 = vmatprep.subr.bf16.mxu1 %v1711_v0  ;;  %v1792_v16 = vpack.c.bf16 %v58_v15, %v57_v14  ;;  %v1798_v19 = vpack.c.bf16 %v60_v18, %v59_v17  ;;  %v61_v20 = vld [vmem:[#allocation7 + $0x60] sm:$0xff]  ;;  %v62_v21 = vld [vmem:[#allocation7 + $0x68] sm:$0xff]  ;;  %v63_v23 = vld [vmem:[#allocation7 + $0x70] sm:$0xff]  ;;  %v142_v30 = vunpack.c.0.s8 %v141_v28  ;;  %s1655_s11 = scalar_lea.vmem %s922_s10, 32  ;;  %p1660_p3 = scmp.lt.s32.totalorder %s922_s10, %s922_s10 }
  0x2d   :  { %v1804_v22 = vpack.c.bf16 %v62_v21, %v61_v20  ;;  %v64_v24 = vld [vmem:[#allocation7 + $0x78] sm:$0xff]  ;;  %v137_v37 = vld [vmem:[#allocation4] sm:$0xff]  ;;  %v240_v57 = vld [vmem:[#allocation4 + $0x8] sm:$0xff]  ;;  %p1656_p2 = scmp.ne.s32.totalorder %s922_s10, %s1655_s11  ;;  %p1661_p4 = scmp.lt.s32.totalorder %s1655_s11, %s1655_s11 }
  0x2e   :  { %v1810_v25 = vpack.c.bf16 %v64_v24, %v63_v23  ;;  %v1837_v32 = vsub.s32 %v142_v30, %v144_v31  ;;  %v344_v20 = vld [vmem:[#allocation4 + $0x10] sm:$0xff] }
  0x2f   :  { %1364 = vmatpush3.bf16.msra.mxu0 %v1774_v7  ;;  %1388 = vmatpush3.bf16.msra.mxu1 %v1774_v7  ;;  %v65_v26 = vld [vmem:[#allocation2] sm:$0x3]  ;;  %v66_v44 = vld [vmem:[#allocation3] sm:$0x3]  ;;  %p1662_p5 = por %p1661_p4, %p1660_p3 }
  0x30   :  { %1365 = vmatprep.subr.bf16.mxu0 %v1711_v0  ;;  %1389 = vmatprep.subr.bf16.mxu1 %v1711_v0 }
  0x31   :  { %p1663_p6 = pnand %p1662_p5, %p1656_p2 }
  0x33   :  { %1367 = vmatpush3.bf16.msra.mxu0 %v1780_v10  ;;  %1391 = vmatpush3.bf16.msra.mxu1 %v1780_v10 }
  0x34   :  { %1368 = vmatprep.subr.bf16.mxu0 %v1711_v0  ;;  %1392 = vmatprep.subr.bf16.mxu1 %v1711_v0 }
  0x37   :  { %1370 = vmatpush3.bf16.msra.mxu0 %v1786_v13  ;;  %1394 = vmatpush3.bf16.msra.mxu1 %v1786_v13 }
  0x38   :  { %1371 = vmatprep.subr.bf16.mxu0 %v1711_v0  ;;  %1395 = vmatprep.subr.bf16.mxu1 %v1711_v0 }
  0x3b   :  { %1373 = vmatpush3.bf16.msra.mxu0 %v1792_v16  ;;  %1397 = vmatpush3.bf16.msra.mxu1 %v1792_v16 }
  0x3c   :  { %1374 = vmatprep.subr.bf16.mxu0 %v1711_v0  ;;  %1398 = vmatprep.subr.bf16.mxu1 %v1711_v0 }
  0x3f   :  { %1376 = vmatpush3.bf16.msra.mxu0 %v1798_v19  ;;  %1400 = vmatpush3.bf16.msra.mxu1 %v1798_v19 }
  0x40   :  { %1377 = vmatprep.subr.bf16.mxu0 %v1711_v0  ;;  %1401 = vmatprep.subr.bf16.mxu1 %v1711_v0 }
  0x43   :  { %1379 = vmatpush3.bf16.msra.mxu0 %v1804_v22  ;;  %1403 = vmatpush3.bf16.msra.mxu1 %v1804_v22 }
  0x44   :  { %1380 = vmatprep.subr.bf16.mxu0 %v1711_v0  ;;  %1404 = vmatprep.subr.bf16.mxu1 %v1711_v0 }
  0x47   :  { %1382 = vmatpush3.bf16.msra.mxu0 %v1810_v25  ;;  %1406 = vmatpush3.bf16.msra.mxu1 %v1810_v25 }
  0x48   :  { %1407 = vmatprep.subr.bf16.mxu0 %v1711_v0  ;;  %1431 = vmatprep.subr.bf16.mxu1 %v1711_v0 }
  0x4a   :  { %1112 = vmatmul.mubr.f32.vlgmr.msra.gmra.mrb[0].mxu0 %v65_v26 }
  0x4b   :  { %1409 = vmatpush3.bf16.msra.mxu0 %v1771_v5  ;;  %1181 = vmatprep.mubr.msk.f32.mxu0 %vm1713_vm0, %v1712_v1 }
  0x4c   :  { %1410 = vmatprep.subr.bf16.mxu0 %v1711_v0 }
  0x4f   :  { %1412 = vmatpush3.bf16.msra.mxu0 %v1774_v7 }
  0x50   :  { %1413 = vmatprep.subr.bf16.mxu0 %v1711_v0 }
  0x53   :  { %1415 = vmatpush3.bf16.msra.mxu0 %v1780_v10 }
  0x54   :  { %1416 = vmatprep.subr.bf16.mxu0 %v1711_v0 }
  0x57   :  { %1418 = vmatpush3.bf16.msra.mxu0 %v1786_v13 }
  0x58   :  { %1419 = vmatprep.subr.bf16.mxu0 %v1711_v0 }
  0x5b   :  { %1421 = vmatpush3.bf16.msra.mxu0 %v1792_v16 }
  0x5c   :  { %1422 = vmatprep.subr.bf16.mxu0 %v1711_v0 }
  0x5f   :  { %1424 = vmatpush3.bf16.msra.mxu0 %v1798_v19 }
  0x60   :  { %1425 = vmatprep.subr.bf16.mxu0 %v1711_v0 }
  0x63   :  { %1427 = vmatpush3.bf16.msra.mxu0 %v1804_v22 }
  0x64   :  { %1428 = vmatprep.subr.bf16.mxu0 %v1711_v0 }
  0x67   :  { %1430 = vmatpush3.bf16.msra.mxu0 %v1810_v25 }
  0x68   :  { %1455 = vmatprep.subr.bf16.mxu0 %v1711_v0 }
 0x11d   :  { %v133_v33 = vpop.f32.mrb[0].mxu0 }
 0x11e   :  { %v139_v34 = vcombine.low %v133_v33, %v133_v33  ;;  %v1113_v35 = vpop.f32.mrb[1].mxu0 }
 0x120   :  { %v146_v36 = vrot.slane %v139_v34, %v1837_v32 }
 0x122   :  { %v147_v38 = vcombine.low %v146_v36, %v146_v36 }
 0x124   :  { %v149_v39 = vadd.f32 %v147_v38, %v137_v37 }
 0x126   :  { %v935_v40 = vmul.f32 -1.442695, %v149_v39 }
 0x128   :  { %1563 = vpow2.f32 %v935_v40 }
 0x132   :  { %v1564_v41 = vpop.eup %1563 }
 0x133   :  { %v153_v42 = vadd.f32 1.0, %v1564_v41 }
 0x135   :  { %1565 = vrcp.f32 %v153_v42  ;;  %v448_v42 = vld [vmem:[#allocation4 + $0x18] sm:$0xff] }
 0x13f   :  { %v1566_v43 = vpop.eup %1565 }
 0x140   :  { %v157_v45 = vrot.slane %v1566_v43, 2  ;;  %v160_v46 = vrot.slane %v1566_v43, 4  ;;  %v165_v50 = vrot.slane %v1566_v43, 6 }
 0x142   :  { %v159_v47 = vadd.f32 %v157_v45, %v66_v44  ;;  %v162_v48 = vmul.f32 %v1566_v43, %v160_v46 }
 0x144   :  { %v163_v49 = vadd.f32 %v162_v48, %v159_v47 }
 0x146   :  { %1567 = vtanh.f32 %v163_v49 }
 0x150   :  { %v1568_v51 = vpop.eup %1567 }
 0x151   :  { %v167_v52 = vadd.f32 %v1568_v51, %v165_v50 }
 0x153   :  { %168 = vst [vmem:[#allocation9] sm:$0x3] %v167_v52  ;;  %1147 = vmatmul.mubr.f32.vlgmr.msra.gmra.mrb[0].mxu1 %v167_v52 }
 0x154   :  { %1433 = vmatpush3.bf16.msra.mxu1 %v1771_v5  ;;  %1216 = vmatprep.mubr.msk.f32.mxu1 %vm1713_vm0, %v1712_v1 }
 0x155   :  { %1434 = vmatprep.subr.bf16.mxu1 %v1711_v0 }
 0x158   :  { %1436 = vmatpush3.bf16.msra.mxu1 %v1774_v7 }
 0x159   :  { %1437 = vmatprep.subr.bf16.mxu1 %v1711_v0 }
 0x15c   :  { %1439 = vmatpush3.bf16.msra.mxu1 %v1780_v10 }
 0x15d   :  { %1440 = vmatprep.subr.bf16.mxu1 %v1711_v0 }
 0x160   :  { %1442 = vmatpush3.bf16.msra.mxu1 %v1786_v13 }
 0x161   :  { %1443 = vmatprep.subr.bf16.mxu1 %v1711_v0 }
 0x164   :  { %1445 = vmatpush3.bf16.msra.mxu1 %v1792_v16 }
 0x165   :  { %1446 = vmatprep.subr.bf16.mxu1 %v1711_v0 }
 0x168   :  { %1448 = vmatpush3.bf16.msra.mxu1 %v1798_v19 }
 0x169   :  { %1449 = vmatprep.subr.bf16.mxu1 %v1711_v0 }
 0x16c   :  { %1451 = vmatpush3.bf16.msra.mxu1 %v1804_v22 }
 0x16d   :  { %1452 = vmatprep.subr.bf16.mxu1 %v1711_v0 }
 0x170   :  { %1454 = vmatpush3.bf16.msra.mxu1 %v1810_v25 }
 0x171   :  { %1479 = vmatprep.subr.bf16.mxu1 %v1711_v0 }
 0x226   :  { %v235_v53 = vpop.f32.mrb[0].mxu1 }
 0x227   :  { %v242_v54 = vcombine.low %v235_v53, %v235_v53  ;;  %v1148_v55 = vpop.f32.mrb[1].mxu1 }
 0x229   :  { %v249_v56 = vrot.slane %v242_v54, %v1837_v32 }
 0x22b   :  { %v250_v58 = vcombine.low %v249_v56, %v249_v56 }
 0x22d   :  { %v252_v59 = vadd.f32 %v250_v58, %v240_v57 }
 0x22f   :  { %v936_v60 = vmul.f32 -1.442695, %v252_v59 }
 0x231   :  { %1569 = vpow2.f32 %v936_v60 }
 0x23b   :  { %v1570_v61 = vpop.eup %1569 }
 0x23c   :  { %v256_v62 = vadd.f32 1.0, %v1570_v61  ;;  %v552_v61 = vld [vmem:[#allocation4 + $0x20] sm:$0xff] }
 0x23e   :  { %1571 = vrcp.f32 %v256_v62 }
 0x248   :  { %v1572_v63 = vpop.eup %1571 }
 0x249   :  { %v260_v2 = vrot.slane %v1572_v63, 2  ;;  %v263_v3 = vrot.slane %v1572_v63, 4  ;;  %v268_v9 = vrot.slane %v1572_v63, 6 }
 0x24b   :  { %v262_v4 = vadd.f32 %v260_v2, %v163_v49  ;;  %v265_v6 = vmul.f32 %v1572_v63, %v263_v3 }
 0x24d   :  { %v266_v8 = vadd.f32 %v265_v6, %v262_v4 }
 0x24f   :  { %1573 = vtanh.f32 %v266_v8 }
 0x259   :  { %v1574_v11 = vpop.eup %1573 }
 0x25a   :  { %v270_v12 = vadd.f32 %v1574_v11, %v268_v9 }
 0x25c   :  { %272 = vst [vmem:[#allocation9 + $0x2] sm:$0x3] %v270_v12  ;;  %1182 = vmatmul.mubr.f32.vlgmr.msra.gmra.mrb[2].mxu0 %v270_v12 }
 0x25d   :  { %1457 = vmatpush3.bf16.msra.mxu0 %v1771_v5  ;;  %1251 = vmatprep.mubr.msk.f32.mxu0 %vm1713_vm0, %v1712_v1 }
 0x25e   :  { %1458 = vmatprep.subr.bf16.mxu0 %v1711_v0 }
 0x261   :  { %1460 = vmatpush3.bf16.msra.mxu0 %v1774_v7 }
 0x262   :  { %1461 = vmatprep.subr.bf16.mxu0 %v1711_v0 }
 0x265   :  { %1463 = vmatpush3.bf16.msra.mxu0 %v1780_v10 }
 0x266   :  { %1464 = vmatprep.subr.bf16.mxu0 %v1711_v0 }
 0x269   :  { %1466 = vmatpush3.bf16.msra.mxu0 %v1786_v13 }
 0x26a   :  { %1467 = vmatprep.subr.bf16.mxu0 %v1711_v0 }
 0x26d   :  { %1469 = vmatpush3.bf16.msra.mxu0 %v1792_v16 }
 0x26e   :  { %1470 = vmatprep.subr.bf16.mxu0 %v1711_v0 }
 0x271   :  { %1472 = vmatpush3.bf16.msra.mxu0 %v1798_v19 }
 0x272   :  { %1473 = vmatprep.subr.bf16.mxu0 %v1711_v0 }
 0x275   :  { %1475 = vmatpush3.bf16.msra.mxu0 %v1804_v22 }
 0x276   :  { %1476 = vmatprep.subr.bf16.mxu0 %v1711_v0 }
 0x279   :  { %1478 = vmatpush3.bf16.msra.mxu0 %v1810_v25 }
 0x27a   :  { %1503 = vmatprep.subr.bf16.mxu0 %v1711_v0 }
 0x32f   :  { %v339_v14 = vpop.f32.mrb[2].mxu0 }
 0x330   :  { %v346_v15 = vcombine.low %v339_v14, %v339_v14  ;;  %v1183_v17 = vpop.f32.mrb[3].mxu0 }
 0x332   :  { %v353_v18 = vrot.slane %v346_v15, %v1837_v32 }
 0x334   :  { %v354_v21 = vcombine.low %v353_v18, %v353_v18 }
 0x336   :  { %v356_v23 = vadd.f32 %v354_v21, %v344_v20 }
 0x338   :  { %v937_v24 = vmul.f32 -1.442695, %v356_v23 }
 0x33a   :  { %1575 = vpow2.f32 %v937_v24 }
 0x344   :  { %v1576_v26 = vpop.eup %1575 }
 0x345   :  { %v360_v27 = vadd.f32 1.0, %v1576_v26 }
 0x347   :  { %1577 = vrcp.f32 %v360_v27 }
 0x351   :  { %v1578_v28 = vpop.eup %1577 }
 0x352   :  { %v364_v29 = vrot.slane %v1578_v28, 2  ;;  %v367_v30 = vrot.slane %v1578_v28, 4  ;;  %v372_v35 = vrot.slane %v1578_v28, 6 }
 0x354   :  { %v366_v31 = vadd.f32 %v364_v29, %v266_v8  ;;  %v369_v33 = vmul.f32 %v1578_v28, %v367_v30 }
 0x356   :  { %v370_v34 = vadd.f32 %v369_v33, %v366_v31 }
 0x358   :  { %1579 = vtanh.f32 %v370_v34 }
 0x362   :  { %v1580_v36 = vpop.eup %1579 }
 0x363   :  { %v374_v37 = vadd.f32 %v1580_v36, %v372_v35  ;;  %v760_v36 = vld [vmem:[#allocation4 + $0x30] sm:$0xff] }
 0x365   :  { %376 = vst [vmem:[#allocation9 + $0x4] sm:$0x3] %v374_v37  ;;  %1217 = vmatmul.mubr.f32.vlgmr.msra.gmra.mrb[2].mxu1 %v374_v37 }
 0x366   :  { %1481 = vmatpush3.bf16.msra.mxu1 %v1771_v5  ;;  %1286 = vmatprep.mubr.msk.f32.mxu1 %vm1713_vm0, %v1712_v1 }
 0x367   :  { %1482 = vmatprep.subr.bf16.mxu1 %v1711_v0 }
 0x36a   :  { %1484 = vmatpush3.bf16.msra.mxu1 %v1774_v7 }
 0x36b   :  { %1485 = vmatprep.subr.bf16.mxu1 %v1711_v0 }
 0x36e   :  { %1487 = vmatpush3.bf16.msra.mxu1 %v1780_v10 }
 0x36f   :  { %1488 = vmatprep.subr.bf16.mxu1 %v1711_v0 }
 0x372   :  { %1490 = vmatpush3.bf16.msra.mxu1 %v1786_v13 }
 0x373   :  { %1491 = vmatprep.subr.bf16.mxu1 %v1711_v0 }
 0x376   :  { %1493 = vmatpush3.bf16.msra.mxu1 %v1792_v16 }
 0x377   :  { %1494 = vmatprep.subr.bf16.mxu1 %v1711_v0 }
 0x37a   :  { %1496 = vmatpush3.bf16.msra.mxu1 %v1798_v19 }
 0x37b   :  { %1497 = vmatprep.subr.bf16.mxu1 %v1711_v0 }
 0x37e   :  { %1499 = vmatpush3.bf16.msra.mxu1 %v1804_v22 }
 0x37f   :  { %1500 = vmatprep.subr.bf16.mxu1 %v1711_v0 }
 0x382   :  { %1502 = vmatpush3.bf16.msra.mxu1 %v1810_v25 }
 0x383   :  { %1527 = vmatprep.subr.bf16.mxu1 %v1711_v0 }
 0x438   :  { %v443_v38 = vpop.f32.mrb[2].mxu1 }
 0x439   :  { %v450_v39 = vcombine.low %v443_v38, %v443_v38  ;;  %v1218_v40 = vpop.f32.mrb[3].mxu1 }
 0x43b   :  { %v457_v41 = vrot.slane %v450_v39, %v1837_v32 }
 0x43d   :  { %v458_v43 = vcombine.low %v457_v41, %v457_v41 }
 0x43f   :  { %v460_v44 = vadd.f32 %v458_v43, %v448_v42 }
 0x441   :  { %v938_v45 = vmul.f32 -1.442695, %v460_v44 }
 0x443   :  { %1581 = vpow2.f32 %v938_v45 }
 0x44d   :  { %v1582_v46 = vpop.eup %1581 }
 0x44e   :  { %v464_v47 = vadd.f32 1.0, %v1582_v46 }
 0x450   :  { %1583 = vrcp.f32 %v464_v47 }
 0x45a   :  { %v1584_v48 = vpop.eup %1583 }
 0x45b   :  { %v468_v49 = vrot.slane %v1584_v48, 2  ;;  %v471_v50 = vrot.slane %v1584_v48, 4  ;;  %v476_v54 = vrot.slane %v1584_v48, 6 }
 0x45d   :  { %v470_v51 = vadd.f32 %v468_v49, %v370_v34  ;;  %v473_v52 = vmul.f32 %v1584_v48, %v471_v50 }
 0x45f   :  { %v474_v53 = vadd.f32 %v473_v52, %v470_v51 }
 0x461   :  { %1585 = vtanh.f32 %v474_v53 }
 0x46b   :  { %v1586_v55 = vpop.eup %1585 }
 0x46c   :  { %v478_v56 = vadd.f32 %v1586_v55, %v476_v54  ;;  %v864_v55 = vld [vmem:[#allocation4 + $0x38] sm:$0xff] }
 0x46e   :  { %480 = vst [vmem:[#allocation9 + $0x6] sm:$0x3] %v478_v56  ;;  %1252 = vmatmul.mubr.f32.vlgmr.msra.gmra.mrb[4].mxu0 %v478_v56 }
 0x46f   :  { %1505 = vmatpush3.bf16.msra.mxu0 %v1771_v5  ;;  %1321 = vmatprep.mubr.msk.f32.mxu0 %vm1713_vm0, %v1712_v1 }
 0x470   :  { %1506 = vmatprep.subr.bf16.mxu0 %v1711_v0 }
 0x473   :  { %1508 = vmatpush3.bf16.msra.mxu0 %v1774_v7 }
 0x474   :  { %1509 = vmatprep.subr.bf16.mxu0 %v1711_v0 }
 0x477   :  { %1511 = vmatpush3.bf16.msra.mxu0 %v1780_v10 }
 0x478   :  { %1512 = vmatprep.subr.bf16.mxu0 %v1711_v0 }
 0x47b   :  { %1514 = vmatpush3.bf16.msra.mxu0 %v1786_v13 }
 0x47c   :  { %1515 = vmatprep.subr.bf16.mxu0 %v1711_v0 }
 0x47f   :  { %1517 = vmatpush3.bf16.msra.mxu0 %v1792_v16 }
 0x480   :  { %1518 = vmatprep.subr.bf16.mxu0 %v1711_v0 }
 0x483   :  { %1520 = vmatpush3.bf16.msra.mxu0 %v1798_v19 }
 0x484   :  { %1521 = vmatprep.subr.bf16.mxu0 %v1711_v0 }
 0x487   :  { %1523 = vmatpush3.bf16.msra.mxu0 %v1804_v22 }
 0x488   :  { %1524 = vmatprep.subr.bf16.mxu0 %v1711_v0 }
 0x48b   :  { %1526 = vmatpush3.bf16.msra.mxu0 %v1810_v25 }
 0x541   :  { %v547_v57 = vpop.f32.mrb[4].mxu0 }
 0x542   :  { %v554_v58 = vcombine.low %v547_v57, %v547_v57  ;;  %v1253_v59 = vpop.f32.mrb[5].mxu0 }
 0x544   :  { %v561_v60 = vrot.slane %v554_v58, %v1837_v32 }
 0x546   :  { %v562_v62 = vcombine.low %v561_v60, %v561_v60 }
 0x548   :  { %v564_v63 = vadd.f32 %v562_v62, %v552_v61 }
 0x54a   :  { %v939_v2 = vmul.f32 -1.442695, %v564_v63 }
 0x54c   :  { %1587 = vpow2.f32 %v939_v2 }
 0x556   :  { %v1588_v3 = vpop.eup %1587 }
 0x557   :  { %v568_v4 = vadd.f32 1.0, %v1588_v3 }
 0x559   :  { %1589 = vrcp.f32 %v568_v4 }
 0x563   :  { %v1590_v6 = vpop.eup %1589 }
 0x564   :  { %v572_v8 = vrot.slane %v1590_v6, 2  ;;  %v575_v9 = vrot.slane %v1590_v6, 4  ;;  %v580_v15 = vrot.slane %v1590_v6, 6 }
 0x566   :  { %v574_v11 = vadd.f32 %v572_v8, %v474_v53  ;;  %v577_v12 = vmul.f32 %v1590_v6, %v575_v9 }
 0x568   :  { %v578_v14 = vadd.f32 %v577_v12, %v574_v11 }
 0x56a   :  { %1591 = vtanh.f32 %v578_v14 }
 0x574   :  { %v1592_v17 = vpop.eup %1591 }
 0x575   :  { %v582_v18 = vadd.f32 %v1592_v17, %v580_v15 }
 0x577   :  { %584 = vst [vmem:[#allocation9 + $0x8] sm:$0x3] %v582_v18  ;;  %1287 = vmatmul.mubr.f32.vlgmr.msra.gmra.mrb[4].mxu1 %v582_v18 }
 0x578   :  { %1529 = vmatpush3.bf16.msra.mxu1 %v1771_v5  ;;  %1356 = vmatprep.mubr.msk.f32.mxu1 %vm1713_vm0, %v1712_v1 }
 0x579   :  { %1530 = vmatprep.subr.bf16.mxu1 %v1711_v0 }
 0x57c   :  { %1532 = vmatpush3.bf16.msra.mxu1 %v1774_v7 }
 0x57d   :  { %1533 = vmatprep.subr.bf16.mxu1 %v1711_v0 }
 0x580   :  { %1535 = vmatpush3.bf16.msra.mxu1 %v1780_v10 }
 0x581   :  { %1536 = vmatprep.subr.bf16.mxu1 %v1711_v0 }
 0x584   :  { %1538 = vmatpush3.bf16.msra.mxu1 %v1786_v13  ;;  %v656_v13 = vld [vmem:[#allocation4 + $0x28] sm:$0xff] }
 0x585   :  { %1539 = vmatprep.subr.bf16.mxu1 %v1711_v0 }
 0x588   :  { %1541 = vmatpush3.bf16.msra.mxu1 %v1792_v16 }
 0x589   :  { %1542 = vmatprep.subr.bf16.mxu1 %v1711_v0 }
 0x58c   :  { %1544 = vmatpush3.bf16.msra.mxu1 %v1798_v19 }
 0x58d   :  { %1545 = vmatprep.subr.bf16.mxu1 %v1711_v0 }
 0x590   :  { %1547 = vmatpush3.bf16.msra.mxu1 %v1804_v22 }
 0x591   :  { %1548 = vmatprep.subr.bf16.mxu1 %v1711_v0 }
 0x594   :  { %1550 = vmatpush3.bf16.msra.mxu1 %v1810_v25 }
 0x64a   :  { %v651_v1 = vpop.f32.mrb[4].mxu1 }
 0x64b   :  { %v658_v5 = vcombine.low %v651_v1, %v651_v1  ;;  %v1288_v7 = vpop.f32.mrb[5].mxu1 }
 0x64d   :  { %v665_v10 = vrot.slane %v658_v5, %v1837_v32 }
 0x64f   :  { %v666_v20 = vcombine.low %v665_v10, %v665_v10 }
 0x651   :  { %v668_v16 = vadd.f32 %v666_v20, %v656_v13 }
 0x653   :  { %v940_v21 = vmul.f32 -1.442695, %v668_v16 }
 0x655   :  { %1593 = vpow2.f32 %v940_v21 }
 0x65f   :  { %v1594_v23 = vpop.eup %1593 }
 0x660   :  { %v672_v19 = vadd.f32 1.0, %v1594_v23 }
 0x662   :  { %1595 = vrcp.f32 %v672_v19 }
 0x66c   :  { %v1596_v24 = vpop.eup %1595 }
 0x66d   :  { %v676_v26 = vrot.slane %v1596_v24, 2  ;;  %v679_v22 = vrot.slane %v1596_v24, 4  ;;  %v684_v25 = vrot.slane %v1596_v24, 6 }
 0x66f   :  { %v678_v27 = vadd.f32 %v676_v26, %v578_v14  ;;  %v681_v0 = vmul.f32 %v1596_v24, %v679_v22 }
 0x671   :  { %v682_v28 = vadd.f32 %v681_v0, %v678_v27 }
 0x673   :  { %1597 = vtanh.f32 %v682_v28 }
 0x67d   :  { %v1598_v29 = vpop.eup %1597 }
 0x67e   :  { %v686_v30 = vadd.f32 %v1598_v29, %v684_v25 }
 0x680   :  { %688 = vst [vmem:[#allocation9 + $0xa] sm:$0x3] %v686_v30  ;;  %1322 = vmatmul.mubr.f32.vlgmr.msra.gmra.mrb[6].mxu0 %v686_v30 }
 0x753   :  { %v755_v31 = vpop.f32.mrb[6].mxu0 }
 0x754   :  { %v762_v33 = vcombine.low %v755_v31, %v755_v31  ;;  %v1323_v34 = vpop.f32.mrb[7].mxu0 }
 0x756   :  { %v769_v35 = vrot.slane %v762_v33, %v1837_v32 }
 0x758   :  { %v770_v37 = vcombine.low %v769_v35, %v769_v35 }
 0x75a   :  { %v772_v38 = vadd.f32 %v770_v37, %v760_v36 }
 0x75c   :  { %v941_v39 = vmul.f32 -1.442695, %v772_v38 }
 0x75e   :  { %1599 = vpow2.f32 %v941_v39 }
 0x768   :  { %v1600_v40 = vpop.eup %1599 }
 0x769   :  { %v776_v41 = vadd.f32 1.0, %v1600_v40 }
 0x76b   :  { %1601 = vrcp.f32 %v776_v41 }
 0x775   :  { %v1602_v42 = vpop.eup %1601 }
 0x776   :  { %v780_v43 = vrot.slane %v1602_v42, 2  ;;  %v783_v44 = vrot.slane %v1602_v42, 4  ;;  %v788_v48 = vrot.slane %v1602_v42, 6 }
 0x778   :  { %v782_v45 = vadd.f32 %v780_v43, %v682_v28  ;;  %v785_v46 = vmul.f32 %v1602_v42, %v783_v44 }
 0x77a   :  { %v786_v47 = vadd.f32 %v785_v46, %v782_v45 }
 0x77c   :  { %1603 = vtanh.f32 %v786_v47 }
 0x786   :  { %v1604_v49 = vpop.eup %1603 }
 0x787   :  { %v790_v50 = vadd.f32 %v1604_v49, %v788_v48 }
 0x789   :  { %792 = vst [vmem:[#allocation9 + $0xc] sm:$0x3] %v790_v50  ;;  %1357 = vmatmul.mubr.f32.vlgmr.msra.gmra.mrb[6].mxu1 %v790_v50 }
 0x85c   :  { %v859_v51 = vpop.f32.mrb[6].mxu1 }
 0x85d   :  { %v866_v52 = vcombine.low %v859_v51, %v859_v51  ;;  %v1358_v53 = vpop.f32.mrb[7].mxu1 }
 0x85f   :  { %v873_v54 = vrot.slane %v866_v52, %v1837_v32 }
 0x861   :  { %v874_v56 = vcombine.low %v873_v54, %v873_v54 }
 0x863   :  { %v876_v57 = vadd.f32 %v874_v56, %v864_v55 }
 0x865   :  { %v942_v58 = vmul.f32 -1.442695, %v876_v57 }
 0x867   :  { %1605 = vpow2.f32 %v942_v58 }
 0x871   :  { %v1606_v59 = vpop.eup %1605 }
 0x872   :  { %v880_v60 = vadd.f32 1.0, %v1606_v59 }
 0x874   :  { %1607 = vrcp.f32 %v880_v60 }
 0x87e   :  { %v1608_v61 = vpop.eup %1607 }
 0x87f   :  { %v884_v62 = vrot.slane %v1608_v61, 2  ;;  %v887_v63 = vrot.slane %v1608_v61, 4 }
 0x881   :  { %v889_v2 = vmul.f32 %v1608_v61, %v887_v63  ;;  %v886_v3 = vadd.f32 %v884_v62, %v786_v47 }
 0x883   :  { %v890_v4 = vadd.f32 %v889_v2, %v886_v3 }
 0x885   :  { %1609 = vtanh.f32 %v890_v4  ;;  %898 = vst [vmem:[#allocation3] sm:$0x3] %v890_v4  ;;  %902 = vst [vmem:[#allocation10] sm:$0x3] %v890_v4 }
 0x886   :  { %1666 = shalt.err (!%p1663_p6)
}
 0x887   :  { %s1667_s14 = scalar_lea.hbm %s1962_s3, 32 }
 0x888   :  { %p1668_p7 = scmp.ne.s32.totalorder %s1962_s3, %s1667_s14  ;;  %p1671_p8 = scmp.lt.u32.totalorder %s1667_s14, %s1962_s3 }
 0x88a   :  { %p1673_p9 = pnand %p1671_p8, %p1668_p7 }
 0x88c   :  { %1676 = shalt.err (!%p1673_p9)
}
 0x88d   :  { %924 = dma.vmem_to_hbm [thread:$0]  %s922_s10, 32, %s1962_s3, [#allocation11]   ;;  %v892_v32 = vrot.slane %v1608_v61, 6 }
 0x88e   :  { %s1716_s21 = smov [#allocation9]  }
 0x88f   :  { %s908_s22 = sshll.u32 %s1716_s21, 4  ;;  %v1610_v6 = vpop.eup %1609  ;;  %s909_s22 = int_to_ptr.vmem [resolvable:$true] %s908_s22 }
 0x890   :  { %v894_v8 = vadd.f32 %v1610_v6, %v892_v32  ;;  %s1677_s23 = scalar_lea.vmem %s909_s22, 256  ;;  %p1682_p11 = scmp.lt.s32.totalorder %s909_s22, %s909_s22 }
 0x891   :  { %p1678_p10 = scmp.ne.s32.totalorder %s909_s22, %s1677_s23  ;;  %p1683_p12 = scmp.lt.s32.totalorder %s1677_s23, %s1677_s23 }
 0x892   :  { %896 = vst [vmem:[#allocation9 + $0xe] sm:$0x3] %v894_v8  ;;  %897 = vst [vmem:[#allocation2] sm:$0x3] %v894_v8 }
 0x893   :  { %p1684_p13 = por %p1683_p12, %p1682_p11 }
 0x895   :  { %p1685_p0 = pnand %p1684_p13, %p1678_p10 }
 0x897   :  { %1688 = shalt.err (!%p1685_p0)
}
 0x898   :  { %s1689_s26 = scalar_lea.hbm %s1961_s2, 256 }
 0x899   :  { %p1690_p1 = scmp.ne.s32.totalorder %s1961_s2, %s1689_s26  ;;  %p1693_p2 = scmp.lt.u32.totalorder %s1689_s26, %s1961_s2 }
 0x89b   :  { %p1695_p3 = pnand %p1693_p2, %p1690_p1 }
 0x89d   :  { %1698 = shalt.err (!%p1695_p3)
}
 0x89e   :  { %s1717_s30 = smov 32   ;;  %s1718_s4 = smov 2  }
 0x89f   :  { %914 = dma.vmem_to_hbm [thread:$0]  %s909_s22, 256, %s1961_s2, [#allocation6], %s1717_s30, %s1717_s30, %s1718_s4  }
 0x8a0   :  { %1703 = dma.done.wait [#allocation6], 256  }
 0x8a1   :  { %1704 = vsyncadd [#allocation6], 4294967040 }
 0x8a2   :  { %1705 = dma.done.wait [#allocation11], 32  }
 0x8a3   :  { %1706 = vsyncadd [#allocation11], 4294967264 }
 0x8a4   :  { %931 = vsyncpa [#allocation5], 1 }
 0x8a5   :  { %932 = vsyncpa [#allocation8], 1 }
 0x8a6   :  { %933 = vsyncpa [#allocation6], 1 }
 0x8a7   :  { %934 = vsyncpa [#allocation11], 1 }

// kernel: dlstm_forward.7
= control target key start
LH: loop header
LB: loop body
LE: loop exit
PB: predicated region body
PF: predicated region fallthrough
CT: control target
= control target key end

     0   :  { %9 = vsyncpa [#allocation5], 0  ;;  %s2760_s0 = inlined_call_operand.hbm [shape: f32[8,2,512], index: 0, kind: input, shape index: {}]   ;;  %s2761_s1 = inlined_call_operand.hbm [shape: f32[128,512], index: 1, kind: input, shape index: {}]   ;;  %s2762_s2 = inlined_call_operand.hbm [shape: f32[8,2,128], index: 2, kind: output, shape index: {0}]   ;;  %s2763_s3 = inlined_call_operand.hbm [shape: f32[2,128], index: 3, kind: output, shape index: {1}]  }
   0x1   :  { %10 = vsyncpa [#allocation8], 0 }
   0x2   :  { %11 = vsyncpa [#allocation6], 0 }
   0x3   :  { %12 = vsyncpa [#allocation11], 0  ;;  %s2322_s12 = smov [#allocation4]   ;;  %s2226_s16 = scalar_lea.hbm %s2760_s0, 1024 }
   0x4   :  { %s18_s13 = sshll.u32 %s2322_s12, 4  ;;  %p2227_p0 = scmp.ne.s32.totalorder %s2760_s0, %s2226_s16  ;;  %s19_s13 = int_to_ptr.vmem [resolvable:$true] %s18_s13 }
   0x5   :  { %p2230_p1 = scmp.lt.u32.totalorder %s2226_s16, %s2760_s0 }
   0x7   :  { %p2232_p2 = pnand %p2230_p1, %p2227_p0 }
   0x9   :  { %2235 = shalt.err (!%p2232_p2)
}
   0xa   :  { %s2236_s21 = scalar_lea.vmem %s19_s13, 1024  ;;  %p2241_p4 = scmp.lt.s32.totalorder %s19_s13, %s19_s13 }
   0xb   :  { %p2237_p3 = scmp.ne.s32.totalorder %s19_s13, %s2236_s21  ;;  %p2242_p5 = scmp.lt.s32.totalorder %s2236_s21, %s2236_s21 }
   0xd   :  { %p2243_p6 = por %p2242_p5, %p2241_p4 }
   0xf   :  { %p2244_p7 = pnand %p2243_p6, %p2237_p3 }
  0x11   :  { %2247 = shalt.err (!%p2244_p7)
}
  0x12   :  { %s2323_s22 = smov 128   ;;  %s2324_s23 = smov 8  }
  0x13   :  { %24 = dma.hbm_to_vmem [thread:$0]  %s2760_s0, 1024, %s19_s13, [#allocation5], %s2323_s22, %s2323_s22, %s2324_s23  }
  0x14   :  { %s2325_s26 = smov [#allocation7]   ;;  %s2248_s30 = scalar_lea.hbm %s2761_s1, 8192 }
  0x15   :  { %s30_s27 = sshll.u32 %s2325_s26, 4  ;;  %p2249_p8 = scmp.ne.s32.totalorder %s2761_s1, %s2248_s30  ;;  %s31_s27 = int_to_ptr.vmem [resolvable:$true] %s30_s27 }
  0x16   :  { %p2252_p9 = scmp.lt.u32.totalorder %s2248_s30, %s2761_s1 }
  0x18   :  { %p2254_p10 = pnand %p2252_p9, %p2249_p8 }
  0x1a   :  { %2257 = shalt.err (!%p2254_p10)
}
  0x1b   :  { %s2258_s8 = scalar_lea.vmem %s31_s27, 8192  ;;  %p2263_p12 = scmp.lt.s32.totalorder %s31_s27, %s31_s27 }
  0x1c   :  { %p2259_p11 = scmp.ne.s32.totalorder %s31_s27, %s2258_s8  ;;  %p2264_p13 = scmp.lt.s32.totalorder %s2258_s8, %s2258_s8 }
  0x1e   :  { %p2265_p0 = por %p2264_p13, %p2263_p12 }
  0x20   :  { %p2266_p1 = pnand %p2265_p0, %p2259_p11 }
  0x22   :  { %2269 = shalt.err (!%p2266_p1)
}
  0x23   :  { %s2326_s0 = smov 512   ;;  %s2327_s9 = smov 32  }
  0x24   :  { %36 = dma.hbm_to_vmem [thread:$0]  %s2761_s1, 8192, %s31_s27, [#allocation8], %s2326_s0, %s2326_s0, %s2327_s9  }
  0x25   :  { %2314 = dma.done.wait [#allocation5], 1024  }
  0x26   :  { %2315 = vsyncadd [#allocation5], 4294966272 }
  0x27   :  { %2316 = dma.done.wait [#allocation8], 8192  }
  0x28   :  { %2317 = vsyncadd [#allocation8], 4294959104  ;;  %v2328_v0 = vmov 0.0   ;;  %v50_v1 = vld [vmem:[#allocation7 + $0x8] sm:$0xff]  ;;  %v52_v3 = vld [vmem:[#allocation7 + $0x18] sm:$0xff]  ;;  %s2330_s1 = smov [#allocation10]  }
  0x29   :  { %179 = vmatprep.mubr.f32.mxu0 %v2328_v0  ;;  %47 = vst [vmem:[#allocation2] sm:$0x3] %v2328_v0  ;;  %48 = vst [vmem:[#allocation3] sm:$0x3] %v2328_v0  ;;  %250 = vmatprep.mubr.f32.mxu1 %v2328_v0  ;;  %v54_v2 = vld [vmem:[#allocation7 + $0x28] sm:$0xff]  ;;  %v56_v5 = vld [vmem:[#allocation7 + $0x38] sm:$0xff] }
  0x2a   :  { %v2382_v4 = vpack.c.bf16 %v54_v2, %v50_v1  ;;  %v49_v6 = vld [vmem:[#allocation7] sm:$0xff]  ;;  %v2384_v8 = vpack.c.bf16 %v56_v5, %v52_v3  ;;  %v51_v10 = vld [vmem:[#allocation7 + $0x10] sm:$0xff]  ;;  %v58_v12 = vld [vmem:[#allocation7 + $0x48] sm:$0xff]  ;;  %s1633_s12 = sshll.u32 %s2330_s1, 4  ;;  %s1634_s12 = int_to_ptr.vmem [resolvable:$true] %s1633_s12 }
  0x2b   :  { %v53_v7 = vld [vmem:[#allocation7 + $0x20] sm:$0xff]  ;;  %v55_v11 = vld [vmem:[#allocation7 + $0x30] sm:$0xff]  ;;  %v62_v14 = vld [vmem:[#allocation7 + $0x68] sm:$0xff]  ;;  %s2270_s13 = scalar_lea.vmem %s1634_s12, 32  ;;  %p2275_p3 = scmp.lt.s32.totalorder %s1634_s12, %s1634_s12 }
  0x2c   :  { %v2386_v9 = vpack.c.bf16 %v53_v7, %v49_v6  ;;  %1656 = vmatprep.subr.bf16.mxu0 %v2382_v4  ;;  %v2389_v13 = vpack.c.bf16 %v55_v11, %v51_v10  ;;  %v60_v15 = vld [vmem:[#allocation7 + $0x58] sm:$0xff]  ;;  %1688 = vmatprep.subr.bf16.mxu1 %v2384_v8  ;;  %v2393_v17 = vpack.c.bf16 %v62_v14, %v58_v12  ;;  %v57_v19 = vld [vmem:[#allocation7 + $0x40] sm:$0xff]  ;;  %v59_v21 = vld [vmem:[#allocation7 + $0x50] sm:$0xff]  ;;  %p2271_p2 = scmp.ne.s32.totalorder %s1634_s12, %s2270_s13  ;;  %p2276_p4 = scmp.lt.s32.totalorder %s2270_s13, %s2270_s13 }
  0x2d   :  { %v64_v16 = vld [vmem:[#allocation7 + $0x78] sm:$0xff]  ;;  %v61_v20 = vld [vmem:[#allocation7 + $0x60] sm:$0xff]  ;;  %v63_v23 = vld [vmem:[#allocation7 + $0x70] sm:$0xff] }
  0x2e   :  { %1658 = vmatpush1.bf16.msra.mxu0 %v2386_v9  ;;  %v2395_v18 = vpack.c.bf16 %v64_v16, %v60_v15  ;;  %1690 = vmatpush1.bf16.msra.mxu1 %v2389_v13  ;;  %v2398_v22 = vpack.c.bf16 %v61_v20, %v57_v19  ;;  %v66_v24 = vld [vmem:[#allocation7 + $0x88] sm:$0xff]  ;;  %v2402_v26 = vpack.c.bf16 %v63_v23, %v59_v21  ;;  %v68_v28 = vld [vmem:[#allocation7 + $0x98] sm:$0xff]  ;;  %v65_v30 = vld [vmem:[#allocation7 + $0x80] sm:$0xff]  ;;  %p2277_p5 = por %p2276_p4, %p2275_p3 }
  0x2f   :  { %v70_v25 = vld [vmem:[#allocation7 + $0xa8] sm:$0xff]  ;;  %1660 = vmatprep.subr.bf16.mxu0 %v2393_v17  ;;  %v72_v29 = vld [vmem:[#allocation7 + $0xb8] sm:$0xff]  ;;  %v69_v32 = vld [vmem:[#allocation7 + $0xa0] sm:$0xff] }
  0x30   :  { %1692 = vmatprep.subr.bf16.mxu1 %v2395_v18  ;;  %v2404_v27 = vpack.c.bf16 %v70_v25, %v66_v24  ;;  %v2406_v31 = vpack.c.bf16 %v72_v29, %v68_v28  ;;  %v67_v33 = vld [vmem:[#allocation7 + $0x90] sm:$0xff]  ;;  %v2409_v35 = vpack.c.bf16 %v69_v32, %v65_v30  ;;  %v74_v36 = vld [vmem:[#allocation7 + $0xc8] sm:$0xff]  ;;  %v76_v38 = vld [vmem:[#allocation7 + $0xd8] sm:$0xff]  ;;  %p2278_p6 = pnand %p2277_p5, %p2271_p2 }
  0x31   :  { %v71_v34 = vld [vmem:[#allocation7 + $0xb0] sm:$0xff]  ;;  %v78_v37 = vld [vmem:[#allocation7 + $0xe8] sm:$0xff]  ;;  %v80_v41 = vld [vmem:[#allocation7 + $0xf8] sm:$0xff] }
  0x32   :  { %1662 = vmatpush1.bf16.msra.mxu0 %v2398_v22  ;;  %1694 = vmatpush1.bf16.msra.mxu1 %v2402_v26  ;;  %v2413_v39 = vpack.c.bf16 %v71_v34, %v67_v33  ;;  %v2415_v40 = vpack.c.bf16 %v78_v37, %v74_v36  ;;  %v73_v42 = vld [vmem:[#allocation7 + $0xc0] sm:$0xff]  ;;  %v2418_v44 = vpack.c.bf16 %v80_v41, %v76_v38  ;;  %v75_v45 = vld [vmem:[#allocation7 + $0xd0] sm:$0xff]  ;;  %v82_v47 = vld [vmem:[#allocation7 + $0x108] sm:$0xff] }
  0x33   :  { %1664 = vmatprep.subr.bf16.mxu0 %v2404_v27  ;;  %v77_v43 = vld [vmem:[#allocation7 + $0xe0] sm:$0xff]  ;;  %1696 = vmatprep.subr.bf16.mxu1 %v2406_v31  ;;  %v79_v46 = vld [vmem:[#allocation7 + $0xf0] sm:$0xff]  ;;  %v86_v48 = vld [vmem:[#allocation7 + $0x128] sm:$0xff] }
  0x34   :  { %v84_v49 = vld [vmem:[#allocation7 + $0x118] sm:$0xff]  ;;  %v2421_v51 = vpack.c.bf16 %v77_v43, %v73_v42  ;;  %v2425_v52 = vpack.c.bf16 %v79_v46, %v75_v45  ;;  %v2427_v53 = vpack.c.bf16 %v86_v48, %v82_v47  ;;  %v81_v54 = vld [vmem:[#allocation7 + $0x100] sm:$0xff]  ;;  %v83_v56 = vld [vmem:[#allocation7 + $0x110] sm:$0xff] }
  0x35   :  { %v88_v50 = vld [vmem:[#allocation7 + $0x138] sm:$0xff]  ;;  %v85_v55 = vld [vmem:[#allocation7 + $0x120] sm:$0xff]  ;;  %v87_v58 = vld [vmem:[#allocation7 + $0x130] sm:$0xff] }
  0x36   :  { %1666 = vmatpush1.bf16.msra.mxu0 %v2409_v35  ;;  %1698 = vmatpush1.bf16.msra.mxu1 %v2413_v39  ;;  %v2430_v57 = vpack.c.bf16 %v88_v50, %v84_v49  ;;  %v90_v59 = vld [vmem:[#allocation7 + $0x148] sm:$0xff]  ;;  %v92_v61 = vld [vmem:[#allocation7 + $0x158] sm:$0xff]  ;;  %v2433_v63 = vpack.c.bf16 %v85_v55, %v81_v54  ;;  %v2437_v1 = vpack.c.bf16 %v87_v58, %v83_v56  ;;  %v89_v3 = vld [vmem:[#allocation7 + $0x140] sm:$0xff]  ;;  %v2329_v49 = vmov 1983009808  }
  0x37   :  { %1668 = vmatprep.subr.bf16.mxu0 %v2415_v40  ;;  %1700 = vmatprep.subr.bf16.mxu1 %v2418_v44  ;;  %v94_v60 = vld [vmem:[#allocation7 + $0x168] sm:$0xff]  ;;  %v96_v62 = vld [vmem:[#allocation7 + $0x178] sm:$0xff]  ;;  %v93_v5 = vld [vmem:[#allocation7 + $0x160] sm:$0xff]  ;;  %v265_v50 = vunpack.c.l.s4 %v2329_v49  ;;  %v267_v54 = vlaneseq }
  0x38   :  { %v2439_v2 = vpack.c.bf16 %v94_v60, %v90_v59  ;;  %v91_v6 = vld [vmem:[#allocation7 + $0x150] sm:$0xff]  ;;  %v2442_v7 = vpack.c.bf16 %v96_v62, %v92_v61  ;;  %v98_v11 = vld [vmem:[#allocation7 + $0x188] sm:$0xff]  ;;  %v100_v14 = vld [vmem:[#allocation7 + $0x198] sm:$0xff]  ;;  %v2445_v16 = vpack.c.bf16 %v93_v5, %v89_v3 }
  0x39   :  { %v95_v10 = vld [vmem:[#allocation7 + $0x170] sm:$0xff]  ;;  %v102_v12 = vld [vmem:[#allocation7 + $0x1a8] sm:$0xff]  ;;  %v104_v15 = vld [vmem:[#allocation7 + $0x1b8] sm:$0xff]  ;;  %v266_v55 = vunpack.c.0.s8 %v265_v50  ;;  %v268_v56 = vshrl.u32 %v267_v54, 7 }
  0x3a   :  { %1670 = vmatpush1.bf16.msra.mxu0 %v2421_v51  ;;  %1702 = vmatpush1.bf16.msra.mxu1 %v2425_v52  ;;  %v2449_v19 = vpack.c.bf16 %v95_v10, %v91_v6  ;;  %v2451_v20 = vpack.c.bf16 %v102_v12, %v98_v11  ;;  %v97_v21 = vld [vmem:[#allocation7 + $0x180] sm:$0xff]  ;;  %v99_v24 = vld [vmem:[#allocation7 + $0x190] sm:$0xff]  ;;  %v2454_v25 = vpack.c.bf16 %v104_v15, %v100_v14  ;;  %v106_v29 = vld [vmem:[#allocation7 + $0x1c8] sm:$0xff] }
  0x3b   :  { %1672 = vmatprep.subr.bf16.mxu0 %v2427_v53  ;;  %1704 = vmatprep.subr.bf16.mxu1 %v2430_v57  ;;  %v101_v23 = vld [vmem:[#allocation7 + $0x1a0] sm:$0xff]  ;;  %v103_v28 = vld [vmem:[#allocation7 + $0x1b0] sm:$0xff]  ;;  %v110_v30 = vld [vmem:[#allocation7 + $0x1e8] sm:$0xff]  ;;  %v2514_v59 = vsub.s32 %v266_v55, %v268_v56 }
  0x3c   :  { %v108_v32 = vld [vmem:[#allocation7 + $0x1d8] sm:$0xff]  ;;  %v2457_v34 = vpack.c.bf16 %v101_v23, %v97_v21  ;;  %v2461_v36 = vpack.c.bf16 %v103_v28, %v99_v24  ;;  %v2463_v37 = vpack.c.bf16 %v110_v30, %v106_v29  ;;  %v105_v38 = vld [vmem:[#allocation7 + $0x1c0] sm:$0xff]  ;;  %v107_v43 = vld [vmem:[#allocation7 + $0x1d0] sm:$0xff] }
  0x3d   :  { %v112_v33 = vld [vmem:[#allocation7 + $0x1f8] sm:$0xff]  ;;  %v109_v41 = vld [vmem:[#allocation7 + $0x1e0] sm:$0xff]  ;;  %v111_v45 = vld [vmem:[#allocation7 + $0x1f0] sm:$0xff] }
  0x3e   :  { %1674 = vmatpush1.bf16.msra.mxu0 %v2433_v63  ;;  %1706 = vmatpush1.bf16.msra.mxu1 %v2437_v1  ;;  %v2466_v42 = vpack.c.bf16 %v112_v33, %v108_v32  ;;  %v2469_v46 = vpack.c.bf16 %v109_v41, %v105_v38  ;;  %v2473_v47 = vpack.c.bf16 %v111_v45, %v107_v43  ;;  %v113_v48 = vld [vmem:[#allocation2] sm:$0x3]  ;;  %v257_v11 = vld [vmem:[#allocation4] sm:$0xff]  ;;  %v114_v28 = vld [vmem:[#allocation3] sm:$0x3] }
  0x3f   :  { %1676 = vmatprep.subr.bf16.mxu0 %v2439_v2  ;;  %1708 = vmatprep.subr.bf16.mxu1 %v2442_v7 }
  0x42   :  { %1678 = vmatpush1.bf16.msra.mxu0 %v2445_v16  ;;  %1710 = vmatpush1.bf16.msra.mxu1 %v2449_v19 }
  0x43   :  { %1680 = vmatprep.subr.bf16.mxu0 %v2451_v20  ;;  %1712 = vmatprep.subr.bf16.mxu1 %v2454_v25 }
  0x46   :  { %1682 = vmatpush1.bf16.msra.mxu0 %v2457_v34  ;;  %1714 = vmatpush1.bf16.msra.mxu1 %v2461_v36 }
  0x47   :  { %1684 = vmatprep.subr.bf16.mxu0 %v2463_v37  ;;  %1716 = vmatprep.subr.bf16.mxu1 %v2466_v42 }
  0x4a   :  { %1686 = vmatpush1.bf16.msra.mxu0 %v2469_v46  ;;  %1718 = vmatpush1.bf16.msra.mxu1 %v2473_v47 }
  0x4b   :  { %1720 = vmatprep.subr.bf16.mxu0 %v2382_v4  ;;  %1752 = vmatprep.subr.bf16.mxu1 %v2384_v8 }
  0x4d   :  { %180 = vmatmul.mubr.f32.vlgmr.msra.gmra.mrb[0].mxu0 %v113_v48  ;;  %251 = vmatmul.mubr.f32.vlgmr.msra.gmra.mrb[0].mxu1 %v113_v48 }
  0x4e   :  { %1722 = vmatpush1.bf16.msra.mxu0 %v2386_v9  ;;  %1754 = vmatpush1.bf16.msra.mxu1 %v2389_v13 }
  0x4f   :  { %1724 = vmatprep.subr.bf16.mxu0 %v2393_v17  ;;  %1756 = vmatprep.subr.bf16.mxu1 %v2395_v18 }
  0x50   :  { %364 = vmatprep.mubr.f32.mxu0 %v2328_v0  ;;  %435 = vmatprep.mubr.f32.mxu1 %v2328_v0 }
  0x52   :  { %1726 = vmatpush1.bf16.msra.mxu0 %v2398_v22  ;;  %1758 = vmatpush1.bf16.msra.mxu1 %v2402_v26 }
  0x53   :  { %1728 = vmatprep.subr.bf16.mxu0 %v2404_v27  ;;  %1760 = vmatprep.subr.bf16.mxu1 %v2406_v31 }
  0x56   :  { %1730 = vmatpush1.bf16.msra.mxu0 %v2409_v35  ;;  %1762 = vmatpush1.bf16.msra.mxu1 %v2413_v39 }
  0x57   :  { %1732 = vmatprep.subr.bf16.mxu0 %v2415_v40  ;;  %1764 = vmatprep.subr.bf16.mxu1 %v2418_v44 }
  0x5a   :  { %1734 = vmatpush1.bf16.msra.mxu0 %v2421_v51  ;;  %1766 = vmatpush1.bf16.msra.mxu1 %v2425_v52 }
  0x5b   :  { %1736 = vmatprep.subr.bf16.mxu0 %v2427_v53  ;;  %1768 = vmatprep.subr.bf16.mxu1 %v2430_v57 }
  0x5e   :  { %1738 = vmatpush1.bf16.msra.mxu0 %v2433_v63  ;;  %1770 = vmatpush1.bf16.msra.mxu1 %v2437_v1 }
  0x5f   :  { %1740 = vmatprep.subr.bf16.mxu0 %v2439_v2  ;;  %1772 = vmatprep.subr.bf16.mxu1 %v2442_v7 }
  0x62   :  { %1742 = vmatpush1.bf16.msra.mxu0 %v2445_v16  ;;  %1774 = vmatpush1.bf16.msra.mxu1 %v2449_v19 }
  0x63   :  { %1744 = vmatprep.subr.bf16.mxu0 %v2451_v20  ;;  %1776 = vmatprep.subr.bf16.mxu1 %v2454_v25 }
  0x66   :  { %1746 = vmatpush1.bf16.msra.mxu0 %v2457_v34  ;;  %1778 = vmatpush1.bf16.msra.mxu1 %v2461_v36 }
  0x67   :  { %1748 = vmatprep.subr.bf16.mxu0 %v2463_v37  ;;  %1780 = vmatprep.subr.bf16.mxu1 %v2466_v42 }
  0x6a   :  { %1750 = vmatpush1.bf16.msra.mxu0 %v2469_v46  ;;  %1782 = vmatpush1.bf16.msra.mxu1 %v2473_v47 }
  0x6b   :  { %1784 = vmatprep.subr.bf16.mxu0 %v2382_v4  ;;  %1816 = vmatprep.subr.bf16.mxu1 %v2384_v8 }
 0x120   :  { %v181_v58 = vpop.f32.mrb[0].mxu0  ;;  %v252_v60 = vpop.f32.mrb[0].mxu1 }
 0x121   :  { %v183_v61 = vpop.f32.mrb[1].mxu0  ;;  %v254_v3 = vpop.f32.mrb[1].mxu1 }
 0x122   :  { %v262_v62 = vcombine.low %v181_v58, %v183_v61  ;;  %v263_v5 = vcombine.low %v252_v60, %v254_v3  ;;  %v443_v61 = vld [vmem:[#allocation4 + $0x8] sm:$0xff] }
 0x124   :  { %v270_v6 = vrot.slane %v262_v62, %v2514_v59  ;;  %v277_v10 = vrot.slane %v263_v5, %v2514_v59 }
 0x126   :  { %v278_v12 = vcombine.low %v270_v6, %v277_v10 }
 0x128   :  { %v280_v14 = vadd.f32 %v278_v12, %v257_v11 }
 0x12a   :  { %v1647_v15 = vmul.f32 -1.442695, %v280_v14 }
 0x12c   :  { %2178 = vpow2.f32 %v1647_v15 }
 0x136   :  { %v2179_v21 = vpop.eup %2178 }
 0x137   :  { %v284_v23 = vadd.f32 1.0, %v2179_v21 }
 0x139   :  { %2180 = vrcp.f32 %v284_v23 }
 0x143   :  { %v2181_v24 = vpop.eup %2180 }
 0x144   :  { %v288_v29 = vrot.slane %v2181_v24, 2  ;;  %v291_v30 = vrot.slane %v2181_v24, 4  ;;  %v296_v41 = vrot.slane %v2181_v24, 6 }
 0x146   :  { %v290_v32 = vadd.f32 %v288_v29, %v114_v28  ;;  %v293_v33 = vmul.f32 %v2181_v24, %v291_v30 }
 0x148   :  { %v294_v38 = vadd.f32 %v293_v33, %v290_v32 }
 0x14a   :  { %2182 = vtanh.f32 %v294_v38 }
 0x154   :  { %v2183_v43 = vpop.eup %2182 }
 0x155   :  { %v298_v45 = vadd.f32 %v2183_v43, %v296_v41 }
 0x157   :  { %299 = vst [vmem:[#allocation9] sm:$0x3] %v298_v45  ;;  %365 = vmatmul.mubr.f32.vlgmr.msra.gmra.mrb[2].mxu0 %v298_v45  ;;  %436 = vmatmul.mubr.f32.vlgmr.msra.gmra.mrb[2].mxu1 %v298_v45 }
 0x158   :  { %1786 = vmatpush1.bf16.msra.mxu0 %v2386_v9  ;;  %1818 = vmatpush1.bf16.msra.mxu1 %v2389_v13 }
 0x159   :  { %1788 = vmatprep.subr.bf16.mxu0 %v2393_v17  ;;  %1820 = vmatprep.subr.bf16.mxu1 %v2395_v18 }
 0x15a   :  { %551 = vmatprep.mubr.f32.mxu0 %v2328_v0  ;;  %622 = vmatprep.mubr.f32.mxu1 %v2328_v0 }
 0x15c   :  { %1790 = vmatpush1.bf16.msra.mxu0 %v2398_v22  ;;  %1822 = vmatpush1.bf16.msra.mxu1 %v2402_v26 }
 0x15d   :  { %1792 = vmatprep.subr.bf16.mxu0 %v2404_v27  ;;  %1824 = vmatprep.subr.bf16.mxu1 %v2406_v31 }
 0x160   :  { %1794 = vmatpush1.bf16.msra.mxu0 %v2409_v35  ;;  %1826 = vmatpush1.bf16.msra.mxu1 %v2413_v39 }
 0x161   :  { %1796 = vmatprep.subr.bf16.mxu0 %v2415_v40  ;;  %1828 = vmatprep.subr.bf16.mxu1 %v2418_v44 }
 0x164   :  { %1798 = vmatpush1.bf16.msra.mxu0 %v2421_v51  ;;  %1830 = vmatpush1.bf16.msra.mxu1 %v2425_v52 }
 0x165   :  { %1800 = vmatprep.subr.bf16.mxu0 %v2427_v53  ;;  %1832 = vmatprep.subr.bf16.mxu1 %v2430_v57 }
 0x168   :  { %1802 = vmatpush1.bf16.msra.mxu0 %v2433_v63  ;;  %1834 = vmatpush1.bf16.msra.mxu1 %v2437_v1 }
 0x169   :  { %1804 = vmatprep.subr.bf16.mxu0 %v2439_v2  ;;  %1836 = vmatprep.subr.bf16.mxu1 %v2442_v7 }
 0x16c   :  { %1806 = vmatpush1.bf16.msra.mxu0 %v2445_v16  ;;  %1838 = vmatpush1.bf16.msra.mxu1 %v2449_v19 }
 0x16d   :  { %1808 = vmatprep.subr.bf16.mxu0 %v2451_v20  ;;  %1840 = vmatprep.subr.bf16.mxu1 %v2454_v25 }
 0x170   :  { %1810 = vmatpush1.bf16.msra.mxu0 %v2457_v34  ;;  %1842 = vmatpush1.bf16.msra.mxu1 %v2461_v36 }
 0x171   :  { %1812 = vmatprep.subr.bf16.mxu0 %v2463_v37  ;;  %1844 = vmatprep.subr.bf16.mxu1 %v2466_v42 }
 0x174   :  { %1814 = vmatpush1.bf16.msra.mxu0 %v2469_v46  ;;  %1846 = vmatpush1.bf16.msra.mxu1 %v2473_v47 }
 0x175   :  { %1848 = vmatprep.subr.bf16.mxu0 %v2382_v4  ;;  %1880 = vmatprep.subr.bf16.mxu1 %v2384_v8 }
 0x22a   :  { %v366_v48 = vpop.f32.mrb[2].mxu0  ;;  %v437_v49 = vpop.f32.mrb[2].mxu1 }
 0x22b   :  { %v368_v50 = vpop.f32.mrb[3].mxu0  ;;  %v439_v54 = vpop.f32.mrb[3].mxu1 }
 0x22c   :  { %v448_v55 = vcombine.low %v366_v48, %v368_v50  ;;  %v449_v56 = vcombine.low %v437_v49, %v439_v54  ;;  %v630_v49 = vld [vmem:[#allocation4 + $0x10] sm:$0xff] }
 0x22e   :  { %v456_v58 = vrot.slane %v448_v55, %v2514_v59  ;;  %v463_v60 = vrot.slane %v449_v56, %v2514_v59 }
 0x230   :  { %v464_v62 = vcombine.low %v456_v58, %v463_v60 }
 0x232   :  { %v466_v3 = vadd.f32 %v464_v62, %v443_v61 }
 0x234   :  { %v1648_v5 = vmul.f32 -1.442695, %v466_v3 }
 0x236   :  { %2184 = vpow2.f32 %v1648_v5 }
 0x240   :  { %v2185_v6 = vpop.eup %2184 }
 0x241   :  { %v470_v10 = vadd.f32 1.0, %v2185_v6 }
 0x243   :  { %2186 = vrcp.f32 %v470_v10 }
 0x24d   :  { %v2187_v11 = vpop.eup %2186 }
 0x24e   :  { %v474_v12 = vrot.slane %v2187_v11, 2  ;;  %v477_v14 = vrot.slane %v2187_v11, 4  ;;  %v482_v24 = vrot.slane %v2187_v11, 6 }
 0x250   :  { %v476_v15 = vadd.f32 %v474_v12, %v294_v38  ;;  %v479_v21 = vmul.f32 %v2187_v11, %v477_v14 }
 0x252   :  { %v480_v23 = vadd.f32 %v479_v21, %v476_v15 }
 0x254   :  { %2188 = vtanh.f32 %v480_v23 }
 0x25e   :  { %v2189_v28 = vpop.eup %2188 }
 0x25f   :  { %v484_v29 = vadd.f32 %v2189_v28, %v482_v24 }
 0x261   :  { %486 = vst [vmem:[#allocation9 + $0x2] sm:$0x3] %v484_v29  ;;  %552 = vmatmul.mubr.f32.vlgmr.msra.gmra.mrb[4].mxu0 %v484_v29  ;;  %623 = vmatmul.mubr.f32.vlgmr.msra.gmra.mrb[4].mxu1 %v484_v29 }
 0x262   :  { %1850 = vmatpush1.bf16.msra.mxu0 %v2386_v9  ;;  %1882 = vmatpush1.bf16.msra.mxu1 %v2389_v13 }
 0x263   :  { %1852 = vmatprep.subr.bf16.mxu0 %v2393_v17  ;;  %1884 = vmatprep.subr.bf16.mxu1 %v2395_v18 }
 0x264   :  { %738 = vmatprep.mubr.f32.mxu0 %v2328_v0  ;;  %809 = vmatprep.mubr.f32.mxu1 %v2328_v0 }
 0x266   :  { %1854 = vmatpush1.bf16.msra.mxu0 %v2398_v22  ;;  %1886 = vmatpush1.bf16.msra.mxu1 %v2402_v26 }
 0x267   :  { %1856 = vmatprep.subr.bf16.mxu0 %v2404_v27  ;;  %1888 = vmatprep.subr.bf16.mxu1 %v2406_v31 }
 0x26a   :  { %1858 = vmatpush1.bf16.msra.mxu0 %v2409_v35  ;;  %1890 = vmatpush1.bf16.msra.mxu1 %v2413_v39 }
 0x26b   :  { %1860 = vmatprep.subr.bf16.mxu0 %v2415_v40  ;;  %1892 = vmatprep.subr.bf16.mxu1 %v2418_v44 }
 0x26e   :  { %1862 = vmatpush1.bf16.msra.mxu0 %v2421_v51  ;;  %1894 = vmatpush1.bf16.msra.mxu1 %v2425_v52 }
 0x26f   :  { %1864 = vmatprep.subr.bf16.mxu0 %v2427_v53  ;;  %1896 = vmatprep.subr.bf16.mxu1 %v2430_v57 }
 0x272   :  { %1866 = vmatpush1.bf16.msra.mxu0 %v2433_v63  ;;  %1898 = vmatpush1.bf16.msra.mxu1 %v2437_v1 }
 0x273   :  { %1868 = vmatprep.subr.bf16.mxu0 %v2439_v2  ;;  %1900 = vmatprep.subr.bf16.mxu1 %v2442_v7 }
 0x276   :  { %1870 = vmatpush1.bf16.msra.mxu0 %v2445_v16  ;;  %1902 = vmatpush1.bf16.msra.mxu1 %v2449_v19 }
 0x277   :  { %1872 = vmatprep.subr.bf16.mxu0 %v2451_v20  ;;  %1904 = vmatprep.subr.bf16.mxu1 %v2454_v25 }
 0x27a   :  { %1874 = vmatpush1.bf16.msra.mxu0 %v2457_v34  ;;  %1906 = vmatpush1.bf16.msra.mxu1 %v2461_v36 }
 0x27b   :  { %1876 = vmatprep.subr.bf16.mxu0 %v2463_v37  ;;  %1908 = vmatprep.subr.bf16.mxu1 %v2466_v42 }
 0x27e   :  { %1878 = vmatpush1.bf16.msra.mxu0 %v2469_v46  ;;  %1910 = vmatpush1.bf16.msra.mxu1 %v2473_v47 }
 0x27f   :  { %1912 = vmatprep.subr.bf16.mxu0 %v2382_v4  ;;  %1944 = vmatprep.subr.bf16.mxu1 %v2384_v8 }
 0x334   :  { %v553_v30 = vpop.f32.mrb[4].mxu0  ;;  %v624_v32 = vpop.f32.mrb[4].mxu1 }
 0x335   :  { %v555_v33 = vpop.f32.mrb[5].mxu0  ;;  %v626_v38 = vpop.f32.mrb[5].mxu1 }
 0x336   :  { %v635_v41 = vcombine.low %v553_v30, %v555_v33  ;;  %v636_v43 = vcombine.low %v624_v32, %v626_v38  ;;  %v817_v32 = vld [vmem:[#allocation4 + $0x18] sm:$0xff] }
 0x338   :  { %v643_v45 = vrot.slane %v635_v41, %v2514_v59  ;;  %v650_v48 = vrot.slane %v636_v43, %v2514_v59 }
 0x33a   :  { %v651_v50 = vcombine.low %v643_v45, %v650_v48 }
 0x33c   :  { %v653_v54 = vadd.f32 %v651_v50, %v630_v49 }
 0x33e   :  { %v1649_v55 = vmul.f32 -1.442695, %v653_v54 }
 0x340   :  { %2190 = vpow2.f32 %v1649_v55 }
 0x34a   :  { %v2191_v56 = vpop.eup %2190 }
 0x34b   :  { %v657_v58 = vadd.f32 1.0, %v2191_v56 }
 0x34d   :  { %2192 = vrcp.f32 %v657_v58 }
 0x357   :  { %v2193_v60 = vpop.eup %2192 }
 0x358   :  { %v661_v61 = vrot.slane %v2193_v60, 2  ;;  %v664_v62 = vrot.slane %v2193_v60, 4  ;;  %v669_v10 = vrot.slane %v2193_v60, 6 }
 0x35a   :  { %v663_v3 = vadd.f32 %v661_v61, %v480_v23  ;;  %v666_v5 = vmul.f32 %v2193_v60, %v664_v62 }
 0x35c   :  { %v667_v6 = vadd.f32 %v666_v5, %v663_v3 }
 0x35e   :  { %2194 = vtanh.f32 %v667_v6 }
 0x368   :  { %v2195_v11 = vpop.eup %2194 }
 0x369   :  { %v671_v12 = vadd.f32 %v2195_v11, %v669_v10 }
 0x36b   :  { %673 = vst [vmem:[#allocation9 + $0x4] sm:$0x3] %v671_v12  ;;  %739 = vmatmul.mubr.f32.vlgmr.msra.gmra.mrb[6].mxu0 %v671_v12  ;;  %810 = vmatmul.mubr.f32.vlgmr.msra.gmra.mrb[6].mxu1 %v671_v12 }
 0x36c   :  { %1914 = vmatpush1.bf16.msra.mxu0 %v2386_v9  ;;  %1946 = vmatpush1.bf16.msra.mxu1 %v2389_v13 }
 0x36d   :  { %1916 = vmatprep.subr.bf16.mxu0 %v2393_v17  ;;  %1948 = vmatprep.subr.bf16.mxu1 %v2395_v18 }
 0x36e   :  { %925 = vmatprep.mubr.f32.mxu0 %v2328_v0  ;;  %996 = vmatprep.mubr.f32.mxu1 %v2328_v0 }
 0x370   :  { %1918 = vmatpush1.bf16.msra.mxu0 %v2398_v22  ;;  %1950 = vmatpush1.bf16.msra.mxu1 %v2402_v26 }
 0x371   :  { %1920 = vmatprep.subr.bf16.mxu0 %v2404_v27  ;;  %1952 = vmatprep.subr.bf16.mxu1 %v2406_v31 }
 0x374   :  { %1922 = vmatpush1.bf16.msra.mxu0 %v2409_v35  ;;  %1954 = vmatpush1.bf16.msra.mxu1 %v2413_v39 }
 0x375   :  { %1924 = vmatprep.subr.bf16.mxu0 %v2415_v40  ;;  %1956 = vmatprep.subr.bf16.mxu1 %v2418_v44 }
 0x378   :  { %1926 = vmatpush1.bf16.msra.mxu0 %v2421_v51  ;;  %1958 = vmatpush1.bf16.msra.mxu1 %v2425_v52 }
 0x379   :  { %1928 = vmatprep.subr.bf16.mxu0 %v2427_v53  ;;  %1960 = vmatprep.subr.bf16.mxu1 %v2430_v57 }
 0x37c   :  { %1930 = vmatpush1.bf16.msra.mxu0 %v2433_v63  ;;  %1962 = vmatpush1.bf16.msra.mxu1 %v2437_v1 }
 0x37d   :  { %1932 = vmatprep.subr.bf16.mxu0 %v2439_v2  ;;  %1964 = vmatprep.subr.bf16.mxu1 %v2442_v7 }
 0x380   :  { %1934 = vmatpush1.bf16.msra.mxu0 %v2445_v16  ;;  %1966 = vmatpush1.bf16.msra.mxu1 %v2449_v19 }
 0x381   :  { %1936 = vmatprep.subr.bf16.mxu0 %v2451_v20  ;;  %1968 = vmatprep.subr.bf16.mxu1 %v2454_v25 }
 0x384   :  { %1938 = vmatpush1.bf16.msra.mxu0 %v2457_v34  ;;  %1970 = vmatpush1.bf16.msra.mxu1 %v2461_v36 }
 0x385   :  { %1940 = vmatprep.subr.bf16.mxu0 %v2463_v37  ;;  %1972 = vmatprep.subr.bf16.mxu1 %v2466_v42 }
 0x388   :  { %1942 = vmatpush1.bf16.msra.mxu0 %v2469_v46  ;;  %1974 = vmatpush1.bf16.msra.mxu1 %v2473_v47 }
 0x389   :  { %1976 = vmatprep.subr.bf16.mxu0 %v2382_v4  ;;  %2008 = vmatprep.subr.bf16.mxu1 %v2384_v8 }
 0x43e   :  { %v740_v14 = vpop.f32.mrb[6].mxu0  ;;  %v811_v15 = vpop.f32.mrb[6].mxu1 }
 0x43f   :  { %v742_v21 = vpop.f32.mrb[7].mxu0  ;;  %v813_v23 = vpop.f32.mrb[7].mxu1 }
 0x440   :  { %v822_v24 = vcombine.low %v740_v14, %v742_v21  ;;  %v823_v28 = vcombine.low %v811_v15, %v813_v23  ;;  %v1004_v15 = vld [vmem:[#allocation4 + $0x20] sm:$0xff] }
 0x442   :  { %v830_v29 = vrot.slane %v822_v24, %v2514_v59  ;;  %v837_v30 = vrot.slane %v823_v28, %v2514_v59 }
 0x444   :  { %v838_v33 = vcombine.low %v830_v29, %v837_v30 }
 0x446   :  { %v840_v38 = vadd.f32 %v838_v33, %v817_v32 }
 0x448   :  { %v1650_v41 = vmul.f32 -1.442695, %v840_v38 }
 0x44a   :  { %2196 = vpow2.f32 %v1650_v41 }
 0x454   :  { %v2197_v43 = vpop.eup %2196 }
 0x455   :  { %v844_v45 = vadd.f32 1.0, %v2197_v43 }
 0x457   :  { %2198 = vrcp.f32 %v844_v45 }
 0x461   :  { %v2199_v48 = vpop.eup %2198 }
 0x462   :  { %v848_v49 = vrot.slane %v2199_v48, 2  ;;  %v851_v50 = vrot.slane %v2199_v48, 4  ;;  %v856_v58 = vrot.slane %v2199_v48, 6 }
 0x464   :  { %v850_v54 = vadd.f32 %v848_v49, %v667_v6  ;;  %v853_v55 = vmul.f32 %v2199_v48, %v851_v50 }
 0x466   :  { %v854_v56 = vadd.f32 %v853_v55, %v850_v54 }
 0x468   :  { %2200 = vtanh.f32 %v854_v56 }
 0x472   :  { %v2201_v60 = vpop.eup %2200 }
 0x473   :  { %v858_v61 = vadd.f32 %v2201_v60, %v856_v58 }
 0x475   :  { %860 = vst [vmem:[#allocation9 + $0x6] sm:$0x3] %v858_v61  ;;  %926 = vmatmul.mubr.f32.vlgmr.msra.gmra.mrb[8].mxu0 %v858_v61  ;;  %997 = vmatmul.mubr.f32.vlgmr.msra.gmra.mrb[8].mxu1 %v858_v61 }
 0x476   :  { %1978 = vmatpush1.bf16.msra.mxu0 %v2386_v9  ;;  %2010 = vmatpush1.bf16.msra.mxu1 %v2389_v13 }
 0x477   :  { %1980 = vmatprep.subr.bf16.mxu0 %v2393_v17  ;;  %2012 = vmatprep.subr.bf16.mxu1 %v2395_v18 }
 0x478   :  { %1112 = vmatprep.mubr.f32.mxu0 %v2328_v0  ;;  %1183 = vmatprep.mubr.f32.mxu1 %v2328_v0 }
 0x47a   :  { %1982 = vmatpush1.bf16.msra.mxu0 %v2398_v22  ;;  %2014 = vmatpush1.bf16.msra.mxu1 %v2402_v26 }
 0x47b   :  { %1984 = vmatprep.subr.bf16.mxu0 %v2404_v27  ;;  %2016 = vmatprep.subr.bf16.mxu1 %v2406_v31 }
 0x47e   :  { %1986 = vmatpush1.bf16.msra.mxu0 %v2409_v35  ;;  %2018 = vmatpush1.bf16.msra.mxu1 %v2413_v39 }
 0x47f   :  { %1988 = vmatprep.subr.bf16.mxu0 %v2415_v40  ;;  %2020 = vmatprep.subr.bf16.mxu1 %v2418_v44 }
 0x482   :  { %1990 = vmatpush1.bf16.msra.mxu0 %v2421_v51  ;;  %2022 = vmatpush1.bf16.msra.mxu1 %v2425_v52 }
 0x483   :  { %1992 = vmatprep.subr.bf16.mxu0 %v2427_v53  ;;  %2024 = vmatprep.subr.bf16.mxu1 %v2430_v57 }
 0x486   :  { %1994 = vmatpush1.bf16.msra.mxu0 %v2433_v63  ;;  %2026 = vmatpush1.bf16.msra.mxu1 %v2437_v1 }
 0x487   :  { %1996 = vmatprep.subr.bf16.mxu0 %v2439_v2  ;;  %2028 = vmatprep.subr.bf16.mxu1 %v2442_v7 }
 0x48a   :  { %1998 = vmatpush1.bf16.msra.mxu0 %v2445_v16  ;;  %2030 = vmatpush1.bf16.msra.mxu1 %v2449_v19 }
 0x48b   :  { %2000 = vmatprep.subr.bf16.mxu0 %v2451_v20  ;;  %2032 = vmatprep.subr.bf16.mxu1 %v2454_v25 }
 0x48e   :  { %2002 = vmatpush1.bf16.msra.mxu0 %v2457_v34  ;;  %2034 = vmatpush1.bf16.msra.mxu1 %v2461_v36 }
 0x48f   :  { %2004 = vmatprep.subr.bf16.mxu0 %v2463_v37  ;;  %2036 = vmatprep.subr.bf16.mxu1 %v2466_v42 }
 0x492   :  { %2006 = vmatpush1.bf16.msra.mxu0 %v2469_v46  ;;  %2038 = vmatpush1.bf16.msra.mxu1 %v2473_v47 }
 0x493   :  { %2040 = vmatprep.subr.bf16.mxu0 %v2382_v4  ;;  %2072 = vmatprep.subr.bf16.mxu1 %v2384_v8 }
 0x548   :  { %v927_v62 = vpop.f32.mrb[8].mxu0  ;;  %v998_v3 = vpop.f32.mrb[8].mxu1 }
 0x549   :  { %v929_v5 = vpop.f32.mrb[9].mxu0  ;;  %v1000_v6 = vpop.f32.mrb[9].mxu1 }
 0x54a   :  { %v1009_v10 = vcombine.low %v927_v62, %v929_v5  ;;  %v1010_v11 = vcombine.low %v998_v3, %v1000_v6  ;;  %v1191_v3 = vld [vmem:[#allocation4 + $0x28] sm:$0xff] }
 0x54c   :  { %v1017_v12 = vrot.slane %v1009_v10, %v2514_v59  ;;  %v1024_v14 = vrot.slane %v1010_v11, %v2514_v59 }
 0x54e   :  { %v1025_v21 = vcombine.low %v1017_v12, %v1024_v14 }
 0x550   :  { %v1027_v23 = vadd.f32 %v1025_v21, %v1004_v15 }
 0x552   :  { %v1651_v24 = vmul.f32 -1.442695, %v1027_v23 }
 0x554   :  { %2202 = vpow2.f32 %v1651_v24 }
 0x55e   :  { %v2203_v28 = vpop.eup %2202 }
 0x55f   :  { %v1031_v29 = vadd.f32 1.0, %v2203_v28 }
 0x561   :  { %2204 = vrcp.f32 %v1031_v29 }
 0x56b   :  { %v2205_v30 = vpop.eup %2204 }
 0x56c   :  { %v1035_v32 = vrot.slane %v2205_v30, 2  ;;  %v1038_v33 = vrot.slane %v2205_v30, 4  ;;  %v1043_v45 = vrot.slane %v2205_v30, 6 }
 0x56e   :  { %v1037_v38 = vadd.f32 %v1035_v32, %v854_v56  ;;  %v1040_v41 = vmul.f32 %v2205_v30, %v1038_v33  ;;  %v1565_v30 = vld [vmem:[#allocation4 + $0x38] sm:$0xff] }
 0x570   :  { %v1041_v43 = vadd.f32 %v1040_v41, %v1037_v38 }
 0x572   :  { %2206 = vtanh.f32 %v1041_v43 }
 0x57c   :  { %v2207_v48 = vpop.eup %2206 }
 0x57d   :  { %v1045_v49 = vadd.f32 %v2207_v48, %v1043_v45 }
 0x57f   :  { %1047 = vst [vmem:[#allocation9 + $0x8] sm:$0x3] %v1045_v49  ;;  %1113 = vmatmul.mubr.f32.vlgmr.msra.gmra.mrb[10].mxu0 %v1045_v49  ;;  %1184 = vmatmul.mubr.f32.vlgmr.msra.gmra.mrb[10].mxu1 %v1045_v49 }
 0x580   :  { %2042 = vmatpush1.bf16.msra.mxu0 %v2386_v9  ;;  %2074 = vmatpush1.bf16.msra.mxu1 %v2389_v13 }
 0x581   :  { %2044 = vmatprep.subr.bf16.mxu0 %v2393_v17  ;;  %2076 = vmatprep.subr.bf16.mxu1 %v2395_v18 }
 0x582   :  { %1299 = vmatprep.mubr.f32.mxu0 %v2328_v0  ;;  %1370 = vmatprep.mubr.f32.mxu1 %v2328_v0 }
 0x584   :  { %2046 = vmatpush1.bf16.msra.mxu0 %v2398_v22  ;;  %2078 = vmatpush1.bf16.msra.mxu1 %v2402_v26 }
 0x585   :  { %2048 = vmatprep.subr.bf16.mxu0 %v2404_v27  ;;  %2080 = vmatprep.subr.bf16.mxu1 %v2406_v31 }
 0x588   :  { %2050 = vmatpush1.bf16.msra.mxu0 %v2409_v35  ;;  %2082 = vmatpush1.bf16.msra.mxu1 %v2413_v39 }
 0x589   :  { %2052 = vmatprep.subr.bf16.mxu0 %v2415_v40  ;;  %2084 = vmatprep.subr.bf16.mxu1 %v2418_v44 }
 0x58c   :  { %2054 = vmatpush1.bf16.msra.mxu0 %v2421_v51  ;;  %2086 = vmatpush1.bf16.msra.mxu1 %v2425_v52 }
 0x58d   :  { %2056 = vmatprep.subr.bf16.mxu0 %v2427_v53  ;;  %2088 = vmatprep.subr.bf16.mxu1 %v2430_v57 }
 0x590   :  { %2058 = vmatpush1.bf16.msra.mxu0 %v2433_v63  ;;  %2090 = vmatpush1.bf16.msra.mxu1 %v2437_v1 }
 0x591   :  { %2060 = vmatprep.subr.bf16.mxu0 %v2439_v2  ;;  %2092 = vmatprep.subr.bf16.mxu1 %v2442_v7 }
 0x594   :  { %2062 = vmatpush1.bf16.msra.mxu0 %v2445_v16  ;;  %2094 = vmatpush1.bf16.msra.mxu1 %v2449_v19 }
 0x595   :  { %2064 = vmatprep.subr.bf16.mxu0 %v2451_v20  ;;  %2096 = vmatprep.subr.bf16.mxu1 %v2454_v25 }
 0x598   :  { %2066 = vmatpush1.bf16.msra.mxu0 %v2457_v34  ;;  %2098 = vmatpush1.bf16.msra.mxu1 %v2461_v36 }
 0x599   :  { %2068 = vmatprep.subr.bf16.mxu0 %v2463_v37  ;;  %2100 = vmatprep.subr.bf16.mxu1 %v2466_v42 }
 0x59c   :  { %2070 = vmatpush1.bf16.msra.mxu0 %v2469_v46  ;;  %2102 = vmatpush1.bf16.msra.mxu1 %v2473_v47 }
 0x59d   :  { %2104 = vmatprep.subr.bf16.mxu0 %v2382_v4  ;;  %2136 = vmatprep.subr.bf16.mxu1 %v2384_v8 }
 0x652   :  { %v1114_v50 = vpop.f32.mrb[10].mxu0  ;;  %v1185_v54 = vpop.f32.mrb[10].mxu1 }
 0x653   :  { %v1116_v55 = vpop.f32.mrb[11].mxu0  ;;  %v1187_v56 = vpop.f32.mrb[11].mxu1 }
 0x654   :  { %v1196_v58 = vcombine.low %v1114_v50, %v1116_v55  ;;  %v1197_v60 = vcombine.low %v1185_v54, %v1187_v56 }
 0x656   :  { %v1204_v61 = vrot.slane %v1196_v58, %v2514_v59  ;;  %v1211_v62 = vrot.slane %v1197_v60, %v2514_v59 }
 0x658   :  { %v1212_v5 = vcombine.low %v1204_v61, %v1211_v62 }
 0x65a   :  { %v1214_v6 = vadd.f32 %v1212_v5, %v1191_v3 }
 0x65c   :  { %v1652_v10 = vmul.f32 -1.442695, %v1214_v6 }
 0x65e   :  { %2208 = vpow2.f32 %v1652_v10 }
 0x668   :  { %v2209_v11 = vpop.eup %2208 }
 0x669   :  { %v1218_v12 = vadd.f32 1.0, %v2209_v11 }
 0x66b   :  { %2210 = vrcp.f32 %v1218_v12 }
 0x675   :  { %v2211_v4 = vpop.eup %2210 }
 0x676   :  { %v1222_v8 = vrot.slane %v2211_v4, 2  ;;  %v1225_v14 = vrot.slane %v2211_v4, 4  ;;  %v1230_v24 = vrot.slane %v2211_v4, 6 }
 0x678   :  { %v1224_v15 = vadd.f32 %v1222_v8, %v1041_v43  ;;  %v1227_v21 = vmul.f32 %v2211_v4, %v1225_v14 }
 0x67a   :  { %v1228_v23 = vadd.f32 %v1227_v21, %v1224_v15 }
 0x67c   :  { %2212 = vtanh.f32 %v1228_v23 }
 0x686   :  { %v2213_v28 = vpop.eup %2212 }
 0x687   :  { %v1232_v29 = vadd.f32 %v2213_v28, %v1230_v24 }
 0x689   :  { %1234 = vst [vmem:[#allocation9 + $0xa] sm:$0x3] %v1232_v29  ;;  %1300 = vmatmul.mubr.f32.vlgmr.msra.gmra.mrb[12].mxu0 %v1232_v29  ;;  %1371 = vmatmul.mubr.f32.vlgmr.msra.gmra.mrb[12].mxu1 %v1232_v29 }
 0x68a   :  { %2106 = vmatpush1.bf16.msra.mxu0 %v2386_v9  ;;  %2138 = vmatpush1.bf16.msra.mxu1 %v2389_v13 }
 0x68b   :  { %2108 = vmatprep.subr.bf16.mxu0 %v2393_v17  ;;  %2140 = vmatprep.subr.bf16.mxu1 %v2395_v18 }
 0x68c   :  { %1486 = vmatprep.mubr.f32.mxu0 %v2328_v0  ;;  %1557 = vmatprep.mubr.f32.mxu1 %v2328_v0 }
 0x68e   :  { %2110 = vmatpush1.bf16.msra.mxu0 %v2398_v22  ;;  %2142 = vmatpush1.bf16.msra.mxu1 %v2402_v26 }
 0x68f   :  { %2112 = vmatprep.subr.bf16.mxu0 %v2404_v27  ;;  %2144 = vmatprep.subr.bf16.mxu1 %v2406_v31  ;;  %v1378_v31 = vld [vmem:[#allocation4 + $0x30] sm:$0xff] }
 0x692   :  { %2114 = vmatpush1.bf16.msra.mxu0 %v2409_v35  ;;  %2146 = vmatpush1.bf16.msra.mxu1 %v2413_v39 }
 0x693   :  { %2116 = vmatprep.subr.bf16.mxu0 %v2415_v40  ;;  %2148 = vmatprep.subr.bf16.mxu1 %v2418_v44 }
 0x696   :  { %2118 = vmatpush1.bf16.msra.mxu0 %v2421_v51  ;;  %2150 = vmatpush1.bf16.msra.mxu1 %v2425_v52 }
 0x697   :  { %2120 = vmatprep.subr.bf16.mxu0 %v2427_v53  ;;  %2152 = vmatprep.subr.bf16.mxu1 %v2430_v57 }
 0x69a   :  { %2122 = vmatpush1.bf16.msra.mxu0 %v2433_v63  ;;  %2154 = vmatpush1.bf16.msra.mxu1 %v2437_v1 }
 0x69b   :  { %2124 = vmatprep.subr.bf16.mxu0 %v2439_v2  ;;  %2156 = vmatprep.subr.bf16.mxu1 %v2442_v7 }
 0x69e   :  { %2126 = vmatpush1.bf16.msra.mxu0 %v2445_v16  ;;  %2158 = vmatpush1.bf16.msra.mxu1 %v2449_v19 }
 0x69f   :  { %2128 = vmatprep.subr.bf16.mxu0 %v2451_v20  ;;  %2160 = vmatprep.subr.bf16.mxu1 %v2454_v25 }
 0x6a2   :  { %2130 = vmatpush1.bf16.msra.mxu0 %v2457_v34  ;;  %2162 = vmatpush1.bf16.msra.mxu1 %v2461_v36 }
 0x6a3   :  { %2132 = vmatprep.subr.bf16.mxu0 %v2463_v37  ;;  %2164 = vmatprep.subr.bf16.mxu1 %v2466_v42 }
 0x6a6   :  { %2134 = vmatpush1.bf16.msra.mxu0 %v2469_v46  ;;  %2166 = vmatpush1.bf16.msra.mxu1 %v2473_v47 }
 0x75c   :  { %v1301_v0 = vpop.f32.mrb[12].mxu0  ;;  %v1372_v9 = vpop.f32.mrb[12].mxu1 }
 0x75d   :  { %v1303_v13 = vpop.f32.mrb[13].mxu0  ;;  %v1374_v17 = vpop.f32.mrb[13].mxu1 }
 0x75e   :  { %v1383_v18 = vcombine.low %v1301_v0, %v1303_v13  ;;  %v1384_v22 = vcombine.low %v1372_v9, %v1374_v17 }
 0x760   :  { %v1391_v26 = vrot.slane %v1383_v18, %v2514_v59  ;;  %v1398_v27 = vrot.slane %v1384_v22, %v2514_v59 }
 0x762   :  { %v1399_v35 = vcombine.low %v1391_v26, %v1398_v27 }
 0x764   :  { %v1401_v39 = vadd.f32 %v1399_v35, %v1378_v31 }
 0x766   :  { %v1653_v40 = vmul.f32 -1.442695, %v1401_v39 }
 0x768   :  { %2214 = vpow2.f32 %v1653_v40 }
 0x772   :  { %v2215_v44 = vpop.eup %2214 }
 0x773   :  { %v1405_v51 = vadd.f32 1.0, %v2215_v44 }
 0x775   :  { %2216 = vrcp.f32 %v1405_v51 }
 0x77f   :  { %v2217_v52 = vpop.eup %2216 }
 0x780   :  { %v1409_v53 = vrot.slane %v2217_v52, 2  ;;  %v1412_v57 = vrot.slane %v2217_v52, 4  ;;  %v1417_v7 = vrot.slane %v2217_v52, 6 }
 0x782   :  { %v1411_v63 = vadd.f32 %v1409_v53, %v1228_v23  ;;  %v1414_v1 = vmul.f32 %v2217_v52, %v1412_v57 }
 0x784   :  { %v1415_v2 = vadd.f32 %v1414_v1, %v1411_v63 }
 0x786   :  { %2218 = vtanh.f32 %v1415_v2 }
 0x790   :  { %v2219_v16 = vpop.eup %2218 }
 0x791   :  { %v1419_v19 = vadd.f32 %v2219_v16, %v1417_v7 }
 0x793   :  { %1421 = vst [vmem:[#allocation9 + $0xc] sm:$0x3] %v1419_v19  ;;  %1487 = vmatmul.mubr.f32.vlgmr.msra.gmra.mrb[14].mxu0 %v1419_v19  ;;  %1558 = vmatmul.mubr.f32.vlgmr.msra.gmra.mrb[14].mxu1 %v1419_v19 }
 0x866   :  { %v1488_v20 = vpop.f32.mrb[14].mxu0  ;;  %v1559_v25 = vpop.f32.mrb[14].mxu1 }
 0x867   :  { %v1490_v34 = vpop.f32.mrb[15].mxu0  ;;  %v1561_v36 = vpop.f32.mrb[15].mxu1 }
 0x868   :  { %v1570_v37 = vcombine.low %v1488_v20, %v1490_v34  ;;  %v1571_v42 = vcombine.low %v1559_v25, %v1561_v36 }
 0x86a   :  { %v1578_v46 = vrot.slane %v1570_v37, %v2514_v59  ;;  %v1585_v47 = vrot.slane %v1571_v42, %v2514_v59 }
 0x86c   :  { %v1586_v32 = vcombine.low %v1578_v46, %v1585_v47 }
 0x86e   :  { %v1588_v33 = vadd.f32 %v1586_v32, %v1565_v30 }
 0x870   :  { %v1654_v38 = vmul.f32 -1.442695, %v1588_v33 }
 0x872   :  { %2220 = vpow2.f32 %v1654_v38 }
 0x87c   :  { %v2221_v41 = vpop.eup %2220 }
 0x87d   :  { %v1592_v43 = vadd.f32 1.0, %v2221_v41 }
 0x87f   :  { %2222 = vrcp.f32 %v1592_v43 }
 0x889   :  { %v2223_v45 = vpop.eup %2222 }
 0x88a   :  { %v1596_v48 = vrot.slane %v2223_v45, 2  ;;  %v1599_v49 = vrot.slane %v2223_v45, 4 }
 0x88c   :  { %v1598_v50 = vadd.f32 %v1596_v48, %v1415_v2  ;;  %v1601_v54 = vmul.f32 %v2223_v45, %v1599_v49 }
 0x88e   :  { %v1602_v55 = vadd.f32 %v1601_v54, %v1598_v50 }
 0x890   :  { %2224 = vtanh.f32 %v1602_v55  ;;  %1610 = vst [vmem:[#allocation3] sm:$0x3] %v1602_v55  ;;  %1614 = vst [vmem:[#allocation10] sm:$0x3] %v1602_v55 }
 0x891   :  { %2281 = shalt.err (!%p2278_p6)
}
 0x892   :  { %s2282_s16 = scalar_lea.hbm %s2763_s3, 32 }
 0x893   :  { %p2283_p7 = scmp.ne.s32.totalorder %s2763_s3, %s2282_s16  ;;  %p2286_p8 = scmp.lt.u32.totalorder %s2282_s16, %s2763_s3 }
 0x895   :  { %p2288_p9 = pnand %p2286_p8, %p2283_p7 }
 0x897   :  { %2291 = shalt.err (!%p2288_p9)
}
 0x898   :  { %1636 = dma.vmem_to_hbm [thread:$0]  %s1634_s12, 32, %s2763_s3, [#allocation11]   ;;  %v1604_v59 = vrot.slane %v2223_v45, 6 }
 0x899   :  { %s2331_s23 = smov [#allocation9]  }
 0x89a   :  { %s1620_s24 = sshll.u32 %s2331_s23, 4  ;;  %v2225_v56 = vpop.eup %2224  ;;  %s1621_s24 = int_to_ptr.vmem [resolvable:$true] %s1620_s24 }
 0x89b   :  { %v1606_v58 = vadd.f32 %v2225_v56, %v1604_v59  ;;  %s2292_s25 = scalar_lea.vmem %s1621_s24, 256  ;;  %p2297_p11 = scmp.lt.s32.totalorder %s1621_s24, %s1621_s24 }
 0x89c   :  { %p2293_p10 = scmp.ne.s32.totalorder %s1621_s24, %s2292_s25  ;;  %p2298_p12 = scmp.lt.s32.totalorder %s2292_s25, %s2292_s25 }
 0x89d   :  { %1608 = vst [vmem:[#allocation9 + $0xe] sm:$0x3] %v1606_v58  ;;  %1609 = vst [vmem:[#allocation2] sm:$0x3] %v1606_v58 }
 0x89e   :  { %p2299_p13 = por %p2298_p12, %p2297_p11 }
 0x8a0   :  { %p2300_p0 = pnand %p2299_p13, %p2293_p10 }
 0x8a2   :  { %2303 = shalt.err (!%p2300_p0)
}
 0x8a3   :  { %s2304_s28 = scalar_lea.hbm %s2762_s2, 256 }
 0x8a4   :  { %p2305_p1 = scmp.ne.s32.totalorder %s2762_s2, %s2304_s28  ;;  %p2308_p2 = scmp.lt.u32.totalorder %s2304_s28, %s2762_s2 }
 0x8a6   :  { %p2310_p3 = pnand %p2308_p2, %p2305_p1 }
 0x8a8   :  { %2313 = shalt.err (!%p2310_p3)
}
 0x8a9   :  { %s2332_s5 = smov 2  }
 0x8aa   :  { %1626 = dma.vmem_to_hbm [thread:$0]  %s1621_s24, 256, %s2762_s2, [#allocation6], %s2327_s9, %s2327_s9, %s2332_s5  }
 0x8ab   :  { %2318 = dma.done.wait [#allocation6], 256  }
 0x8ac   :  { %2319 = vsyncadd [#allocation6], 4294967040 }
 0x8ad   :  { %2320 = dma.done.wait [#allocation11], 32  }
 0x8ae   :  { %2321 = vsyncadd [#allocation11], 4294967264 }
 0x8af   :  { %1643 = vsyncpa [#allocation5], 1 }
 0x8b0   :  { %1644 = vsyncpa [#allocation8], 1 }
 0x8b1   :  { %1645 = vsyncpa [#allocation6], 1 }
 0x8b2   :  { %1646 = vsyncpa [#allocation11], 1 }

</bundles_post_ra>
